<compile_context>
chip_gen: v7x
topology: tpu7x:2x2x1
jax: 0.10.0
libtpu: 0.0.40
codegen_flags: <defaults>
</compile_context>

<pallas_src>
import functools
import math

import jax
import jax.numpy as jnp
from jax import lax
from jax.experimental import pallas as pl
from jax.experimental.pallas import tpu as pltpu

_EPS = 1e-5
# Proven-safe scoped budget; can be raised to ~48 MiB on v7x (64 MiB physical)
# and ~100 MiB on v5e/v6e (128 MiB physical) when enlarging per-step tiles.
_VMEM_LIMIT = 32 * 1024 * 1024

_COL_PAD_L = 1    # one zero column-group left of the interior (conv2 padding)
_COL_PAD_R = 15   # right pad keeps the padded width a multiple of 16 (bf16 tile)


def _leaky(v):
    return jnp.where(v > 0, v, 0.2 * v)


# ----------------------------------------------------------------------------
# Wrapper-side layout plumbing (cheap XLA reshapes / pads, no big expansions)
# ----------------------------------------------------------------------------
def _build_conv1_lhs(x_nhwc, oh2, ow2):
    """conv1 LHS: paired output columns, bias lane, zero boundary col-groups,
    rows split by conv1-output-row parity.  Shape (N, 2*OH2, OW2C, 32*Cin+1)."""
    n, h, w, cin = x_nhwc.shape
    oh1, ow1 = h // 2, w // 2
    xp = jnp.pad(x_nhwc, ((0, 0), (1, 1), (1, 1), (0, 0)))
    cols = []
    for ki in range(4):
        for kj in range(4):
            cols.append(xp[:, ki:ki + 2 * oh1:2, kj:kj + 2 * ow1:2, :])
    p = jnp.stack(cols, axis=3).reshape(n, oh1, ow1, 16 * cin)   # patch order (ki,kj,cin)
    p = p.reshape(n, oh1, ow2, 32 * cin)                         # pair adjacent out cols
    ones = jnp.ones((n, oh1, ow2, 1), p.dtype)                   # constant-1 bias lane
    p = jnp.concatenate([p, ones], axis=-1)
    k = 32 * cin + 1
    # split conv1-output rows by parity: row r -> (parity = r % 2, ry = r // 2)
    p = p.reshape(n, oh2, 2, ow2, k).transpose(0, 2, 1, 3, 4).reshape(n, 2 * oh2, ow2, k)
    # zero column groups (conv2 spatial padding); all-zero rows stay zero after conv1
    p = jnp.pad(p, ((0, 0), (0, 0), (_COL_PAD_L, _COL_PAD_R), (0, 0)))
    return p.astype(jnp.bfloat16)


def _pack_conv1_weight(w1, b1):
    """Block-diagonal conv1 weight (even/odd output pixel) + bias row: (32*Cin+1, 128)."""
    cout, cin, _, _ = w1.shape
    w1_mat = jnp.transpose(w1, (2, 3, 1, 0)).reshape(16 * cin, 64)   # rows (ki,kj,cin)
    zer = jnp.zeros_like(w1_mat)
    top = jnp.concatenate([w1_mat, zer], axis=1)        # even pixel -> out lanes 0:64
    bot = jnp.concatenate([zer, w1_mat], axis=1)        # odd  pixel -> out lanes 64:128
    bias = jnp.concatenate([b1, b1]).reshape(1, 128)
    return jnp.concatenate([top, bot, bias], axis=0).astype(jnp.bfloat16)


def _pack_conv2_weight(w2):
    """conv2 weights absorbing the column-parity selection: (12, 128, 128),
    indexed [ki*3 + column_shift]."""
    wk = jnp.transpose(w2, (2, 3, 1, 0))                # (ki, kj, cin=64, cout=128)
    zer = jnp.zeros((64, 128), w2.dtype)
    mats = []
    for ki in range(4):
        mats.append(jnp.concatenate([zer, wk[ki, 0]], axis=0))        # shift 0: kj=0 (odd half)
        mats.append(jnp.concatenate([wk[ki, 1], wk[ki, 2]], axis=0))  # shift 1: kj=1 even, kj=2 odd
        mats.append(jnp.concatenate([wk[ki, 3], zer], axis=0))        # shift 2: kj=3 (even half)
    return jnp.stack(mats, axis=0).astype(jnp.bfloat16)


# ----------------------------------------------------------------------------
# Pallas kernels
# ----------------------------------------------------------------------------
def _fused_conv_bn_stats_kernel(p1_ref, w1_ref, w2_ref, z_ref, st_ref, h1_ref,
                                *, oh2, ow2):
    """Fused conv1 + LeakyReLU + conv2 (implicit GEMM) + BN-stat partials.

    p1_ref : (1, 2*OH2, OW2C, K)   bf16  conv1 LHS (see _build_conv1_lhs)
    w1_ref : (K, 128)              bf16
    w2_ref : (12, 128, 128)        bf16
    z_ref  : (1, OH2*OW2, 128)     bf16  out: pre-bias conv2 output (bias cancels in BN)
    st_ref : (1, 2, 128)           f32   out: per-sample [sum, sum_sq] over spatial
    h1_ref : (2*(OH2+2), OW2C, 128) f32  scratch: space-to-depth conv1 output, padded
    """
    ow2c = ow2 + _COL_PAD_L + _COL_PAD_R
    oh2p = oh2 + 2

    # Keep the padding rows valid on every step (megacore-safe: no pl.when(pid==0)).
    h1_ref[...] = jnp.zeros_like(h1_ref)

    # ---- conv1: one matmul per conv1-output-row parity.  The LHS already
    # carries the zero boundary column groups and a constant-1 bias lane, so
    # the result is stored full-width (aligned) with no separate bias add.
    for p in range(2):
        lhs = p1_ref[0, p * oh2:(p + 1) * oh2, :, :].reshape(oh2 * ow2c, -1)
        h = jnp.dot(lhs, w1_ref[...], preferred_element_type=jnp.float32)
        h = _leaky(h)
        h1_ref[p * oh2p + 1:p * oh2p + 1 + oh2, :, :] = h.reshape(oh2, ow2c, 128)

    # ---- conv2 as 12 shifted matmuls on the VMEM-resident conv1 output.
    # Scratch lanes: 0..63 = even conv1 column, 64..127 = odd conv1 column.
    acc = jnp.zeros((oh2 * ow2, 128), jnp.float32)
    parity = (1, 0, 1, 0)   # conv1-row parity used by conv2 kernel row ki
    delta = (0, 1, 1, 2)    # row offset inside that parity block
    for ki in range(4):
        base = parity[ki] * oh2p + delta[ki]
        blk = h1_ref[base:base + oh2, :, :]                       # (OH2, OW2C, 128) f32
        for c in range(3):                                        # column shift 0 / 1 / 2
            lhs = blk[:, c:c + ow2, :].reshape(oh2 * ow2, 128)
            acc = acc + jnp.dot(lhs.astype(jnp.bfloat16), w2_ref[ki * 3 + c],
                                preferred_element_type=jnp.float32)

    # Per-sample BN partials from the f32 accumulator (pre-bias => shifted sums).
    s1 = jnp.sum(acc, axis=0, keepdims=True)
    s2 = jnp.sum(acc * acc, axis=0, keepdims=True)
    st_ref[0] = jnp.concatenate([s1, s2], axis=0)

    z_ref[0] = acc.astype(z_ref.dtype)


def _bn_pool_fc_kernel(z_ref, mnv_ref, fcwb_ref, o_ref):
    """Training-mode BN + LeakyReLU + global average pool + Linear(128,1) + sigmoid."""
    z = z_ref[...].astype(jnp.float32)                  # (BT, S2, 128)
    mean = mnv_ref[0:1, :]                              # (1, 128)
    inv_std = mnv_ref[1:2, :]
    a = _leaky((z - mean) * inv_std)
    pooled = jnp.mean(a, axis=1)                        # (BT, 128)
    logit = jnp.sum(pooled * fcwb_ref[0:1, :], axis=-1, keepdims=True)
    logit = logit + fcwb_ref[1:2, 0:1]                  # (BT, 1)
    score = 1.0 / (1.0 + jnp.exp(-logit))
    o_ref[0] = jnp.broadcast_to(score, o_ref.shape[1:])  # lane-dense slab


# ----------------------------------------------------------------------------
# Discriminator forward (Pallas-backed)
# ----------------------------------------------------------------------------
def discriminator_forward(x, params, *, eps=_EPS):
    """x: (N, Cin, H, W) float32 -> (N, 1) sigmoid scores."""
    w1, b1, w2, b2, fcw, fcb = params
    n, cin, h, w = x.shape
    assert h % 4 == 0 and w % 32 == 0, "kernel assumes H % 4 == 0 and W % 32 == 0"
    del b2  # conv2 bias cancels exactly under training-mode BatchNorm

    oh2, ow2 = h // 4, w // 4
    ow2c = ow2 + _COL_PAD_L + _COL_PAD_R
    s2 = oh2 * ow2
    k = 32 * cin + 1

    x_nhwc = jnp.transpose(x, (0, 2, 3, 1))
    p1 = _build_conv1_lhs(x_nhwc, oh2, ow2)            # (N, 2*OH2, OW2C, K) bf16
    w1blk = _pack_conv1_weight(w1, b1)                  # (K, 128) bf16
    w2pack = _pack_conv2_weight(w2)                     # (12, 128, 128) bf16

    kernel_a = functools.partial(_fused_conv_bn_stats_kernel, oh2=oh2, ow2=ow2)
    z, stats = pl.pallas_call(
        kernel_a,
        grid=(n,),
        in_specs=[
            pl.BlockSpec((1, 2 * oh2, ow2c, k), lambda i: (i, 0, 0, 0)),
            pl.BlockSpec((k, 128), lambda i: (0, 0)),
            pl.BlockSpec((12, 128, 128), lambda i: (0, 0, 0)),
        ],
        out_specs=(
            pl.BlockSpec((1, s2, 128), lambda i: (i, 0, 0)),
            pl.BlockSpec((1, 2, 128), lambda i: (i, 0, 0)),
        ),
        out_shape=(
            jax.ShapeDtypeStruct((n, s2, 128), jnp.bfloat16),
            jax.ShapeDtypeStruct((n, 2, 128), jnp.float32),
        ),
        scratch_shapes=[pltpu.VMEM((2 * (oh2 + 2), ow2c, 128), jnp.float32)],
        compiler_params=pltpu.CompilerParams(
            dimension_semantics=("parallel",), vmem_limit_bytes=_VMEM_LIMIT),
    )(p1, w1blk, w2pack)

    # Training-mode biased batch statistics from the per-sample partials (f32).
    tot = jnp.sum(stats, axis=0)                        # (2, 128)
    cnt = jnp.float32(n * s2)
    mean = tot[0] / cnt
    var = jnp.maximum(tot[1] / cnt - mean * mean, 0.0)
    inv_std = lax.rsqrt(var + eps)
    mnv = jnp.stack([mean, inv_std], axis=0)            # (2, 128) f32

    # fc weight row + broadcast bias packed into one lane-dense (2, 128) array.
    fcwb = jnp.stack([fcw[:, 0].astype(jnp.float32),
                      jnp.full((128,), fcb[0], jnp.float32)], axis=0)

    bt = math.gcd(n, 8)                                 # samples per pass-2 grid step
    out = pl.pallas_call(
        _bn_pool_fc_kernel,
        grid=(n // bt,),
        in_specs=[
            pl.BlockSpec((bt, s2, 128), lambda i: (i, 0, 0)),
            pl.BlockSpec((2, 128), lambda i: (0, 0)),
            pl.BlockSpec((2, 128), lambda i: (0, 0)),
        ],
        out_specs=pl.BlockSpec((1, bt, 128), lambda i: (i, 0, 0)),
        out_shape=jax.ShapeDtypeStruct((n // bt, bt, 128), jnp.float32),
        compiler_params=pltpu.CompilerParams(
            dimension_semantics=("parallel",), vmem_limit_bytes=_VMEM_LIMIT),
    )(z, mnv, fcwb)

    return out.reshape(n, 128)[:, :1]                   # (N, 1)


# ----------------------------------------------------------------------------
# Pure-JAX reference (f32 end-to-end) for verification
# ----------------------------------------------------------------------------
def discriminator_reference(x, params):
    w1, b1, w2, b2, fcw, fcb = params
    dn = ('NCHW', 'OIHW', 'NCHW')

    y = lax.conv_general_dilated(x, w1, (2, 2), [(1, 1), (1, 1)],
                                 dimension_numbers=dn) + b1[None, :, None, None]
    y = jnp.where(y > 0, y, 0.2 * y)
    z = lax.conv_general_dilated(y, w2, (2, 2), [(1, 1), (1, 1)],
                                 dimension_numbers=dn) + b2[None, :, None, None]
    mean = jnp.mean(z, axis=(0, 2, 3), keepdims=True)
    var = jnp.mean((z - mean) ** 2, axis=(0, 2, 3), keepdims=True)   # biased
    z = (z - mean) * lax.rsqrt(var + _EPS)
    z = jnp.where(z > 0, z, 0.2 * z)
    pooled = jnp.mean(z, axis=(2, 3))                                # (N, 128)
    logits = pooled @ fcw + fcb[None, :]
    return jax.nn.sigmoid(logits)


# ----------------------------------------------------------------------------
# Deterministic parameter init + run
# ----------------------------------------------------------------------------
def make_params(key, in_channels=1):
    k1, k2, k3, k4, k5, k6 = jax.random.split(key, 6)
    w1 = jax.random.normal(k1, (64, in_channels, 4, 4), jnp.float32) * 0.05
    b1 = jax.random.normal(k2, (64,), jnp.float32) * 0.05
    w2 = jax.random.normal(k3, (128, 64, 4, 4), jnp.float32) * 0.02
    b2 = jax.random.normal(k4, (128,), jnp.float32) * 0.02
    fcw = jax.random.normal(k5, (128, 1), jnp.float32) * 0.05        # Linear weight^T
    fcb = jax.random.normal(k6, (1,), jnp.float32) * 0.05
    return (w1, b1, w2, b2, fcw, fcb)


if __name__ == "__main__":
    key = jax.random.PRNGKey(0)
    pkey, xkey = jax.random.split(key)
    params = make_params(pkey, in_channels=1)

    # Small shapes: batch=4, channels=1, 64x64 image — exercises the fused
    # per-sample grid, the cross-sample BN-stat reduction, and batched pass 2.
    x = jax.random.normal(xkey, (4, 1, 64, 64), jnp.float32)

    fwd = jax.jit(discriminator_forward)
    out = jax.block_until_ready(fwd(x, params))
    ref = jax.block_until_ready(discriminator_reference(x, params))

    assert out.shape == (4, 1), out.shape
    # bf16 MXU inputs / bf16 z storage (f32 accumulation) vs. pure-f32 reference.
    err = float(jnp.max(jnp.abs(out - ref)))
    assert err < 1e-2, (err, out, ref)
    print("KERNEL_OK")
</pallas_src>

<mosaic_0001>
module attributes {stable_mosaic.version = 11 : i64} {
  func.func @_fused_conv_bn_stats_kernel(%arg0: i32, %arg1: memref<1x32x32x33xbf16, #tpu.memory_space<vmem>>, %arg2: memref<33x128xbf16, #tpu.memory_space<vmem>>, %arg3: memref<12x128x128xbf16, #tpu.memory_space<vmem>>, %arg4: memref<1x256x128xbf16, #tpu.memory_space<vmem>>, %arg5: memref<1x2x128xf32, #tpu.memory_space<vmem>>, %arg6: memref<36x32x128xf32, #tpu.memory_space<vmem>>) attributes {dimension_semantics = [#tpu.dimension_semantics<parallel>], iteration_bounds = array<i64: 4>, scalar_prefetch = 0 : i64, scratch_operands = 1 : i64, tpu.core_type = #tpu.core_type<tc>, window_params = [{transform_indices = @transform_0, window_bounds = array<i64: 1, 32, 32, 33>}, {pipeline_mode = #tpu.pipeline_mode<synchronous>, transform_indices = @transform_1, window_bounds = array<i64: 33, 128>}, {pipeline_mode = #tpu.pipeline_mode<synchronous>, transform_indices = @transform_2, window_bounds = array<i64: 12, 128, 128>}, {transform_indices = @transform_3, window_bounds = array<i64: 1, 256, 128>}, {transform_indices = @transform_4, window_bounds = array<i64: 1, 2, 128>}]} {
    %cst = arith.constant 0.000000e+00 : f32
    %0 = vector.broadcast %cst : f32 to vector<36x32x128xf32>
    %c0 = arith.constant 0 : index
    %c0_0 = arith.constant 0 : index
    %c0_1 = arith.constant 0 : index
    %1 = vector.load %arg6[%c0, %c0_0, %c0_1] : memref<36x32x128xf32, #tpu.memory_space<vmem>>, vector<36x32x128xf32>
    tpu.vector_store %arg6[%c0, %c0_0, %c0_1], %0 {strides = array<i32>} : memref<36x32x128xf32, #tpu.memory_space<vmem>>, vector<36x32x128xf32>,
    %c0_2 = arith.constant 0 : index
    %c0_3 = arith.constant 0 : index
    %c0_4 = arith.constant 0 : index
    %c0_5 = arith.constant 0 : index
    %2 = vector.load %arg1[%c0_2, %c0_3, %c0_4, %c0_5] : memref<1x32x32x33xbf16, #tpu.memory_space<vmem>>, vector<1x16x32x33xbf16>
    %3 = vector.shape_cast %2 : vector<1x16x32x33xbf16> to vector<16x32x33xbf16>
    %4 = vector.shape_cast %3 : vector<16x32x33xbf16> to vector<512x33xbf16>
    %c0_6 = arith.constant 0 : index
    %c0_7 = arith.constant 0 : index
    %5 = vector.load %arg2[%c0_6, %c0_7] : memref<33x128xbf16, #tpu.memory_space<vmem>>, vector<33x128xbf16>
    %cst_8 = arith.constant dense<0.000000e+00> : vector<512x128xf32>
    %6 = tpu.matmul %4, %5, %cst_8 {dimension_numbers = #tpu.dot_dimension_numbers<[1], [0], [0], [1], [0, 0, 1, 1], [], []>} : vector<512x33xbf16>, vector<33x128xbf16>, vector<512x128xf32> -> vector<512x128xf32>
    %cst_9 = arith.constant 0.000000e+00 : f32
    %7 = vector.broadcast %cst_9 : f32 to vector<512x128xf32>
    %8 = arith.cmpf ogt, %6, %7 : vector<512x128xf32>
    %cst_10 = arith.constant 2.000000e-01 : f32
    %9 = vector.broadcast %cst_10 : f32 to vector<512x128xf32>
    %10 = arith.mulf %9, %6 : vector<512x128xf32>
    %11 = arith.select %8, %6, %10 : vector<512x128xi1>, vector<512x128xf32>
    %12 = vector.shape_cast %11 : vector<512x128xf32> to vector<16x32x128xf32>
    %c1 = arith.constant 1 : index
    %c0_11 = arith.constant 0 : index
    %c0_12 = arith.constant 0 : index
    %13 = vector.load %arg6[%c1, %c0_11, %c0_12] : memref<36x32x128xf32, #tpu.memory_space<vmem>>, vector<16x32x128xf32>
    tpu.vector_store %arg6[%c1, %c0_11, %c0_12], %12 {strides = array<i32>} : memref<36x32x128xf32, #tpu.memory_space<vmem>>, vector<16x32x128xf32>,
    %c0_13 = arith.constant 0 : index
    %c16 = arith.constant 16 : index
    %c0_14 = arith.constant 0 : index
    %c0_15 = arith.constant 0 : index
    %14 = vector.load %arg1[%c0_13, %c16, %c0_14, %c0_15] : memref<1x32x32x33xbf16, #tpu.memory_space<vmem>>, vector<1x16x32x33xbf16>
    %15 = vector.shape_cast %14 : vector<1x16x32x33xbf16> to vector<16x32x33xbf16>
    %16 = vector.shape_cast %15 : vector<16x32x33xbf16> to vector<512x33xbf16>
    %c0_16 = arith.constant 0 : index
    %c0_17 = arith.constant 0 : index
    %17 = vector.load %arg2[%c0_16, %c0_17] : memref<33x128xbf16, #tpu.memory_space<vmem>>, vector<33x128xbf16>
    %cst_18 = arith.constant dense<0.000000e+00> : vector<512x128xf32>
    %18 = tpu.matmul %16, %17, %cst_18 {dimension_numbers = #tpu.dot_dimension_numbers<[1], [0], [0], [1], [0, 0, 1, 1], [], []>} : vector<512x33xbf16>, vector<33x128xbf16>, vector<512x128xf32> -> vector<512x128xf32>
    %cst_19 = arith.constant 0.000000e+00 : f32
    %19 = vector.broadcast %cst_19 : f32 to vector<512x128xf32>
    %20 = arith.cmpf ogt, %18, %19 : vector<512x128xf32>
    %cst_20 = arith.constant 2.000000e-01 : f32
    %21 = vector.broadcast %cst_20 : f32 to vector<512x128xf32>
    %22 = arith.mulf %21, %18 : vector<512x128xf32>
    %23 = arith.select %20, %18, %22 : vector<512x128xi1>, vector<512x128xf32>
    %24 = vector.shape_cast %23 : vector<512x128xf32> to vector<16x32x128xf32>
    %c19 = arith.constant 19 : index
    %c0_21 = arith.constant 0 : index
    %c0_22 = arith.constant 0 : index
    %25 = vector.load %arg6[%c19, %c0_21, %c0_22] : memref<36x32x128xf32, #tpu.memory_space<vmem>>, vector<16x32x128xf32>
    tpu.vector_store %arg6[%c19, %c0_21, %c0_22], %24 {strides = array<i32>} : memref<36x32x128xf32, #tpu.memory_space<vmem>>, vector<16x32x128xf32>,
    %cst_23 = arith.constant 0.000000e+00 : f32
    %26 = vector.broadcast %cst_23 : f32 to vector<256x128xf32>
    %c18 = arith.constant 18 : index
    %c0_24 = arith.constant 0 : index
    %c0_25 = arith.constant 0 : index
    %27 = vector.load %arg6[%c18, %c0_24, %c0_25] : memref<36x32x128xf32, #tpu.memory_space<vmem>>, vector<16x32x128xf32>
    %28 = vector.extract_strided_slice %27 {offsets = [0, 0, 0], sizes = [16, 16, 128], strides = [1, 1, 1]} : vector<16x32x128xf32> to vector<16x16x128xf32>
    %29 = vector.shape_cast %28 : vector<16x16x128xf32> to vector<256x128xf32>
    %30 = arith.truncf %29 : vector<256x128xf32> to vector<256x128xbf16>
    %c0_26 = arith.constant 0 : index
    %c0_27 = arith.constant 0 : index
    %c0_28 = arith.constant 0 : index
    %31 = vector.load %arg3[%c0_26, %c0_27, %c0_28] : memref<12x128x128xbf16, #tpu.memory_space<vmem>>, vector<1x128x128xbf16>
    %32 = vector.shape_cast %31 : vector<1x128x128xbf16> to vector<128x128xbf16>
    %cst_29 = arith.constant dense<0.000000e+00> : vector<256x128xf32>
    %33 = tpu.matmul %30, %32, %cst_29 {dimension_numbers = #tpu.dot_dimension_numbers<[1], [0], [0], [1], [0, 0, 1, 1], [], []>} : vector<256x128xbf16>, vector<128x128xbf16>, vector<256x128xf32> -> vector<256x128xf32>
    %34 = arith.addf %26, %33 : vector<256x128xf32>
    %35 = vector.extract_strided_slice %27 {offsets = [0, 1, 0], sizes = [16, 16, 128], strides = [1, 1, 1]} : vector<16x32x128xf32> to vector<16x16x128xf32>
    %36 = vector.shape_cast %35 : vector<16x16x128xf32> to vector<256x128xf32>
    %37 = arith.truncf %36 : vector<256x128xf32> to vector<256x128xbf16>
    %c1_30 = arith.constant 1 : index
    %c0_31 = arith.constant 0 : index
    %c0_32 = arith.constant 0 : index
    %38 = vector.load %arg3[%c1_30, %c0_31, %c0_32] : memref<12x128x128xbf16, #tpu.memory_space<vmem>>, vector<1x128x128xbf16>
    %39 = vector.shape_cast %38 : vector<1x128x128xbf16> to vector<128x128xbf16>
    %cst_33 = arith.constant dense<0.000000e+00> : vector<256x128xf32>
    %40 = tpu.matmul %37, %39, %cst_33 {dimension_numbers = #tpu.dot_dimension_numbers<[1], [0], [0], [1], [0, 0, 1, 1], [], []>} : vector<256x128xbf16>, vector<128x128xbf16>, vector<256x128xf32> -> vector<256x128xf32>
    %41 = arith.addf %34, %40 : vector<256x128xf32>
    %42 = vector.extract_strided_slice %27 {offsets = [0, 2, 0], sizes = [16, 16, 128], strides = [1, 1, 1]} : vector<16x32x128xf32> to vector<16x16x128xf32>
    %43 = vector.shape_cast %42 : vector<16x16x128xf32> to vector<256x128xf32>
    %44 = arith.truncf %43 : vector<256x128xf32> to vector<256x128xbf16>
    %c2 = arith.constant 2 : index
    %c0_34 = arith.constant 0 : index
    %c0_35 = arith.constant 0 : index
    %45 = vector.load %arg3[%c2, %c0_34, %c0_35] : memref<12x128x128xbf16, #tpu.memory_space<vmem>>, vector<1x128x128xbf16>
    %46 = vector.shape_cast %45 : vector<1x128x128xbf16> to vector<128x128xbf16>
    %cst_36 = arith.constant dense<0.000000e+00> : vector<256x128xf32>
    %47 = tpu.matmul %44, %46, %cst_36 {dimension_numbers = #tpu.dot_dimension_numbers<[1], [0], [0], [1], [0, 0, 1, 1], [], []>} : vector<256x128xbf16>, vector<128x128xbf16>, vector<256x128xf32> -> vector<256x128xf32>
    %48 = arith.addf %41, %47 : vector<256x128xf32>
    %c1_37 = arith.constant 1 : index
    %c0_38 = arith.constant 0 : index
    %c0_39 = arith.constant 0 : index
    %49 = vector.load %arg6[%c1_37, %c0_38, %c0_39] : memref<36x32x128xf32, #tpu.memory_space<vmem>>, vector<16x32x128xf32>
    %50 = vector.extract_strided_slice %49 {offsets = [0, 0, 0], sizes = [16, 16, 128], strides = [1, 1, 1]} : vector<16x32x128xf32> to vector<16x16x128xf32>
    %51 = vector.shape_cast %50 : vector<16x16x128xf32> to vector<256x128xf32>
    %52 = arith.truncf %51 : vector<256x128xf32> to vector<256x128xbf16>
    %c3 = arith.constant 3 : index
    %c0_40 = arith.constant 0 : index
    %c0_41 = arith.constant 0 : index
    %53 = vector.load %arg3[%c3, %c0_40, %c0_41] : memref<12x128x128xbf16, #tpu.memory_space<vmem>>, vector<1x128x128xbf16>
    %54 = vector.shape_cast %53 : vector<1x128x128xbf16> to vector<128x128xbf16>
    %cst_42 = arith.constant dense<0.000000e+00> : vector<256x128xf32>
    %55 = tpu.matmul %52, %54, %cst_42 {dimension_numbers = #tpu.dot_dimension_numbers<[1], [0], [0], [1], [0, 0, 1, 1], [], []>} : vector<256x128xbf16>, vector<128x128xbf16>, vector<256x128xf32> -> vector<256x128xf32>
    %56 = arith.addf %48, %55 : vector<256x128xf32>
    %57 = vector.extract_strided_slice %49 {offsets = [0, 1, 0], sizes = [16, 16, 128], strides = [1, 1, 1]} : vector<16x32x128xf32> to vector<16x16x128xf32>
    %58 = vector.shape_cast %57 : vector<16x16x128xf32> to vector<256x128xf32>
    %59 = arith.truncf %58 : vector<256x128xf32> to vector<256x128xbf16>
    %c4 = arith.constant 4 : index
    %c0_43 = arith.constant 0 : index
    %c0_44 = arith.constant 0 : index
    %60 = vector.load %arg3[%c4, %c0_43, %c0_44] : memref<12x128x128xbf16, #tpu.memory_space<vmem>>, vector<1x128x128xbf16>
    %61 = vector.shape_cast %60 : vector<1x128x128xbf16> to vector<128x128xbf16>
    %cst_45 = arith.constant dense<0.000000e+00> : vector<256x128xf32>
    %62 = tpu.matmul %59, %61, %cst_45 {dimension_numbers = #tpu.dot_dimension_numbers<[1], [0], [0], [1], [0, 0, 1, 1], [], []>} : vector<256x128xbf16>, vector<128x128xbf16>, vector<256x128xf32> -> vector<256x128xf32>
    %63 = arith.addf %56, %62 : vector<256x128xf32>
    %64 = vector.extract_strided_slice %49 {offsets = [0, 2, 0], sizes = [16, 16, 128], strides = [1, 1, 1]} : vector<16x32x128xf32> to vector<16x16x128xf32>
    %65 = vector.shape_cast %64 : vector<16x16x128xf32> to vector<256x128xf32>
    %66 = arith.truncf %65 : vector<256x128xf32> to vector<256x128xbf16>
    %c5 = arith.constant 5 : index
    %c0_46 = arith.constant 0 : index
    %c0_47 = arith.constant 0 : index
    %67 = vector.load %arg3[%c5, %c0_46, %c0_47] : memref<12x128x128xbf16, #tpu.memory_space<vmem>>, vector<1x128x128xbf16>
    %68 = vector.shape_cast %67 : vector<1x128x128xbf16> to vector<128x128xbf16>
    %cst_48 = arith.constant dense<0.000000e+00> : vector<256x128xf32>
    %69 = tpu.matmul %66, %68, %cst_48 {dimension_numbers = #tpu.dot_dimension_numbers<[1], [0], [0], [1], [0, 0, 1, 1], [], []>} : vector<256x128xbf16>, vector<128x128xbf16>, vector<256x128xf32> -> vector<256x128xf32>
    %70 = arith.addf %63, %69 : vector<256x128xf32>
    %c19_49 = arith.constant 19 : index
    %c0_50 = arith.constant 0 : index
    %c0_51 = arith.constant 0 : index
    %71 = vector.load %arg6[%c19_49, %c0_50, %c0_51] : memref<36x32x128xf32, #tpu.memory_space<vmem>>, vector<16x32x128xf32>
    %72 = vector.extract_strided_slice %71 {offsets = [0, 0, 0], sizes = [16, 16, 128], strides = [1, 1, 1]} : vector<16x32x128xf32> to vector<16x16x128xf32>
    %73 = vector.shape_cast %72 : vector<16x16x128xf32> to vector<256x128xf32>
    %74 = arith.truncf %73 : vector<256x128xf32> to vector<256x128xbf16>
    %c6 = arith.constant 6 : index
    %c0_52 = arith.constant 0 : index
    %c0_53 = arith.constant 0 : index
    %75 = vector.load %arg3[%c6, %c0_52, %c0_53] : memref<12x128x128xbf16, #tpu.memory_space<vmem>>, vector<1x128x128xbf16>
    %76 = vector.shape_cast %75 : vector<1x128x128xbf16> to vector<128x128xbf16>
    %cst_54 = arith.constant dense<0.000000e+00> : vector<256x128xf32>
    %77 = tpu.matmul %74, %76, %cst_54 {dimension_numbers = #tpu.dot_dimension_numbers<[1], [0], [0], [1], [0, 0, 1, 1], [], []>} : vector<256x128xbf16>, vector<128x128xbf16>, vector<256x128xf32> -> vector<256x128xf32>
    %78 = arith.addf %70, %77 : vector<256x128xf32>
    %79 = vector.extract_strided_slice %71 {offsets = [0, 1, 0], sizes = [16, 16, 128], strides = [1, 1, 1]} : vector<16x32x128xf32> to vector<16x16x128xf32>
    %80 = vector.shape_cast %79 : vector<16x16x128xf32> to vector<256x128xf32>
    %81 = arith.truncf %80 : vector<256x128xf32> to vector<256x128xbf16>
    %c7 = arith.constant 7 : index
    %c0_55 = arith.constant 0 : index
    %c0_56 = arith.constant 0 : index
    %82 = vector.load %arg3[%c7, %c0_55, %c0_56] : memref<12x128x128xbf16, #tpu.memory_space<vmem>>, vector<1x128x128xbf16>
    %83 = vector.shape_cast %82 : vector<1x128x128xbf16> to vector<128x128xbf16>
    %cst_57 = arith.constant dense<0.000000e+00> : vector<256x128xf32>
    %84 = tpu.matmul %81, %83, %cst_57 {dimension_numbers = #tpu.dot_dimension_numbers<[1], [0], [0], [1], [0, 0, 1, 1], [], []>} : vector<256x128xbf16>, vector<128x128xbf16>, vector<256x128xf32> -> vector<256x128xf32>
    %85 = arith.addf %78, %84 : vector<256x128xf32>
    %86 = vector.extract_strided_slice %71 {offsets = [0, 2, 0], sizes = [16, 16, 128], strides = [1, 1, 1]} : vector<16x32x128xf32> to vector<16x16x128xf32>
    %87 = vector.shape_cast %86 : vector<16x16x128xf32> to vector<256x128xf32>
    %88 = arith.truncf %87 : vector<256x128xf32> to vector<256x128xbf16>
    %c8 = arith.constant 8 : index
    %c0_58 = arith.constant 0 : index
    %c0_59 = arith.constant 0 : index
    %89 = vector.load %arg3[%c8, %c0_58, %c0_59] : memref<12x128x128xbf16, #tpu.memory_space<vmem>>, vector<1x128x128xbf16>
    %90 = vector.shape_cast %89 : vector<1x128x128xbf16> to vector<128x128xbf16>
    %cst_60 = arith.constant dense<0.000000e+00> : vector<256x128xf32>
    %91 = tpu.matmul %88, %90, %cst_60 {dimension_numbers = #tpu.dot_dimension_numbers<[1], [0], [0], [1], [0, 0, 1, 1], [], []>} : vector<256x128xbf16>, vector<128x128xbf16>, vector<256x128xf32> -> vector<256x128xf32>
    %92 = arith.addf %85, %91 : vector<256x128xf32>
    %c2_61 = arith.constant 2 : index
    %c0_62 = arith.constant 0 : index
    %c0_63 = arith.constant 0 : index
    %93 = vector.load %arg6[%c2_61, %c0_62, %c0_63] : memref<36x32x128xf32, #tpu.memory_space<vmem>>, vector<16x32x128xf32>
    %94 = vector.extract_strided_slice %93 {offsets = [0, 0, 0], sizes = [16, 16, 128], strides = [1, 1, 1]} : vector<16x32x128xf32> to vector<16x16x128xf32>
    %95 = vector.shape_cast %94 : vector<16x16x128xf32> to vector<256x128xf32>
    %96 = arith.truncf %95 : vector<256x128xf32> to vector<256x128xbf16>
    %c9 = arith.constant 9 : index
    %c0_64 = arith.constant 0 : index
    %c0_65 = arith.constant 0 : index
    %97 = vector.load %arg3[%c9, %c0_64, %c0_65] : memref<12x128x128xbf16, #tpu.memory_space<vmem>>, vector<1x128x128xbf16>
    %98 = vector.shape_cast %97 : vector<1x128x128xbf16> to vector<128x128xbf16>
    %cst_66 = arith.constant dense<0.000000e+00> : vector<256x128xf32>
    %99 = tpu.matmul %96, %98, %cst_66 {dimension_numbers = #tpu.dot_dimension_numbers<[1], [0], [0], [1], [0, 0, 1, 1], [], []>} : vector<256x128xbf16>, vector<128x128xbf16>, vector<256x128xf32> -> vector<256x128xf32>
    %100 = arith.addf %92, %99 : vector<256x128xf32>
    %101 = vector.extract_strided_slice %93 {offsets = [0, 1, 0], sizes = [16, 16, 128], strides = [1, 1, 1]} : vector<16x32x128xf32> to vector<16x16x128xf32>
    %102 = vector.shape_cast %101 : vector<16x16x128xf32> to vector<256x128xf32>
    %103 = arith.truncf %102 : vector<256x128xf32> to vector<256x128xbf16>
    %c10 = arith.constant 10 : index
    %c0_67 = arith.constant 0 : index
    %c0_68 = arith.constant 0 : index
    %104 = vector.load %arg3[%c10, %c0_67, %c0_68] : memref<12x128x128xbf16, #tpu.memory_space<vmem>>, vector<1x128x128xbf16>
    %105 = vector.shape_cast %104 : vector<1x128x128xbf16> to vector<128x128xbf16>
    %cst_69 = arith.constant dense<0.000000e+00> : vector<256x128xf32>
    %106 = tpu.matmul %103, %105, %cst_69 {dimension_numbers = #tpu.dot_dimension_numbers<[1], [0], [0], [1], [0, 0, 1, 1], [], []>} : vector<256x128xbf16>, vector<128x128xbf16>, vector<256x128xf32> -> vector<256x128xf32>
    %107 = arith.addf %100, %106 : vector<256x128xf32>
    %108 = vector.extract_strided_slice %93 {offsets = [0, 2, 0], sizes = [16, 16, 128], strides = [1, 1, 1]} : vector<16x32x128xf32> to vector<16x16x128xf32>
    %109 = vector.shape_cast %108 : vector<16x16x128xf32> to vector<256x128xf32>
    %110 = arith.truncf %109 : vector<256x128xf32> to vector<256x128xbf16>
    %c11 = arith.constant 11 : index
    %c0_70 = arith.constant 0 : index
    %c0_71 = arith.constant 0 : index
    %111 = vector.load %arg3[%c11, %c0_70, %c0_71] : memref<12x128x128xbf16, #tpu.memory_space<vmem>>, vector<1x128x128xbf16>
    %112 = vector.shape_cast %111 : vector<1x128x128xbf16> to vector<128x128xbf16>
    %cst_72 = arith.constant dense<0.000000e+00> : vector<256x128xf32>
    %113 = tpu.matmul %110, %112, %cst_72 {dimension_numbers = #tpu.dot_dimension_numbers<[1], [0], [0], [1], [0, 0, 1, 1], [], []>} : vector<256x128xbf16>, vector<128x128xbf16>, vector<256x128xf32> -> vector<256x128xf32>
    %114 = arith.addf %107, %113 : vector<256x128xf32>
    %cst_73 = arith.constant dense<0.000000e+00> : vector<128xf32>
    %115 = vector.multi_reduction <add>, %114, %cst_73 [0] : vector<256x128xf32> to vector<128xf32>
    %116 = vector.shape_cast %115 : vector<128xf32> to vector<1x128xf32>
    %117 = arith.mulf %114, %114 : vector<256x128xf32>
    %cst_74 = arith.constant dense<0.000000e+00> : vector<128xf32>
    %118 = vector.multi_reduction <add>, %117, %cst_74 [0] : vector<256x128xf32> to vector<128xf32>
    %119 = vector.shape_cast %118 : vector<128xf32> to vector<1x128xf32>
    %120 = tpu.concatenate %116, %119 in 0 : vector<1x128xf32>, vector<1x128xf32> -> vector<2x128xf32>
    %c0_75 = arith.constant 0 : index
    %c0_76 = arith.constant 0 : index
    %c0_77 = arith.constant 0 : index
    %121 = vector.load %arg5[%c0_75, %c0_76, %c0_77] : memref<1x2x128xf32, #tpu.memory_space<vmem>>, vector<1x2x128xf32>
    %122 = vector.shape_cast %121 : vector<1x2x128xf32> to vector<2x128xf32>
    %123 = vector.shape_cast %120 : vector<2x128xf32> to vector<1x2x128xf32>
    tpu.vector_store %arg5[%c0_75, %c0_76, %c0_77], %123 {strides = array<i32>} : memref<1x2x128xf32, #tpu.memory_space<vmem>>, vector<1x2x128xf32>,
    %124 = arith.truncf %114 : vector<256x128xf32> to vector<256x128xbf16>
    %c0_78 = arith.constant 0 : index
    %c0_79 = arith.constant 0 : index
    %c0_80 = arith.constant 0 : index
    %125 = vector.load %arg4[%c0_78, %c0_79, %c0_80] : memref<1x256x128xbf16, #tpu.memory_space<vmem>>, vector<1x256x128xbf16>
    %126 = vector.shape_cast %125 : vector<1x256x128xbf16> to vector<256x128xbf16>
    %127 = vector.shape_cast %124 : vector<256x128xbf16> to vector<1x256x128xbf16>
    tpu.vector_store %arg4[%c0_78, %c0_79, %c0_80], %127 {strides = array<i32>} : memref<1x256x128xbf16, #tpu.memory_space<vmem>>, vector<1x256x128xbf16>,
    return
  }
  func.func @transform_0(%arg0: i32) -> (i32, i32, i32, i32) {
    %c0_i32 = arith.constant 0 : i32
    %c0_i32_0 = arith.constant 0 : i32
    %c0_i32_1 = arith.constant 0 : i32
    %c0_i32_2 = arith.constant 0 : i32
    return %arg0, %c0_i32, %c0_i32_0, %c0_i32_1 : i32, i32, i32, i32
  }
  func.func @transform_1(%arg0: i32) -> (i32, i32) {
    %c0_i32 = arith.constant 0 : i32
    %c0_i32_0 = arith.constant 0 : i32
    %c0_i32_1 = arith.constant 0 : i32
    return %c0_i32, %c0_i32_0 : i32, i32
  }
  func.func @transform_2(%arg0: i32) -> (i32, i32, i32) {
    %c0_i32 = arith.constant 0 : i32
    %c0_i32_0 = arith.constant 0 : i32
    %c0_i32_1 = arith.constant 0 : i32
    %c0_i32_2 = arith.constant 0 : i32
    return %c0_i32, %c0_i32_0, %c0_i32_1 : i32, i32, i32
  }
  func.func @transform_3(%arg0: i32) -> (i32, i32, i32) {
    %c0_i32 = arith.constant 0 : i32
    %c0_i32_0 = arith.constant 0 : i32
    %c0_i32_1 = arith.constant 0 : i32
    return %arg0, %c0_i32, %c0_i32_0 : i32, i32, i32
  }
  func.func @transform_4(%arg0: i32) -> (i32, i32, i32) {
    %c0_i32 = arith.constant 0 : i32
    %c0_i32_0 = arith.constant 0 : i32
    %c0_i32_1 = arith.constant 0 : i32
    return %arg0, %c0_i32, %c0_i32_0 : i32, i32, i32
  }
}

module attributes {stable_mosaic.version = 11 : i64} {
  func.func @_bn_pool_fc_kernel(%arg0: i32, %arg1: memref<4x256x128xbf16, #tpu.memory_space<vmem>>, %arg2: memref<2x128xf32, #tpu.memory_space<vmem>>, %arg3: memref<2x128xf32, #tpu.memory_space<vmem>>, %arg4: memref<1x4x128xf32, #tpu.memory_space<vmem>>) attributes {dimension_semantics = [#tpu.dimension_semantics<parallel>], iteration_bounds = array<i64: 1>, scalar_prefetch = 0 : i64, scratch_operands = 0 : i64, tpu.core_type = #tpu.core_type<tc>, window_params = [{transform_indices = @transform_0, window_bounds = array<i64: 4, 256, 128>}, {pipeline_mode = #tpu.pipeline_mode<synchronous>, transform_indices = @transform_1, window_bounds = array<i64: 2, 128>}, {pipeline_mode = #tpu.pipeline_mode<synchronous>, transform_indices = @transform_2, window_bounds = array<i64: 2, 128>}, {transform_indices = @transform_3, window_bounds = array<i64: 1, 4, 128>}]} {
    %c0 = arith.constant 0 : index
    %c0_0 = arith.constant 0 : index
    %c0_1 = arith.constant 0 : index
    %0 = vector.load %arg1[%c0, %c0_0, %c0_1] : memref<4x256x128xbf16, #tpu.memory_space<vmem>>, vector<4x256x128xbf16>
    %1 = arith.extf %0 : vector<4x256x128xbf16> to vector<4x256x128xf32>
    %c0_2 = arith.constant 0 : index
    %c0_3 = arith.constant 0 : index
    %2 = vector.load %arg2[%c0_2, %c0_3] : memref<2x128xf32, #tpu.memory_space<vmem>>, vector<1x128xf32>
    %c1 = arith.constant 1 : index
    %c0_4 = arith.constant 0 : index
    %3 = vector.load %arg2[%c1, %c0_4] : memref<2x128xf32, #tpu.memory_space<vmem>>, vector<1x128xf32>
    %4 = vector.shape_cast %2 : vector<1x128xf32> to vector<1x1x128xf32>
    %5 = vector.broadcast %4 : vector<1x1x128xf32> to vector<4x256x128xf32>
    %6 = arith.subf %1, %5 : vector<4x256x128xf32>
    %7 = vector.shape_cast %3 : vector<1x128xf32> to vector<1x1x128xf32>
    %8 = vector.broadcast %7 : vector<1x1x128xf32> to vector<4x256x128xf32>
    %9 = arith.mulf %6, %8 : vector<4x256x128xf32>
    %cst = arith.constant 0.000000e+00 : f32
    %10 = vector.broadcast %cst : f32 to vector<4x256x128xf32>
    %11 = arith.cmpf ogt, %9, %10 : vector<4x256x128xf32>
    %cst_5 = arith.constant 2.000000e-01 : f32
    %12 = vector.broadcast %cst_5 : f32 to vector<4x256x128xf32>
    %13 = arith.mulf %12, %9 : vector<4x256x128xf32>
    %14 = arith.select %11, %9, %13 : vector<4x256x128xi1>, vector<4x256x128xf32>
    %cst_6 = arith.constant dense<0.000000e+00> : vector<4x128xf32>
    %15 = vector.multi_reduction <add>, %14, %cst_6 [1] : vector<4x256x128xf32> to vector<4x128xf32>
    %cst_7 = arith.constant 2.560000e+02 : f32
    %16 = vector.broadcast %cst_7 : f32 to vector<4x128xf32>
    %17 = arith.divf %15, %16 : vector<4x128xf32>
    %c0_8 = arith.constant 0 : index
    %c0_9 = arith.constant 0 : index
    %18 = vector.load %arg3[%c0_8, %c0_9] : memref<2x128xf32, #tpu.memory_space<vmem>>, vector<1x128xf32>
    %19 = vector.broadcast %18 : vector<1x128xf32> to vector<4x128xf32>
    %20 = arith.mulf %17, %19 : vector<4x128xf32>
    %cst_10 = arith.constant dense<0.000000e+00> : vector<4xf32>
    %21 = vector.multi_reduction <add>, %20, %cst_10 [1] : vector<4x128xf32> to vector<4xf32>
    %22 = vector.shape_cast %21 : vector<4xf32> to vector<4x1xf32>
    %c1_11 = arith.constant 1 : index
    %c0_12 = arith.constant 0 : index
    %23 = vector.load %arg3[%c1_11, %c0_12] : memref<2x128xf32, #tpu.memory_space<vmem>>, vector<1x1xf32>
    %24 = vector.broadcast %23 : vector<1x1xf32> to vector<4x1xf32>
    %25 = arith.addf %22, %24 : vector<4x1xf32>
    %cst_13 = arith.constant 0.000000e+00 : f32
    %26 = vector.broadcast %cst_13 : f32 to vector<4x1xf32>
    %27 = arith.subf %26, %25 : vector<4x1xf32>
    %28 = math.exp %27 : vector<4x1xf32>
    %cst_14 = arith.constant 1.000000e+00 : f32
    %29 = vector.broadcast %cst_14 : f32 to vector<4x1xf32>
    %30 = arith.addf %29, %28 : vector<4x1xf32>
    %cst_15 = arith.constant 1.000000e+00 : f32
    %31 = vector.broadcast %cst_15 : f32 to vector<4x1xf32>
    %32 = arith.divf %31, %30 : vector<4x1xf32>
    %33 = vector.shape_cast %32 : vector<4x1xf32> to vector<4x1xf32>
    %34 = vector.broadcast %33 : vector<4x1xf32> to vector<4x128xf32>
    %c0_16 = arith.constant 0 : index
    %c0_17 = arith.constant 0 : index
    %c0_18 = arith.constant 0 : index
    %35 = vector.load %arg4[%c0_16, %c0_17, %c0_18] : memref<1x4x128xf32, #tpu.memory_space<vmem>>, vector<1x4x128xf32>
    %36 = vector.shape_cast %35 : vector<1x4x128xf32> to vector<4x128xf32>
    %37 = vector.shape_cast %34 : vector<4x128xf32> to vector<1x4x128xf32>
    tpu.vector_store %arg4[%c0_16, %c0_17, %c0_18], %37 {strides = array<i32>} : memref<1x4x128xf32, #tpu.memory_space<vmem>>, vector<1x4x128xf32>,
    return
  }
  func.func @transform_0(%arg0: i32) -> (i32, i32, i32) {
    %c0_i32 = arith.constant 0 : i32
    %c0_i32_0 = arith.constant 0 : i32
    %c0_i32_1 = arith.constant 0 : i32
    return %arg0, %c0_i32, %c0_i32_0 : i32, i32, i32
  }
  func.func @transform_1(%arg0: i32) -> (i32, i32) {
    %c0_i32 = arith.constant 0 : i32
    %c0_i32_0 = arith.constant 0 : i32
    %c0_i32_1 = arith.constant 0 : i32
    return %c0_i32, %c0_i32_0 : i32, i32
  }
  func.func @transform_2(%arg0: i32) -> (i32, i32) {
    %c0_i32 = arith.constant 0 : i32
    %c0_i32_0 = arith.constant 0 : i32
    %c0_i32_1 = arith.constant 0 : i32
    return %c0_i32, %c0_i32_0 : i32, i32
  }
  func.func @transform_3(%arg0: i32) -> (i32, i32, i32) {
    %c0_i32 = arith.constant 0 : i32
    %c0_i32_0 = arith.constant 0 : i32
    %c0_i32_1 = arith.constant 0 : i32
    return %arg0, %c0_i32, %c0_i32_0 : i32, i32, i32
  }
}

</mosaic_0001>

<bundles_post_ra>
// kernel: discriminator_forward.3
= control target key start
LH: loop header
LB: loop body
LE: loop exit
PB: predicated region body
PF: predicated region fallthrough
CT: control target
= control target key end

     0   :  { %s4070_s0 = inlined_call_operand.vmem [shape: bf16[4,256,128], index: 0, kind: input, shape index: {}]   ;;  %s4071_s1 = inlined_call_operand.vmem [shape: f32[2,128], index: 1, kind: input, shape index: {}]   ;;  %s4072_s2 = inlined_call_operand.vmem [shape: f32[2,128], index: 2, kind: input, shape index: {}]   ;;  %s4073_s3 = inlined_call_operand.vmem [shape: f32[1,4,128], index: 3, kind: output, shape index: {}]  }
   0x1   :  { %v1475_v0 = vld [vmem:[%s4070_s0] sm:$0xff]   ;;  %v1480_v1 = vld [vmem:[%s4070_s0 + $0x8] sm:$0xff]   ;;  %v1485_v2 = vld [vmem:[%s4070_s0 + $0x10] sm:$0xff]  }
   0x2   :  { %v1490_v3 = vld [vmem:[%s4070_s0 + $0x18] sm:$0xff]   ;;  %v1495_v4 = vld [vmem:[%s4070_s0 + $0x20] sm:$0xff]   ;;  %v1502_v7 = vld [vmem:[%s4070_s0 + $0x28] sm:$0xff]   ;;  %v4215_v9 = vunpack.c.l.bf16 %v1480_v1 }
   0x3   :  { %v1507_v8 = vld [vmem:[%s4070_s0 + $0x30] sm:$0xff]   ;;  %v1516_v13 = vld [vmem:[%s4070_s0 + $0x38] sm:$0xff]   ;;  %v1521_v14 = vld [vmem:[%s4070_s0 + $0x40] sm:$0xff]  }
   0x4   :  { %v1530_v19 = vld [vmem:[%s4070_s0 + $0x48] sm:$0xff]   ;;  %v1535_v20 = vld [vmem:[%s4070_s0 + $0x50] sm:$0xff]   ;;  %v1544_v25 = vld [vmem:[%s4070_s0 + $0x58] sm:$0xff]  }
   0x5   :  { %v1549_v26 = vld [vmem:[%s4070_s0 + $0x60] sm:$0xff]   ;;  %v1558_v31 = vld [vmem:[%s4070_s0 + $0x68] sm:$0xff]   ;;  %v1563_v32 = vld [vmem:[%s4070_s0 + $0x70] sm:$0xff]  }
   0x6   :  { %v1572_v37 = vld [vmem:[%s4070_s0 + $0x78] sm:$0xff]   ;;  %v1577_v38 = vld [vmem:[%s4070_s0 + $0x80] sm:$0xff]   ;;  %v1586_v43 = vld [vmem:[%s4070_s0 + $0x88] sm:$0xff]  }
   0x7   :  { %v1591_v44 = vld [vmem:[%s4070_s0 + $0x90] sm:$0xff]   ;;  %v1600_v49 = vld [vmem:[%s4070_s0 + $0x98] sm:$0xff]   ;;  %v1605_v50 = vld [vmem:[%s4070_s0 + $0xa0] sm:$0xff]  }
   0x8   :  { %v1614_v55 = vld [vmem:[%s4070_s0 + $0xa8] sm:$0xff]   ;;  %v1619_v56 = vld [vmem:[%s4070_s0 + $0xb0] sm:$0xff]   ;;  %v1628_v61 = vld [vmem:[%s4070_s0 + $0xb8] sm:$0xff]  }
   0x9   :  { %v1633_v62 = vld [vmem:[%s4070_s0 + $0xc0] sm:$0xff]   ;;  %v1642_v60 = vld [vmem:[%s4070_s0 + $0xc8] sm:$0xff]   ;;  %v1647_v54 = vld [vmem:[%s4070_s0 + $0xd0] sm:$0xff]  }
   0xa   :  { %v1656_v59 = vld [vmem:[%s4070_s0 + $0xd8] sm:$0xff]   ;;  %v1661_v52 = vld [vmem:[%s4070_s0 + $0xe0] sm:$0xff]   ;;  %v1670_v58 = vld [vmem:[%s4070_s0 + $0xe8] sm:$0xff]  }
   0xb   :  { %v1675_v48 = vld [vmem:[%s4070_s0 + $0xf0] sm:$0xff]   ;;  %v1684_v57 = vld [vmem:[%s4070_s0 + $0xf8] sm:$0xff]   ;;  %v1689_v46 = vld [vmem:[%s4070_s0 + $0x100] sm:$0xff]  }
   0xc   :  { %v1698_v63 = vld [vmem:[%s4070_s0 + $0x108] sm:$0xff]   ;;  %v1703_v42 = vld [vmem:[%s4070_s0 + $0x110] sm:$0xff]   ;;  %v1712_v53 = vld [vmem:[%s4070_s0 + $0x118] sm:$0xff]  }
   0xd   :  { %v1717_v40 = vld [vmem:[%s4070_s0 + $0x120] sm:$0xff]   ;;  %v1726_v51 = vld [vmem:[%s4070_s0 + $0x128] sm:$0xff]   ;;  %v1731_v36 = vld [vmem:[%s4070_s0 + $0x130] sm:$0xff]  }
   0xe   :  { %v1740_v47 = vld [vmem:[%s4070_s0 + $0x138] sm:$0xff]   ;;  %v1745_v34 = vld [vmem:[%s4070_s0 + $0x140] sm:$0xff]   ;;  %v1754_v45 = vld [vmem:[%s4070_s0 + $0x148] sm:$0xff]  }
   0xf   :  { %v1759_v30 = vld [vmem:[%s4070_s0 + $0x150] sm:$0xff]   ;;  %v1768_v41 = vld [vmem:[%s4070_s0 + $0x158] sm:$0xff]   ;;  %v1773_v28 = vld [vmem:[%s4070_s0 + $0x160] sm:$0xff]  }
  0x10   :  { %v1782_v39 = vld [vmem:[%s4070_s0 + $0x168] sm:$0xff]   ;;  %v1787_v24 = vld [vmem:[%s4070_s0 + $0x170] sm:$0xff]   ;;  %v1796_v35 = vld [vmem:[%s4070_s0 + $0x178] sm:$0xff]  }
  0x11   :  { %v1801_v22 = vld [vmem:[%s4070_s0 + $0x180] sm:$0xff]   ;;  %v1810_v33 = vld [vmem:[%s4070_s0 + $0x188] sm:$0xff]   ;;  %v1815_v18 = vld [vmem:[%s4070_s0 + $0x190] sm:$0xff]  }
  0x12   :  { %4202 = vst [vmem:[#allocation2_spill] sm:$0xff] %v1810_v33  ;;  %4203 = vst [vmem:[#allocation3_spill] sm:$0xff] %v1815_v18  ;;  %v1824_v29 = vld [vmem:[%s4070_s0 + $0x198] sm:$0xff]   ;;  %v1829_v16 = vld [vmem:[%s4070_s0 + $0x1a0] sm:$0xff]   ;;  %v4212_v33 = vunpack.c.l.bf16 %v1475_v0 }
  0x13   :  { %4204 = vst [vmem:[#allocation4_spill] sm:$0xff] %v1824_v29  ;;  %4205 = vst [vmem:[#allocation5_spill] sm:$0xff] %v1829_v16  ;;  %v1838_v27 = vld [vmem:[%s4070_s0 + $0x1a8] sm:$0xff]   ;;  %v1843_v12 = vld [vmem:[%s4070_s0 + $0x1b0] sm:$0xff]   ;;  %v4213_v29 = vunpack.c.h.bf16 %v1475_v0  ;;  %v4219_v0 = vunpack.c.h.bf16 %v1485_v2 }
  0x14   :  { %4206 = vst [vmem:[#allocation6_spill] sm:$0xff] %v1838_v27  ;;  %4207 = vst [vmem:[#allocation7_spill] sm:$0xff] %v1843_v12  ;;  %v1852_v23 = vld [vmem:[%s4070_s0 + $0x1b8] sm:$0xff]   ;;  %v1857_v10 = vld [vmem:[%s4070_s0 + $0x1c0] sm:$0xff]  }
  0x15   :  { %4208 = vst [vmem:[#allocation8_spill] sm:$0xff] %v1852_v23  ;;  %4209 = vst [vmem:[#allocation9_spill] sm:$0xff] %v1857_v10  ;;  %v1866_v21 = vld [vmem:[%s4070_s0 + $0x1c8] sm:$0xff]   ;;  %v1871_v6 = vld [vmem:[%s4070_s0 + $0x1d0] sm:$0xff]   ;;  %v4216_v10 = vunpack.c.h.bf16 %v1480_v1  ;;  %v4218_v23 = vunpack.c.l.bf16 %v1485_v2  ;;  %v4222_v1 = vunpack.c.h.bf16 %v1490_v3  ;;  %v4225_v2 = vunpack.c.h.bf16 %v1495_v4 }
  0x16   :  { %4210 = vst [vmem:[#allocation10_spill] sm:$0xff] %v1871_v6  ;;  %v1880_v17 = vld [vmem:[%s4070_s0 + $0x1d8] sm:$0xff]   ;;  %v1885_v16 = vld [vmem:[%s4070_s0 + $0x1e0] sm:$0xff]   ;;  %v1894_v15 = vld [vmem:[%s4070_s0 + $0x1e8] sm:$0xff]  }
  0x17   :  { %v1899_v12 = vld [vmem:[%s4070_s0 + $0x1f0] sm:$0xff]   ;;  %v1908_v11 = vld [vmem:[%s4070_s0 + $0x1f8] sm:$0xff]   ;;  %v1921_v6 = vld [vmem:[%s4071_s1] ss:$0 sm:$0xff] }
  0x18   :  { %4211 = vst [vmem:[#allocation11_spill] sm:$0xff] %v1899_v12  ;;  %v1928_v18 = vsub.f32 %v4212_v33, %v1921_v6  ;;  %v1933_v5 = vsub.f32 %v4213_v29, %v1921_v6  ;;  %v1938_v27 = vsub.f32 %v4215_v9, %v1921_v6  ;;  %v1943_v12 = vsub.f32 %v4216_v10, %v1921_v6 }
  0x19   :  { %v1948_v33 = vsub.f32 %v4218_v23, %v1921_v6  ;;  %v1953_v29 = vsub.f32 %v4219_v0, %v1921_v6  ;;  %v1963_v10 = vsub.f32 %v4222_v1, %v1921_v6  ;;  %v1973_v0 = vsub.f32 %v4225_v2, %v1921_v6 }
  0x1a   :  { %4214 = vst [vmem:[#allocation12_spill] sm:$0xff] %v1933_v5  ;;  %4217 = vst [vmem:[#allocation13_spill] sm:$0xff] %v1943_v12  ;;  %v4221_v5 = vunpack.c.l.bf16 %v1490_v3  ;;  %v4224_v12 = vunpack.c.l.bf16 %v1495_v4  ;;  %v4228_v3 = vunpack.c.h.bf16 %v1502_v7  ;;  %v4231_v4 = vunpack.c.h.bf16 %v1507_v8 }
  0x1b   :  { %4220 = vst [vmem:[#allocation14_spill] sm:$0xff] %v1953_v29  ;;  %4223 = vst [vmem:[#allocation15_spill] sm:$0xff] %v1963_v10  ;;  %v4227_v29 = vunpack.c.l.bf16 %v1502_v7  ;;  %v4230_v10 = vunpack.c.l.bf16 %v1507_v8  ;;  %v4234_v7 = vunpack.c.h.bf16 %v1516_v13  ;;  %v4237_v8 = vunpack.c.h.bf16 %v1521_v14 }
  0x1c   :  { %v1958_v9 = vsub.f32 %v4221_v5, %v1921_v6  ;;  %v1968_v23 = vsub.f32 %v4224_v12, %v1921_v6  ;;  %4226 = vst [vmem:[#allocation16_spill] sm:$0xff] %v1973_v0  ;;  %v1983_v1 = vsub.f32 %v4228_v3, %v1921_v6  ;;  %v1993_v2 = vsub.f32 %v4231_v4, %v1921_v6 }
  0x1d   :  { %v1978_v5 = vsub.f32 %v4227_v29, %v1921_v6  ;;  %v1988_v12 = vsub.f32 %v4230_v10, %v1921_v6  ;;  %v4233_v0 = vunpack.c.l.bf16 %v1516_v13  ;;  %v2003_v3 = vsub.f32 %v4234_v7, %v1921_v6 }
  0x1e   :  { %4229 = vst [vmem:[#allocation17_spill] sm:$0xff] %v1983_v1  ;;  %4232 = vst [vmem:[#allocation18_spill] sm:$0xff] %v1993_v2  ;;  %v4236_v1 = vunpack.c.l.bf16 %v1521_v14  ;;  %v2013_v4 = vsub.f32 %v4237_v8, %v1921_v6  ;;  %v4239_v2 = vunpack.c.l.bf16 %v1530_v19  ;;  %v4240_v13 = vunpack.c.h.bf16 %v1530_v19 }
  0x1f   :  { %v1998_v29 = vsub.f32 %v4233_v0, %v1921_v6  ;;  %4235 = vst [vmem:[#allocation19_spill] sm:$0xff] %v2003_v3  ;;  %v4242_v3 = vunpack.c.l.bf16 %v1535_v20  ;;  %v4243_v14 = vunpack.c.h.bf16 %v1535_v20  ;;  %v4246_v19 = vunpack.c.h.bf16 %v1544_v25 }
  0x20   :  { %v2008_v10 = vsub.f32 %v4236_v1, %v1921_v6  ;;  %4238 = vst [vmem:[#allocation20_spill] sm:$0xff] %v2013_v4  ;;  %v2018_v0 = vsub.f32 %v4239_v2, %v1921_v6  ;;  %v2023_v7 = vsub.f32 %v4240_v13, %v1921_v6  ;;  %v4245_v4 = vunpack.c.l.bf16 %v1544_v25 }
  0x21   :  { %v2028_v1 = vsub.f32 %v4242_v3, %v1921_v6  ;;  %v2033_v8 = vsub.f32 %v4243_v14, %v1921_v6  ;;  %v2043_v13 = vsub.f32 %v4246_v19, %v1921_v6  ;;  %v4249_v20 = vunpack.c.h.bf16 %v1549_v26 }
  0x22   :  { %4241 = vst [vmem:[#allocation21_spill] sm:$0xff] %v2023_v7  ;;  %v2038_v2 = vsub.f32 %v4245_v4, %v1921_v6  ;;  %v4248_v7 = vunpack.c.l.bf16 %v1549_v26  ;;  %v4252_v25 = vunpack.c.h.bf16 %v1558_v31  ;;  %v4255_v26 = vunpack.c.h.bf16 %v1563_v32 }
  0x23   :  { %4244 = vst [vmem:[#allocation22_spill] sm:$0xff] %v2033_v8  ;;  %4247 = vst [vmem:[#allocation23_spill] sm:$0xff] %v2043_v13  ;;  %v2053_v14 = vsub.f32 %v4249_v20, %v1921_v6  ;;  %v4251_v8 = vunpack.c.l.bf16 %v1558_v31  ;;  %v4254_v13 = vunpack.c.l.bf16 %v1563_v32  ;;  %v4258_v31 = vunpack.c.h.bf16 %v1572_v37 }
  0x24   :  { %v2048_v3 = vsub.f32 %v4248_v7, %v1921_v6  ;;  %v2063_v19 = vsub.f32 %v4252_v25, %v1921_v6  ;;  %v2073_v20 = vsub.f32 %v4255_v26, %v1921_v6  ;;  %v4261_v32 = vunpack.c.h.bf16 %v1577_v38 }
  0x25   :  { %4250 = vst [vmem:[#allocation24_spill] sm:$0xff] %v2053_v14  ;;  %v2058_v4 = vsub.f32 %v4251_v8, %v1921_v6  ;;  %v2068_v7 = vsub.f32 %v4254_v13, %v1921_v6  ;;  %v4257_v14 = vunpack.c.l.bf16 %v1572_v37  ;;  %v2083_v25 = vsub.f32 %v4258_v31, %v1921_v6 }
  0x26   :  { %4253 = vst [vmem:[#allocation25_spill] sm:$0xff] %v2063_v19  ;;  %4256 = vst [vmem:[#allocation26_spill] sm:$0xff] %v2073_v20  ;;  %v4260_v19 = vunpack.c.l.bf16 %v1577_v38  ;;  %v2093_v26 = vsub.f32 %v4261_v32, %v1921_v6  ;;  %v4263_v20 = vunpack.c.l.bf16 %v1586_v43  ;;  %v4264_v37 = vunpack.c.h.bf16 %v1586_v43 }
  0x27   :  { %v2078_v8 = vsub.f32 %v4257_v14, %v1921_v6  ;;  %4259 = vst [vmem:[#allocation27_spill] sm:$0xff] %v2083_v25  ;;  %v4266_v25 = vunpack.c.l.bf16 %v1591_v44  ;;  %v4267_v38 = vunpack.c.h.bf16 %v1591_v44  ;;  %v4270_v43 = vunpack.c.h.bf16 %v1600_v49 }
  0x28   :  { %v2088_v13 = vsub.f32 %v4260_v19, %v1921_v6  ;;  %4262 = vst [vmem:[#allocation28_spill] sm:$0xff] %v2093_v26  ;;  %v2098_v14 = vsub.f32 %v4263_v20, %v1921_v6  ;;  %v2103_v31 = vsub.f32 %v4264_v37, %v1921_v6  ;;  %v4269_v26 = vunpack.c.l.bf16 %v1600_v49 }
  0x29   :  { %v2108_v19 = vsub.f32 %v4266_v25, %v1921_v6  ;;  %v2113_v32 = vsub.f32 %v4267_v38, %v1921_v6  ;;  %v2123_v37 = vsub.f32 %v4270_v43, %v1921_v6  ;;  %v4273_v44 = vunpack.c.h.bf16 %v1605_v50 }
  0x2a   :  { %4265 = vst [vmem:[#allocation29_spill] sm:$0xff] %v2103_v31  ;;  %v2118_v20 = vsub.f32 %v4269_v26, %v1921_v6  ;;  %v4272_v31 = vunpack.c.l.bf16 %v1605_v50  ;;  %v4276_v49 = vunpack.c.h.bf16 %v1614_v55  ;;  %v4279_v50 = vunpack.c.h.bf16 %v1619_v56 }
  0x2b   :  { %4268 = vst [vmem:[#allocation30_spill] sm:$0xff] %v2113_v32  ;;  %4271 = vst [vmem:[#allocation31_spill] sm:$0xff] %v2123_v37  ;;  %v2133_v38 = vsub.f32 %v4273_v44, %v1921_v6  ;;  %v4275_v32 = vunpack.c.l.bf16 %v1614_v55  ;;  %v4278_v37 = vunpack.c.l.bf16 %v1619_v56  ;;  %v4282_v55 = vunpack.c.h.bf16 %v1628_v61 }
  0x2c   :  { %v2128_v25 = vsub.f32 %v4272_v31, %v1921_v6  ;;  %v2143_v43 = vsub.f32 %v4276_v49, %v1921_v6  ;;  %v2153_v44 = vsub.f32 %v4279_v50, %v1921_v6  ;;  %v4285_v56 = vunpack.c.h.bf16 %v1633_v62 }
  0x2d   :  { %4274 = vst [vmem:[#allocation32_spill] sm:$0xff] %v2133_v38  ;;  %v2138_v26 = vsub.f32 %v4275_v32, %v1921_v6  ;;  %v2148_v31 = vsub.f32 %v4278_v37, %v1921_v6  ;;  %v4281_v38 = vunpack.c.l.bf16 %v1628_v61  ;;  %v2163_v49 = vsub.f32 %v4282_v55, %v1921_v6 }
  0x2e   :  { %4277 = vst [vmem:[#allocation33_spill] sm:$0xff] %v2143_v43  ;;  %4280 = vst [vmem:[#allocation34_spill] sm:$0xff] %v2153_v44  ;;  %v4284_v43 = vunpack.c.l.bf16 %v1633_v62  ;;  %v2173_v50 = vsub.f32 %v4285_v56, %v1921_v6  ;;  %v4287_v44 = vunpack.c.l.bf16 %v1642_v60  ;;  %v4288_v61 = vunpack.c.h.bf16 %v1642_v60 }
  0x2f   :  { %v2158_v32 = vsub.f32 %v4281_v38, %v1921_v6  ;;  %4283 = vst [vmem:[#allocation35_spill] sm:$0xff] %v2163_v49  ;;  %v4290_v49 = vunpack.c.l.bf16 %v1647_v54  ;;  %v4291_v62 = vunpack.c.h.bf16 %v1647_v54  ;;  %v4294_v60 = vunpack.c.h.bf16 %v1656_v59 }
  0x30   :  { %v2168_v37 = vsub.f32 %v4284_v43, %v1921_v6  ;;  %4286 = vst [vmem:[#allocation36_spill] sm:$0xff] %v2173_v50  ;;  %v2178_v38 = vsub.f32 %v4287_v44, %v1921_v6  ;;  %v2183_v55 = vsub.f32 %v4288_v61, %v1921_v6  ;;  %v4293_v50 = vunpack.c.l.bf16 %v1656_v59 }
  0x31   :  { %v2188_v43 = vsub.f32 %v4290_v49, %v1921_v6  ;;  %v2193_v56 = vsub.f32 %v4291_v62, %v1921_v6  ;;  %v2203_v61 = vsub.f32 %v4294_v60, %v1921_v6  ;;  %v4297_v54 = vunpack.c.h.bf16 %v1661_v52 }
  0x32   :  { %4289 = vst [vmem:[#allocation37_spill] sm:$0xff] %v2183_v55  ;;  %v2198_v44 = vsub.f32 %v4293_v50, %v1921_v6  ;;  %v4296_v55 = vunpack.c.l.bf16 %v1661_v52  ;;  %v4300_v59 = vunpack.c.h.bf16 %v1670_v58  ;;  %v4303_v52 = vunpack.c.h.bf16 %v1675_v48 }
  0x33   :  { %4292 = vst [vmem:[#allocation38_spill] sm:$0xff] %v2193_v56  ;;  %4295 = vst [vmem:[#allocation39_spill] sm:$0xff] %v2203_v61  ;;  %v2213_v62 = vsub.f32 %v4297_v54, %v1921_v6  ;;  %v4299_v56 = vunpack.c.l.bf16 %v1670_v58  ;;  %v4302_v61 = vunpack.c.l.bf16 %v1675_v48  ;;  %v4306_v58 = vunpack.c.h.bf16 %v1684_v57 }
  0x34   :  { %v2208_v49 = vsub.f32 %v4296_v55, %v1921_v6  ;;  %v2223_v60 = vsub.f32 %v4300_v59, %v1921_v6  ;;  %v2233_v54 = vsub.f32 %v4303_v52, %v1921_v6  ;;  %v4309_v48 = vunpack.c.h.bf16 %v1689_v46 }
  0x35   :  { %4298 = vst [vmem:[#allocation40_spill] sm:$0xff] %v2213_v62  ;;  %v2218_v50 = vsub.f32 %v4299_v56, %v1921_v6  ;;  %v2228_v55 = vsub.f32 %v4302_v61, %v1921_v6  ;;  %v4305_v62 = vunpack.c.l.bf16 %v1684_v57  ;;  %v2243_v59 = vsub.f32 %v4306_v58, %v1921_v6 }
  0x36   :  { %4301 = vst [vmem:[#allocation41_spill] sm:$0xff] %v2223_v60  ;;  %4304 = vst [vmem:[#allocation42_spill] sm:$0xff] %v2233_v54  ;;  %v4308_v60 = vunpack.c.l.bf16 %v1689_v46  ;;  %v2253_v52 = vsub.f32 %v4309_v48, %v1921_v6  ;;  %v4311_v54 = vunpack.c.l.bf16 %v1698_v63  ;;  %v4312_v57 = vunpack.c.h.bf16 %v1698_v63 }
  0x37   :  { %v2238_v56 = vsub.f32 %v4305_v62, %v1921_v6  ;;  %4307 = vst [vmem:[#allocation43_spill] sm:$0xff] %v2243_v59  ;;  %v4314_v59 = vunpack.c.l.bf16 %v1703_v42  ;;  %v4315_v46 = vunpack.c.h.bf16 %v1703_v42  ;;  %v4318_v63 = vunpack.c.h.bf16 %v1712_v53 }
  0x38   :  { %v2248_v61 = vsub.f32 %v4308_v60, %v1921_v6  ;;  %4310 = vst [vmem:[#allocation44_spill] sm:$0xff] %v2253_v52  ;;  %v2258_v62 = vsub.f32 %v4311_v54, %v1921_v6  ;;  %v2263_v58 = vsub.f32 %v4312_v57, %v1921_v6  ;;  %v4317_v52 = vunpack.c.l.bf16 %v1712_v53 }
  0x39   :  { %v2268_v60 = vsub.f32 %v4314_v59, %v1921_v6  ;;  %v2273_v48 = vsub.f32 %v4315_v46, %v1921_v6  ;;  %v2283_v57 = vsub.f32 %v4318_v63, %v1921_v6  ;;  %v4321_v42 = vunpack.c.h.bf16 %v1717_v40 }
  0x3a   :  { %4313 = vst [vmem:[#allocation45_spill] sm:$0xff] %v2263_v58  ;;  %v2278_v54 = vsub.f32 %v4317_v52, %v1921_v6  ;;  %v4320_v58 = vunpack.c.l.bf16 %v1717_v40  ;;  %v4324_v53 = vunpack.c.h.bf16 %v1726_v51  ;;  %v4327_v40 = vunpack.c.h.bf16 %v1731_v36 }
  0x3b   :  { %4316 = vst [vmem:[#allocation46_spill] sm:$0xff] %v2273_v48  ;;  %4319 = vst [vmem:[#allocation47_spill] sm:$0xff] %v2283_v57  ;;  %v2293_v46 = vsub.f32 %v4321_v42, %v1921_v6  ;;  %v4323_v48 = vunpack.c.l.bf16 %v1726_v51  ;;  %v4326_v57 = vunpack.c.l.bf16 %v1731_v36  ;;  %v4330_v51 = vunpack.c.h.bf16 %v1740_v47 }
  0x3c   :  { %v2288_v59 = vsub.f32 %v4320_v58, %v1921_v6  ;;  %v2303_v63 = vsub.f32 %v4324_v53, %v1921_v6  ;;  %v2313_v42 = vsub.f32 %v4327_v40, %v1921_v6  ;;  %v4333_v36 = vunpack.c.h.bf16 %v1745_v34 }
  0x3d   :  { %4322 = vst [vmem:[#allocation48_spill] sm:$0xff] %v2293_v46  ;;  %v2298_v52 = vsub.f32 %v4323_v48, %v1921_v6  ;;  %v2308_v58 = vsub.f32 %v4326_v57, %v1921_v6  ;;  %v4329_v46 = vunpack.c.l.bf16 %v1740_v47  ;;  %v2323_v53 = vsub.f32 %v4330_v51, %v1921_v6 }
  0x3e   :  { %4325 = vst [vmem:[#allocation49_spill] sm:$0xff] %v2303_v63  ;;  %4328 = vst [vmem:[#allocation50_spill] sm:$0xff] %v2313_v42  ;;  %v4332_v63 = vunpack.c.l.bf16 %v1745_v34  ;;  %v2333_v40 = vsub.f32 %v4333_v36, %v1921_v6  ;;  %v4335_v42 = vunpack.c.l.bf16 %v1754_v45  ;;  %v4336_v47 = vunpack.c.h.bf16 %v1754_v45 }
  0x3f   :  { %v2318_v48 = vsub.f32 %v4329_v46, %v1921_v6  ;;  %4331 = vst [vmem:[#allocation51_spill] sm:$0xff] %v2323_v53  ;;  %v4338_v53 = vunpack.c.l.bf16 %v1759_v30  ;;  %v4339_v34 = vunpack.c.h.bf16 %v1759_v30  ;;  %v4342_v45 = vunpack.c.h.bf16 %v1768_v41 }
  0x40   :  { %v2328_v57 = vsub.f32 %v4332_v63, %v1921_v6  ;;  %4334 = vst [vmem:[#allocation52_spill] sm:$0xff] %v2333_v40  ;;  %v2338_v46 = vsub.f32 %v4335_v42, %v1921_v6  ;;  %v2343_v51 = vsub.f32 %v4336_v47, %v1921_v6  ;;  %v4341_v40 = vunpack.c.l.bf16 %v1768_v41 }
  0x41   :  { %v2348_v63 = vsub.f32 %v4338_v53, %v1921_v6  ;;  %v2353_v36 = vsub.f32 %v4339_v34, %v1921_v6  ;;  %v2363_v47 = vsub.f32 %v4342_v45, %v1921_v6  ;;  %v4345_v30 = vunpack.c.h.bf16 %v1773_v28 }
  0x42   :  { %4337 = vst [vmem:[#allocation53_spill] sm:$0xff] %v2343_v51  ;;  %v2358_v42 = vsub.f32 %v4341_v40, %v1921_v6  ;;  %v4344_v51 = vunpack.c.l.bf16 %v1773_v28  ;;  %v4348_v41 = vunpack.c.h.bf16 %v1782_v39  ;;  %v4352_v28 = vunpack.c.h.bf16 %v1787_v24 }
  0x43   :  { %4340 = vst [vmem:[#allocation54_spill] sm:$0xff] %v2353_v36  ;;  %4343 = vst [vmem:[#allocation55_spill] sm:$0xff] %v2363_v47  ;;  %v2373_v34 = vsub.f32 %v4345_v30, %v1921_v6  ;;  %v4347_v36 = vunpack.c.l.bf16 %v1782_v39  ;;  %v4350_v47 = vunpack.c.l.bf16 %v1787_v24  ;;  %v4356_v39 = vunpack.c.h.bf16 %v1796_v35 }
  0x44   :  { %v2368_v53 = vsub.f32 %v4344_v51, %v1921_v6  ;;  %v2383_v45 = vsub.f32 %v4348_v41, %v1921_v6  ;;  %v2393_v30 = vsub.f32 %v4352_v28, %v1921_v6  ;;  %v4360_v24 = vunpack.c.h.bf16 %v1801_v22 }
  0x45   :  { %4346 = vst [vmem:[#allocation56_spill] sm:$0xff] %v2373_v34  ;;  %v2378_v40 = vsub.f32 %v4347_v36, %v1921_v6  ;;  %v2388_v51 = vsub.f32 %v4350_v47, %v1921_v6  ;;  %v4354_v34 = vunpack.c.l.bf16 %v1796_v35  ;;  %v2403_v41 = vsub.f32 %v4356_v39, %v1921_v6 }
  0x46   :  { %4349 = vst [vmem:[#allocation57_spill] sm:$0xff] %v2383_v45  ;;  %4353 = vst [vmem:[#allocation59_spill] sm:$0xff] %v2393_v30  ;;  %v4358_v45 = vunpack.c.l.bf16 %v1801_v22  ;;  %v2413_v28 = vsub.f32 %v4360_v24, %v1921_v6  ;;  %v4362_v30 = vld [vmem:[#allocation2_spill] sm:$0xff] }
  0x47   :  { %4351 = vst [vmem:[#allocation58_spill] sm:$0xff] %v2388_v51  ;;  %v2398_v36 = vsub.f32 %v4354_v34, %v1921_v6  ;;  %4357 = vst [vmem:[#allocation61_spill] sm:$0xff] %v2403_v41  ;;  %v4363_v51 = vunpack.c.l.bf16 %v4362_v30  ;;  %v4365_v35 = vunpack.c.h.bf16 %v4362_v30  ;;  %v4367_v41 = vld [vmem:[#allocation3_spill] sm:$0xff] }
  0x48   :  { %v2408_v47 = vsub.f32 %v4358_v45, %v1921_v6  ;;  %4361 = vst [vmem:[#allocation63_spill] sm:$0xff] %v2413_v28  ;;  %v4370_v22 = vunpack.c.h.bf16 %v4367_v41  ;;  %v4372_v28 = vld [vmem:[#allocation4_spill] sm:$0xff] }
  0x49   :  { %4355 = vst [vmem:[#allocation60_spill] sm:$0xff] %v2398_v36  ;;  %v2418_v34 = vsub.f32 %v4363_v51, %v1921_v6  ;;  %v2423_v39 = vsub.f32 %v4365_v35, %v1921_v6  ;;  %v4368_v36 = vunpack.c.l.bf16 %v4367_v41  ;;  %v4375_v30 = vunpack.c.h.bf16 %v4372_v28 }
  0x4a   :  { %4359 = vst [vmem:[#allocation62_spill] sm:$0xff] %v2408_v47  ;;  %v2433_v24 = vsub.f32 %v4370_v22, %v1921_v6  ;;  %v4373_v47 = vunpack.c.l.bf16 %v4372_v28 }
  0x4b   :  { %4364 = vst [vmem:[#allocation2_spill] sm:$0xff] %v2418_v34  ;;  %4366 = vst [vmem:[#allocation64_spill] sm:$0xff] %v2423_v39  ;;  %v2428_v45 = vsub.f32 %v4368_v36, %v1921_v6  ;;  %v2443_v35 = vsub.f32 %v4375_v30, %v1921_v6  ;;  %v4377_v39 = vld [vmem:[#allocation5_spill] sm:$0xff] }
  0x4c   :  { %4371 = vst [vmem:[#allocation65_spill] sm:$0xff] %v2433_v24  ;;  %v2438_v51 = vsub.f32 %v4373_v47, %v1921_v6  ;;  %v4378_v34 = vunpack.c.l.bf16 %v4377_v39  ;;  %v4380_v41 = vunpack.c.h.bf16 %v4377_v39  ;;  %v4382_v24 = vld [vmem:[#allocation6_spill] sm:$0xff] }
  0x4d   :  { %4369 = vst [vmem:[#allocation3_spill] sm:$0xff] %v2428_v45  ;;  %4376 = vst [vmem:[#allocation66_spill] sm:$0xff] %v2443_v35  ;;  %v4383_v45 = vunpack.c.l.bf16 %v4382_v24  ;;  %v4385_v28 = vunpack.c.h.bf16 %v4382_v24  ;;  %v4387_v35 = vld [vmem:[#allocation7_spill] sm:$0xff] }
  0x4e   :  { %4374 = vst [vmem:[#allocation4_spill] sm:$0xff] %v2438_v51  ;;  %v2448_v36 = vsub.f32 %v4378_v34, %v1921_v6  ;;  %v2453_v22 = vsub.f32 %v4380_v41, %v1921_v6  ;;  %v4388_v51 = vunpack.c.l.bf16 %v4387_v35  ;;  %v4389_v39 = vunpack.c.h.bf16 %v4387_v35 }
  0x4f   :  { %v2458_v47 = vsub.f32 %v4383_v45, %v1921_v6  ;;  %v2463_v30 = vsub.f32 %v4385_v28, %v1921_v6 }
  0x50   :  { %4379 = vst [vmem:[#allocation5_spill] sm:$0xff] %v2448_v36  ;;  %4381 = vst [vmem:[#allocation67_spill] sm:$0xff] %v2453_v22  ;;  %v2468_v34 = vsub.f32 %v4388_v51, %v1921_v6  ;;  %v2473_v41 = vsub.f32 %v4389_v39, %v1921_v6  ;;  %v4391_v22 = vld [vmem:[#allocation8_spill] sm:$0xff] }
  0x51   :  { %4384 = vst [vmem:[#allocation6_spill] sm:$0xff] %v2458_v47  ;;  %4386 = vst [vmem:[#allocation68_spill] sm:$0xff] %v2463_v30  ;;  %v4392_v36 = vunpack.c.l.bf16 %v4391_v22  ;;  %v4394_v24 = vunpack.c.h.bf16 %v4391_v22  ;;  %v4396_v30 = vld [vmem:[#allocation9_spill] sm:$0xff]  ;;  %v4401_v22 = vunpack.c.h.bf16 %v1866_v21 }
  0x52   :  { %4390 = vst [vmem:[#allocation7_spill] sm:$0xff] %v2473_v41  ;;  %v4397_v47 = vunpack.c.l.bf16 %v4396_v30  ;;  %v4398_v35 = vunpack.c.h.bf16 %v4396_v30  ;;  %v4400_v41 = vunpack.c.l.bf16 %v1866_v21  ;;  %v4409_v21 = vunpack.c.h.bf16 %v1880_v17 }
  0x53   :  { %v2478_v45 = vsub.f32 %v4392_v36, %v1921_v6  ;;  %v2483_v28 = vsub.f32 %v4394_v24, %v1921_v6  ;;  %v2503_v24 = vsub.f32 %v4401_v22, %v1921_v6 }
  0x54   :  { %v2488_v51 = vsub.f32 %v4397_v47, %v1921_v6  ;;  %v2493_v39 = vsub.f32 %v4398_v35, %v1921_v6  ;;  %v2498_v36 = vsub.f32 %v4400_v41, %v1921_v6  ;;  %v2523_v22 = vsub.f32 %v4409_v21, %v1921_v6 }
  0x55   :  { %4393 = vst [vmem:[#allocation8_spill] sm:$0xff] %v2478_v45  ;;  %4395 = vst [vmem:[#allocation69_spill] sm:$0xff] %v2483_v28  ;;  %v4403_v28 = vld [vmem:[#allocation10_spill] sm:$0xff] }
  0x56   :  { %4399 = vst [vmem:[#allocation9_spill] sm:$0xff] %v2493_v39  ;;  %4402 = vst [vmem:[#allocation70_spill] sm:$0xff] %v2503_v24  ;;  %v4404_v45 = vunpack.c.l.bf16 %v4403_v28  ;;  %v4405_v30 = vunpack.c.h.bf16 %v4403_v28  ;;  %v4407_v39 = vunpack.c.l.bf16 %v1880_v17  ;;  %v4411_v24 = vunpack.c.l.bf16 %v1885_v16 }
  0x57   :  { %4410 = vst [vmem:[#allocation72_spill] sm:$0xff] %v2523_v22  ;;  %v4413_v28 = vunpack.c.h.bf16 %v1885_v16  ;;  %v4415_v17 = vunpack.c.l.bf16 %v1894_v15  ;;  %v4416_v22 = vunpack.c.h.bf16 %v1894_v15  ;;  %v4425_v15 = vunpack.c.h.bf16 %v1908_v11 }
  0x58   :  { %v2508_v47 = vsub.f32 %v4404_v45, %v1921_v6  ;;  %v2513_v35 = vsub.f32 %v4405_v30, %v1921_v6  ;;  %v2518_v41 = vsub.f32 %v4407_v39, %v1921_v6  ;;  %v2528_v45 = vsub.f32 %v4411_v24, %v1921_v6  ;;  %v2538_v39 = vld [vmem:[%s4071_s1 + $0x1] ss:$0 sm:$0xff] }
  0x59   :  { %v2533_v30 = vsub.f32 %v4413_v28, %v1921_v6  ;;  %v2543_v21 = vsub.f32 %v4415_v17, %v1921_v6  ;;  %v2548_v24 = vsub.f32 %v4416_v22, %v1921_v6  ;;  %v2568_v22 = vsub.f32 %v4425_v15, %v1921_v6 }
  0x5a   :  { %4406 = vst [vmem:[#allocation10_spill] sm:$0xff] %v2513_v35  ;;  %4408 = vst [vmem:[#allocation71_spill] sm:$0xff] %v2518_v41  ;;  %v4423_v35 = vunpack.c.l.bf16 %v1908_v11  ;;  %v4429_v11 = vld [vmem:[#allocation14_spill] sm:$0xff]  ;;  %v2596_v15 = vmul.f32 %v2538_v39, %v1958_v9 }
  0x5b   :  { %4412 = vst [vmem:[#allocation73_spill] sm:$0xff] %v2528_v45  ;;  %4414 = vst [vmem:[#allocation74_spill] sm:$0xff] %v2533_v30  ;;  %v4418_v45 = vld [vmem:[#allocation11_spill] sm:$0xff] }
  0x5c   :  { %4417 = vst [vmem:[#allocation75_spill] sm:$0xff] %v2548_v24  ;;  %v4419_v16 = vunpack.c.l.bf16 %v4418_v45  ;;  %v4421_v30 = vunpack.c.h.bf16 %v4418_v45  ;;  %v2563_v17 = vsub.f32 %v4423_v35, %v1921_v6  ;;  %4426 = vst [vmem:[#allocation78_spill] sm:$0xff] %v2568_v22  ;;  %v2572_v24 = vmul.f32 %v2538_v39, %v1928_v18  ;;  %v4431_v22 = vld [vmem:[#allocation16_spill] sm:$0xff] }
  0x5d   :  { %v2580_v45 = vmul.f32 %v2538_v39, %v1938_v27  ;;  %v2592_v18 = vmul.f32 %v2538_v39, %v4429_v11  ;;  %v2612_v11 = vmul.f32 %v2538_v39, %v1978_v5  ;;  %vm542_vm6 = vcmp.gt.f32.partialorder %v2596_v15, 0.0 }
  0x5e   :  { %v2553_v28 = vsub.f32 %v4419_v16, %v1921_v6  ;;  %v2558_v41 = vsub.f32 %v4421_v30, %v1921_v6  ;;  %4424 = vst [vmem:[#allocation77_spill] sm:$0xff] %v2563_v17  ;;  %v4427_v16 = vld [vmem:[#allocation12_spill] sm:$0xff]  ;;  %v4428_v30 = vld [vmem:[#allocation13_spill] sm:$0xff]  ;;  %v2588_v6 = vmul.f32 %v2538_v39, %v1948_v33  ;;  %v2608_v33 = vmul.f32 %v2538_v39, %v4431_v22 }
  0x5f   :  { %v2584_v35 = vmul.f32 %v2538_v39, %v4428_v30  ;;  %v2604_v30 = vmul.f32 %v2538_v39, %v1968_v23  ;;  %v4433_v17 = vld [vmem:[#allocation17_spill] sm:$0xff]  ;;  %v2628_v22 = vmul.f32 %v2538_v39, %v1998_v29  ;;  %vm536_vm0 = vcmp.gt.f32.partialorder %v2572_v24, 0.0 }
  0x60   :  { %4420 = vst [vmem:[#allocation11_spill] sm:$0xff] %v2553_v28  ;;  %4422 = vst [vmem:[#allocation76_spill] sm:$0xff] %v2558_v41  ;;  %v2576_v28 = vmul.f32 %v2538_v39, %v4427_v16  ;;  %v4430_v16 = vld [vmem:[#allocation15_spill] sm:$0xff]  ;;  %v2616_v9 = vmul.f32 %v2538_v39, %v4433_v17  ;;  %v4435_v41 = vld [vmem:[#allocation18_spill] sm:$0xff]  ;;  %v2636_v17 = vmul.f32 %v2538_v39, %v2008_v10  ;;  %vm538_vm2 = vcmp.gt.f32.partialorder %v2580_v45, 0.0 }
  0x61   :  { %v2600_v27 = vmul.f32 %v2538_v39, %v4430_v16  ;;  %4432 = vst [vmem:[#allocation12_spill] sm:$0xff] %v2608_v33  ;;  %v2620_v16 = vmul.f32 %v2538_v39, %v1988_v12  ;;  %v2624_v23 = vmul.f32 %v2538_v39, %v4435_v41  ;;  %v4437_v33 = vld [vmem:[#allocation19_spill] sm:$0xff]  ;;  %v2644_v41 = vmul.f32 %v2538_v39, %v2018_v0 }
  0x62   :  { %4434 = vst [vmem:[#allocation13_spill] sm:$0xff] %v2616_v9  ;;  %v2632_v5 = vmul.f32 %v2538_v39, %v4437_v33  ;;  %v4439_v9 = vld [vmem:[#allocation20_spill] sm:$0xff]  ;;  %v2652_v33 = vmul.f32 %v2538_v39, %v2028_v1  ;;  %vm537_vm1 = vcmp.gt.f32.partialorder %v2576_v28, 0.0  ;;  %vm539_vm3 = vcmp.gt.f32.partialorder %v2584_v35, 0.0 }
  0x63   :  { %4436 = vst [vmem:[#allocation14_spill] sm:$0xff] %v2624_v23  ;;  %v2640_v12 = vmul.f32 %v2538_v39, %v4439_v9  ;;  %v4441_v23 = vld [vmem:[#allocation21_spill] sm:$0xff]  ;;  %v2660_v9 = vmul.f32 %v2538_v39, %v2038_v2  ;;  %vm540_vm4 = vcmp.gt.f32.partialorder %v2588_v6, 0.0  ;;  %vm541_vm5 = vcmp.gt.f32.partialorder %v2592_v18, 0.0 }
  0x64   :  { %4438 = vst [vmem:[#allocation15_spill] sm:$0xff] %v2632_v5  ;;  %v2648_v29 = vmul.f32 %v2538_v39, %v4441_v23  ;;  %v4443_v5 = vld [vmem:[#allocation22_spill] sm:$0xff]  ;;  %v2668_v23 = vmul.f32 %v2538_v39, %v2048_v3  ;;  %vm543_vm7 = vcmp.gt.f32.partialorder %v2600_v27, 0.0  ;;  %vm544_vm8 = vcmp.gt.f32.partialorder %v2604_v30, 0.0 }
  0x65   :  { %4440 = vst [vmem:[#allocation16_spill] sm:$0xff] %v2640_v12  ;;  %v2656_v10 = vmul.f32 %v2538_v39, %v4443_v5  ;;  %v4445_v12 = vld [vmem:[#allocation23_spill] sm:$0xff]  ;;  %v2676_v5 = vmul.f32 %v2538_v39, %v2058_v4  ;;  %vm546_vm10 = vcmp.gt.f32.partialorder %v2612_v11, 0.0  ;;  %vm548_vm12 = vcmp.gt.f32.partialorder %v2620_v16, 0.0 }
  0x66   :  { %4442 = vst [vmem:[#allocation17_spill] sm:$0xff] %v2648_v29  ;;  %v2664_v0 = vmul.f32 %v2538_v39, %v4445_v12  ;;  %v4447_v29 = vld [vmem:[#allocation24_spill] sm:$0xff]  ;;  %v2684_v12 = vmul.f32 %v2538_v39, %v2068_v7  ;;  %vm550_vm14 = vcmp.gt.f32.partialorder %v2628_v22, 0.0 }
  0x67   :  { %4444 = vst [vmem:[#allocation18_spill] sm:$0xff] %v2656_v10  ;;  %v2672_v1 = vmul.f32 %v2538_v39, %v4447_v29  ;;  %v4449_v10 = vld [vmem:[#allocation25_spill] sm:$0xff]  ;;  %v2692_v29 = vmul.f32 %v2538_v39, %v2078_v8 }
  0x68   :  { %4446 = vst [vmem:[#allocation19_spill] sm:$0xff] %v2664_v0  ;;  %v2680_v2 = vmul.f32 %v2538_v39, %v4449_v10  ;;  %v4451_v0 = vld [vmem:[#allocation26_spill] sm:$0xff]  ;;  %v2700_v10 = vmul.f32 %v2538_v39, %v2088_v13 }
  0x69   :  { %4448 = vst [vmem:[#allocation20_spill] sm:$0xff] %v2672_v1  ;;  %v2688_v3 = vmul.f32 %v2538_v39, %v4451_v0  ;;  %4453 = vst [vmem:[#allocation23_spill] sm:$0xff] %v2692_v29  ;;  %v4454_v1 = vld [vmem:[#allocation27_spill] sm:$0xff]  ;;  %v2708_v0 = vmul.f32 %v2538_v39, %v2098_v14 }
  0x6a   :  { %4450 = vst [vmem:[#allocation21_spill] sm:$0xff] %v2680_v2  ;;  %v2696_v4 = vmul.f32 %v2538_v39, %v4454_v1  ;;  %v4456_v2 = vld [vmem:[#allocation28_spill] sm:$0xff]  ;;  %v2716_v1 = vmul.f32 %v2538_v39, %v2108_v19 }
  0x6b   :  { %4452 = vst [vmem:[#allocation22_spill] sm:$0xff] %v2688_v3  ;;  %v2704_v7 = vmul.f32 %v2538_v39, %v4456_v2  ;;  %v4458_v3 = vld [vmem:[#allocation29_spill] sm:$0xff]  ;;  %v2724_v2 = vmul.f32 %v2538_v39, %v2118_v20 }
  0x6c   :  { %4455 = vst [vmem:[#allocation24_spill] sm:$0xff] %v2696_v4  ;;  %v2712_v8 = vmul.f32 %v2538_v39, %v4458_v3  ;;  %v4460_v4 = vld [vmem:[#allocation30_spill] sm:$0xff]  ;;  %v2732_v3 = vmul.f32 %v2538_v39, %v2128_v25 }
  0x6d   :  { %4457 = vst [vmem:[#allocation25_spill] sm:$0xff] %v2704_v7  ;;  %v2720_v13 = vmul.f32 %v2538_v39, %v4460_v4  ;;  %v4462_v7 = vld [vmem:[#allocation31_spill] sm:$0xff]  ;;  %v2740_v4 = vmul.f32 %v2538_v39, %v2138_v26 }
  0x6e   :  { %4459 = vst [vmem:[#allocation26_spill] sm:$0xff] %v2712_v8  ;;  %v2728_v14 = vmul.f32 %v2538_v39, %v4462_v7  ;;  %v4464_v8 = vld [vmem:[#allocation32_spill] sm:$0xff]  ;;  %v2748_v7 = vmul.f32 %v2538_v39, %v2148_v31 }
  0x6f   :  { %4461 = vst [vmem:[#allocation27_spill] sm:$0xff] %v2720_v13  ;;  %v2736_v19 = vmul.f32 %v2538_v39, %v4464_v8  ;;  %v4466_v13 = vld [vmem:[#allocation33_spill] sm:$0xff]  ;;  %v2756_v8 = vmul.f32 %v2538_v39, %v2158_v32 }
  0x70   :  { %4463 = vst [vmem:[#allocation28_spill] sm:$0xff] %v2728_v14  ;;  %v2744_v20 = vmul.f32 %v2538_v39, %v4466_v13  ;;  %v4468_v14 = vld [vmem:[#allocation34_spill] sm:$0xff]  ;;  %v2764_v13 = vmul.f32 %v2538_v39, %v2168_v37 }
  0x71   :  { %4465 = vst [vmem:[#allocation29_spill] sm:$0xff] %v2736_v19  ;;  %v2752_v25 = vmul.f32 %v2538_v39, %v4468_v14  ;;  %v4470_v19 = vld [vmem:[#allocation35_spill] sm:$0xff]  ;;  %v2772_v14 = vmul.f32 %v2538_v39, %v2178_v38 }
  0x72   :  { %4467 = vst [vmem:[#allocation30_spill] sm:$0xff] %v2744_v20  ;;  %v2760_v26 = vmul.f32 %v2538_v39, %v4470_v19  ;;  %4472 = vst [vmem:[#allocation33_spill] sm:$0xff] %v2764_v13  ;;  %v4473_v20 = vld [vmem:[#allocation36_spill] sm:$0xff]  ;;  %v2780_v19 = vmul.f32 %v2538_v39, %v2188_v43 }
  0x73   :  { %4469 = vst [vmem:[#allocation31_spill] sm:$0xff] %v2752_v25  ;;  %v2768_v31 = vmul.f32 %v2538_v39, %v4473_v20  ;;  %4475 = vst [vmem:[#allocation35_spill] sm:$0xff] %v2772_v14  ;;  %v4476_v25 = vld [vmem:[#allocation37_spill] sm:$0xff]  ;;  %v2788_v20 = vmul.f32 %v2538_v39, %v2198_v44 }
  0x74   :  { %4471 = vst [vmem:[#allocation32_spill] sm:$0xff] %v2760_v26  ;;  %v2776_v32 = vmul.f32 %v2538_v39, %v4476_v25  ;;  %4478 = vst [vmem:[#allocation37_spill] sm:$0xff] %v2780_v19  ;;  %v4479_v26 = vld [vmem:[#allocation38_spill] sm:$0xff]  ;;  %v2796_v25 = vmul.f32 %v2538_v39, %v2208_v49 }
  0x75   :  { %4474 = vst [vmem:[#allocation34_spill] sm:$0xff] %v2768_v31  ;;  %v2784_v37 = vmul.f32 %v2538_v39, %v4479_v26  ;;  %4481 = vst [vmem:[#allocation79_spill] sm:$0xff] %v2788_v20  ;;  %v4482_v31 = vld [vmem:[#allocation39_spill] sm:$0xff]  ;;  %v2804_v26 = vmul.f32 %v2538_v39, %v2218_v50 }
  0x76   :  { %4477 = vst [vmem:[#allocation36_spill] sm:$0xff] %v2776_v32  ;;  %v2792_v38 = vmul.f32 %v2538_v39, %v4482_v31  ;;  %4484 = vst [vmem:[#allocation80_spill] sm:$0xff] %v2796_v25  ;;  %v4485_v32 = vld [vmem:[#allocation40_spill] sm:$0xff]  ;;  %v2812_v31 = vmul.f32 %v2538_v39, %v2228_v55 }
  0x77   :  { %4480 = vst [vmem:[#allocation38_spill] sm:$0xff] %v2784_v37  ;;  %v2800_v43 = vmul.f32 %v2538_v39, %v4485_v32  ;;  %4487 = vst [vmem:[#allocation81_spill] sm:$0xff] %v2804_v26  ;;  %v4488_v37 = vld [vmem:[#allocation41_spill] sm:$0xff]  ;;  %v2820_v32 = vmul.f32 %v2538_v39, %v2238_v56 }
  0x78   :  { %4483 = vst [vmem:[#allocation39_spill] sm:$0xff] %v2792_v38  ;;  %v2808_v44 = vmul.f32 %v2538_v39, %v4488_v37  ;;  %4490 = vst [vmem:[#allocation82_spill] sm:$0xff] %v2812_v31  ;;  %v4491_v38 = vld [vmem:[#allocation42_spill] sm:$0xff]  ;;  %v2828_v37 = vmul.f32 %v2538_v39, %v2248_v61 }
  0x79   :  { %4486 = vst [vmem:[#allocation40_spill] sm:$0xff] %v2800_v43  ;;  %v2816_v49 = vmul.f32 %v2538_v39, %v4491_v38  ;;  %4493 = vst [vmem:[#allocation83_spill] sm:$0xff] %v2820_v32  ;;  %v4494_v43 = vld [vmem:[#allocation43_spill] sm:$0xff]  ;;  %v2836_v38 = vmul.f32 %v2538_v39, %v2258_v62 }
  0x7a   :  { %4489 = vst [vmem:[#allocation41_spill] sm:$0xff] %v2808_v44  ;;  %v2824_v50 = vmul.f32 %v2538_v39, %v4494_v43  ;;  %v4496_v44 = vld [vmem:[#allocation44_spill] sm:$0xff]  ;;  %v2844_v43 = vmul.f32 %v2538_v39, %v2268_v60 }
  0x7b   :  { %4492 = vst [vmem:[#allocation42_spill] sm:$0xff] %v2816_v49  ;;  %v2832_v55 = vmul.f32 %v2538_v39, %v4496_v44  ;;  %v4498_v49 = vld [vmem:[#allocation45_spill] sm:$0xff]  ;;  %v2852_v44 = vmul.f32 %v2538_v39, %v2278_v54 }
  0x7c   :  { %4495 = vst [vmem:[#allocation43_spill] sm:$0xff] %v2824_v50  ;;  %v2840_v56 = vmul.f32 %v2538_v39, %v4498_v49  ;;  %4500 = vst [vmem:[#allocation84_spill] sm:$0xff] %v2844_v43  ;;  %v4501_v50 = vld [vmem:[#allocation46_spill] sm:$0xff]  ;;  %v2860_v49 = vmul.f32 %v2538_v39, %v2288_v59 }
  0x7d   :  { %4497 = vst [vmem:[#allocation44_spill] sm:$0xff] %v2832_v55  ;;  %v2848_v61 = vmul.f32 %v2538_v39, %v4501_v50  ;;  %4503 = vst [vmem:[#allocation85_spill] sm:$0xff] %v2852_v44  ;;  %v4504_v55 = vld [vmem:[#allocation47_spill] sm:$0xff]  ;;  %v2868_v50 = vmul.f32 %v2538_v39, %v2298_v52  ;;  %v3135_v44 = vmul.f32 0.2, %v2644_v41 }
  0x7e   :  { %4499 = vst [vmem:[#allocation45_spill] sm:$0xff] %v2840_v56  ;;  %v2856_v62 = vmul.f32 %v2538_v39, %v4504_v55  ;;  %4506 = vst [vmem:[#allocation86_spill] sm:$0xff] %v2860_v49  ;;  %v4507_v56 = vld [vmem:[#allocation48_spill] sm:$0xff]  ;;  %v2876_v55 = vmul.f32 %v2538_v39, %v2308_v58 }
  0x7f   :  { %4502 = vst [vmem:[#allocation46_spill] sm:$0xff] %v2848_v61  ;;  %v2864_v60 = vmul.f32 %v2538_v39, %v4507_v56  ;;  %4509 = vst [vmem:[#allocation87_spill] sm:$0xff] %v2868_v50  ;;  %v4510_v61 = vld [vmem:[#allocation49_spill] sm:$0xff]  ;;  %v2884_v56 = vmul.f32 %v2538_v39, %v2318_v48  ;;  %v4607_v50 = vld [vmem:[#allocation15_spill] sm:$0xff] }
  0x80   :  { %4505 = vst [vmem:[#allocation47_spill] sm:$0xff] %v2856_v62  ;;  %v2872_v54 = vmul.f32 %v2538_v39, %v4510_v61  ;;  %4512 = vst [vmem:[#allocation88_spill] sm:$0xff] %v2876_v55  ;;  %v4513_v62 = vld [vmem:[#allocation50_spill] sm:$0xff]  ;;  %v2892_v61 = vmul.f32 %v2538_v39, %v2328_v57  ;;  %v3117_v55 = vmul.f32 0.2, %v2628_v22  ;;  %vm551_vm15 = vcmp.gt.f32.partialorder %v4607_v50, 0.0 }
  0x81   :  { %4508 = vst [vmem:[#allocation48_spill] sm:$0xff] %v2864_v60  ;;  %v2880_v59 = vmul.f32 %v2538_v39, %v4513_v62  ;;  %4515 = vst [vmem:[#allocation89_spill] sm:$0xff] %v2884_v56  ;;  %v4516_v60 = vld [vmem:[#allocation51_spill] sm:$0xff]  ;;  %v2900_v62 = vmul.f32 %v2538_v39, %v2338_v46  ;;  %v676_v56 = vmul.f32 0.2, %v2620_v16 }
  0x82   :  { %4511 = vst [vmem:[#allocation49_spill] sm:$0xff] %v2872_v54  ;;  %v2888_v52 = vmul.f32 %v2538_v39, %v4516_v60  ;;  %4518 = vst [vmem:[#allocation90_spill] sm:$0xff] %v2892_v61  ;;  %v4519_v54 = vld [vmem:[#allocation52_spill] sm:$0xff]  ;;  %v2908_v60 = vmul.f32 %v2538_v39, %v2348_v63  ;;  %v4560_v61 = vld [vmem:[#allocation5_spill] sm:$0xff] }
  0x83   :  { %4514 = vst [vmem:[#allocation50_spill] sm:$0xff] %v2880_v59  ;;  %v2896_v58 = vmul.f32 %v2538_v39, %v4519_v54  ;;  %4521 = vst [vmem:[#allocation91_spill] sm:$0xff] %v2900_v62  ;;  %v4522_v59 = vld [vmem:[#allocation53_spill] sm:$0xff]  ;;  %v2916_v54 = vmul.f32 %v2538_v39, %v2358_v42  ;;  %v4558_v62 = vld [vmem:[#allocation66_spill] sm:$0xff] }
  0x84   :  { %4517 = vst [vmem:[#allocation51_spill] sm:$0xff] %v2888_v52  ;;  %v2904_v48 = vmul.f32 %v2538_v39, %v4522_v59  ;;  %4524 = vst [vmem:[#allocation92_spill] sm:$0xff] %v2908_v60  ;;  %v4525_v52 = vld [vmem:[#allocation54_spill] sm:$0xff]  ;;  %v2924_v59 = vmul.f32 %v2538_v39, %v2368_v53  ;;  %v4556_v60 = vld [vmem:[#allocation4_spill] sm:$0xff] }
  0x85   :  { %4520 = vst [vmem:[#allocation52_spill] sm:$0xff] %v2896_v58  ;;  %v2912_v57 = vmul.f32 %v2538_v39, %v4525_v52  ;;  %4527 = vst [vmem:[#allocation93_spill] sm:$0xff] %v2916_v54  ;;  %v4528_v58 = vld [vmem:[#allocation55_spill] sm:$0xff]  ;;  %v2932_v52 = vmul.f32 %v2538_v39, %v2378_v40  ;;  %v4536_v54 = vld [vmem:[#allocation58_spill] sm:$0xff] }
  0x86   :  { %4523 = vst [vmem:[#allocation53_spill] sm:$0xff] %v2904_v48  ;;  %v2920_v46 = vmul.f32 %v2538_v39, %v4528_v58  ;;  %4530 = vst [vmem:[#allocation94_spill] sm:$0xff] %v2924_v59  ;;  %v4531_v48 = vld [vmem:[#allocation56_spill] sm:$0xff]  ;;  %v2940_v58 = vmul.f32 %v2538_v39, %v4536_v54 }
  0x87   :  { %4526 = vst [vmem:[#allocation54_spill] sm:$0xff] %v2912_v57  ;;  %v2928_v63 = vmul.f32 %v2538_v39, %v4531_v48  ;;  %4533 = vst [vmem:[#allocation95_spill] sm:$0xff] %v2932_v52  ;;  %v4534_v57 = vld [vmem:[#allocation57_spill] sm:$0xff]  ;;  %v4540_v59 = vld [vmem:[#allocation60_spill] sm:$0xff] }
  0x88   :  { %4529 = vst [vmem:[#allocation55_spill] sm:$0xff] %v2920_v46  ;;  %v2936_v42 = vmul.f32 %v2538_v39, %v4534_v57  ;;  %4537 = vst [vmem:[#allocation58_spill] sm:$0xff] %v2940_v58  ;;  %v4538_v46 = vld [vmem:[#allocation59_spill] sm:$0xff]  ;;  %v2948_v48 = vmul.f32 %v2538_v39, %v4540_v59  ;;  %v4544_v52 = vld [vmem:[#allocation62_spill] sm:$0xff] }
  0x89   :  { %4532 = vst [vmem:[#allocation56_spill] sm:$0xff] %v2928_v63  ;;  %v2944_v53 = vmul.f32 %v2538_v39, %v4538_v46  ;;  %v4542_v63 = vld [vmem:[#allocation61_spill] sm:$0xff]  ;;  %v2956_v57 = vmul.f32 %v2538_v39, %v4544_v52  ;;  %v4548_v58 = vld [vmem:[#allocation2_spill] sm:$0xff] }
  0x8a   :  { %4535 = vst [vmem:[#allocation57_spill] sm:$0xff] %v2936_v42  ;;  %4541 = vst [vmem:[#allocation60_spill] sm:$0xff] %v2948_v48  ;;  %v2952_v40 = vmul.f32 %v2538_v39, %v4542_v63  ;;  %v4546_v42 = vld [vmem:[#allocation63_spill] sm:$0xff]  ;;  %v2964_v46 = vmul.f32 %v2538_v39, %v4548_v58  ;;  %v2984_v58 = vmul.f32 %v2538_v39, %v4558_v62 }
  0x8b   :  { %4539 = vst [vmem:[#allocation59_spill] sm:$0xff] %v2944_v53  ;;  %4545 = vst [vmem:[#allocation62_spill] sm:$0xff] %v2956_v57  ;;  %v2960_v54 = vmul.f32 %v2538_v39, %v4546_v42  ;;  %v4550_v53 = vld [vmem:[#allocation64_spill] sm:$0xff]  ;;  %v4552_v48 = vld [vmem:[#allocation3_spill] sm:$0xff]  ;;  %v2980_v42 = vmul.f32 %v2538_v39, %v4556_v60  ;;  %v3004_v62 = vmul.f32 %v2538_v39, %v2468_v34 }
  0x8c   :  { %4543 = vst [vmem:[#allocation61_spill] sm:$0xff] %v2952_v40  ;;  %4549 = vst [vmem:[#allocation2_spill] sm:$0xff] %v2964_v46  ;;  %v2968_v59 = vmul.f32 %v2538_v39, %v4550_v53  ;;  %v2972_v63 = vmul.f32 %v2538_v39, %v4552_v48  ;;  %v4554_v40 = vld [vmem:[#allocation65_spill] sm:$0xff]  ;;  %v2988_v53 = vmul.f32 %v2538_v39, %v4560_v61  ;;  %v3120_v46 = vmul.f32 0.2, %v4607_v50 }
  0x8d   :  { %4547 = vst [vmem:[#allocation63_spill] sm:$0xff] %v2960_v54  ;;  %v2976_v52 = vmul.f32 %v2538_v39, %v4554_v40  ;;  %4557 = vst [vmem:[#allocation4_spill] sm:$0xff] %v2980_v42  ;;  %v4615_v54 = vld [vmem:[#allocation18_spill] sm:$0xff] }
  0x8e   :  { %4551 = vst [vmem:[#allocation64_spill] sm:$0xff] %v2968_v59  ;;  %4553 = vst [vmem:[#allocation3_spill] sm:$0xff] %v2972_v63  ;;  %v4562_v59 = vld [vmem:[#allocation67_spill] sm:$0xff]  ;;  %v4564_v63 = vld [vmem:[#allocation6_spill] sm:$0xff]  ;;  %v3150_v57 = vmul.f32 0.2, %v4615_v54 }
  0x8f   :  { %4555 = vst [vmem:[#allocation65_spill] sm:$0xff] %v2976_v52  ;;  %4559 = vst [vmem:[#allocation66_spill] sm:$0xff] %v2984_v58  ;;  %v2992_v48 = vmul.f32 %v2538_v39, %v4562_v59  ;;  %v2996_v40 = vmul.f32 %v2538_v39, %v4564_v63  ;;  %v4566_v52 = vld [vmem:[#allocation68_spill] sm:$0xff]  ;;  %v4569_v58 = vld [vmem:[#allocation7_spill] sm:$0xff] }
  0x90   :  { %4561 = vst [vmem:[#allocation5_spill] sm:$0xff] %v2988_v53  ;;  %v3000_v60 = vmul.f32 %v2538_v39, %v4566_v52  ;;  %4568 = vst [vmem:[#allocation96_spill] sm:$0xff] %v3004_v62  ;;  %v3008_v61 = vmul.f32 %v2538_v39, %v4569_v58  ;;  %v4571_v53 = vld [vmem:[#allocation8_spill] sm:$0xff]  ;;  %v3020_v52 = vmul.f32 %v2538_v39, %v2488_v51  ;;  %v672_v62 = vmul.f32 0.2, %v2604_v30 }
  0x91   :  { %4563 = vst [vmem:[#allocation67_spill] sm:$0xff] %v2992_v48  ;;  %4565 = vst [vmem:[#allocation6_spill] sm:$0xff] %v2996_v40  ;;  %v3012_v59 = vmul.f32 %v2538_v39, %v4571_v53  ;;  %v4573_v48 = vld [vmem:[#allocation69_spill] sm:$0xff]  ;;  %v3028_v58 = vmul.f32 %v2538_v39, %v2498_v36  ;;  %v674_v40 = vmul.f32 0.2, %v2612_v11 }
  0x92   :  { %4567 = vst [vmem:[#allocation68_spill] sm:$0xff] %v3000_v60  ;;  %4570 = vst [vmem:[#allocation7_spill] sm:$0xff] %v3008_v61  ;;  %v3016_v63 = vmul.f32 %v2538_v39, %v4573_v48  ;;  %v4576_v60 = vld [vmem:[#allocation9_spill] sm:$0xff]  ;;  %v4579_v61 = vld [vmem:[#allocation70_spill] sm:$0xff]  ;;  %v3036_v48 = vmul.f32 %v2538_v39, %v2508_v47 }
  0x93   :  { %4572 = vst [vmem:[#allocation8_spill] sm:$0xff] %v3012_v59  ;;  %4575 = vst [vmem:[#allocation97_spill] sm:$0xff] %v3020_v52  ;;  %v3024_v34 = vmul.f32 %v2538_v39, %v4576_v60  ;;  %v3032_v53 = vmul.f32 %v2538_v39, %v4579_v61  ;;  %v4584_v52 = vld [vmem:[#allocation71_spill] sm:$0xff]  ;;  %v671_v59 = vmul.f32 0.2, %v2600_v27 }
  0x94   :  { %4574 = vst [vmem:[#allocation69_spill] sm:$0xff] %v3016_v63  ;;  %4578 = vst [vmem:[#allocation98_spill] sm:$0xff] %v3028_v58  ;;  %v4582_v63 = vld [vmem:[#allocation10_spill] sm:$0xff]  ;;  %v3044_v60 = vmul.f32 %v2538_v39, %v4584_v52  ;;  %v4588_v58 = vld [vmem:[#allocation73_spill] sm:$0xff] }
  0x95   :  { %4577 = vst [vmem:[#allocation9_spill] sm:$0xff] %v3024_v34  ;;  %4580 = vst [vmem:[#allocation70_spill] sm:$0xff] %v3032_v53  ;;  %v3040_v51 = vmul.f32 %v2538_v39, %v4582_v63  ;;  %v4586_v34 = vld [vmem:[#allocation72_spill] sm:$0xff]  ;;  %v3052_v61 = vmul.f32 %v2538_v39, %v4588_v58  ;;  %v4590_v53 = vld [vmem:[#allocation74_spill] sm:$0xff]  ;;  %v3060_v63 = vmul.f32 %v2538_v39, %v2543_v21  ;;  %v664_v21 = vmul.f32 0.2, %v2572_v24 }
  0x96   :  { %4581 = vst [vmem:[#allocation99_spill] sm:$0xff] %v3036_v48  ;;  %4585 = vst [vmem:[#allocation71_spill] sm:$0xff] %v3044_v60  ;;  %v3048_v36 = vmul.f32 %v2538_v39, %v4586_v34  ;;  %v3056_v47 = vmul.f32 %v2538_v39, %v4590_v53  ;;  %v4595_v60 = vld [vmem:[#allocation11_spill] sm:$0xff]  ;;  %v4597_v58 = vld [vmem:[#allocation76_spill] sm:$0xff] }
  0x97   :  { %4583 = vst [vmem:[#allocation10_spill] sm:$0xff] %v3040_v51  ;;  %4589 = vst [vmem:[#allocation73_spill] sm:$0xff] %v3052_v61  ;;  %v4593_v51 = vld [vmem:[#allocation75_spill] sm:$0xff]  ;;  %v3068_v34 = vmul.f32 %v2538_v39, %v4595_v60  ;;  %v3081_v53 = vmul.f32 %v2538_v39, %v4597_v58  ;;  %v666_v60 = vmul.f32 0.2, %v2580_v45 }
  0x98   :  { %4587 = vst [vmem:[#allocation72_spill] sm:$0xff] %v3048_v36  ;;  %4591 = vst [vmem:[#allocation74_spill] sm:$0xff] %v3056_v47  ;;  %v3064_v52 = vmul.f32 %v2538_v39, %v4593_v51  ;;  %v665_v51 = vmul.f32 0.2, %v2576_v28  ;;  %v4601_v47 = vld [vmem:[#allocation12_spill] sm:$0xff] }
  0x99   :  { %4592 = vst [vmem:[#allocation100_spill] sm:$0xff] %v3060_v63  ;;  %4596 = vst [vmem:[#allocation11_spill] sm:$0xff] %v3068_v34  ;;  %v667_v34 = vmul.f32 0.2, %v2584_v35  ;;  %vm545_vm9 = vcmp.gt.f32.partialorder %v4601_v47, 0.0  ;;  %v3140_v43 = vsel %vm538_vm2, %v2580_v45, %v666_v60  ;;  %v4619_v60 = vld [vmem:[#allocation19_spill] sm:$0xff] }
  0x9a   :  { %4594 = vst [vmem:[#allocation75_spill] sm:$0xff] %v3064_v52  ;;  %4598 = vst [vmem:[#allocation76_spill] sm:$0xff] %v3081_v53  ;;  %v4599_v52 = vld [vmem:[#allocation77_spill] sm:$0xff]  ;;  %v668_v61 = vmul.f32 0.2, %v2588_v6  ;;  %v4602_v53 = vld [vmem:[#allocation78_spill] sm:$0xff]  ;;  %v3125_v49 = vsel %vm537_vm1, %v2576_v28, %v665_v51 }
  0x9b   :  { %v3089_v63 = vmul.f32 %v2538_v39, %v4599_v52  ;;  %v669_v36 = vmul.f32 0.2, %v2592_v18  ;;  %v670_v58 = vmul.f32 0.2, %v2596_v15  ;;  %v3097_v48 = vmul.f32 %v2538_v39, %v4602_v53  ;;  %v4606_v53 = vld [vmem:[#allocation14_spill] sm:$0xff]  ;;  %4611 = vst [vmem:[#allocation15_spill] sm:$0xff] %v3140_v43 }
  0x9c   :  { %v673_v52 = vmul.f32 0.2, %v4601_v47  ;;  %v3110_v39 = vsel %vm536_vm0, %v2572_v24, %v664_v21  ;;  %vm549_vm13 = vcmp.gt.f32.partialorder %v4606_v53, 0.0  ;;  %v3129_v24 = vmul.f32 0.2, %v2636_v17  ;;  %v4609_v21 = vld [vmem:[#allocation16_spill] sm:$0xff] }
  0x9d   :  { %4600 = vst [vmem:[#allocation77_spill] sm:$0xff] %v3089_v63  ;;  %4603 = vst [vmem:[#allocation12_spill] sm:$0xff] %v3097_v48  ;;  %v4604_v63 = vld [vmem:[#allocation13_spill] sm:$0xff]  ;;  %v3114_v48 = vmul.f32 0.2, %v4606_v53  ;;  %vm552_vm0 = vcmp.gt.f32.partialorder %v2636_v17, 0.0 }
  0x9e   :  { %vm547_vm11 = vcmp.gt.f32.partialorder %v4604_v63, 0.0  ;;  %v675_v42 = vmul.f32 0.2, %v4604_v63  ;;  %4605 = vst [vmem:[#allocation78_spill] sm:$0xff] %v3110_v39  ;;  %4608 = vst [vmem:[#allocation13_spill] sm:$0xff] %v3125_v49  ;;  %v4612_v28 = vld [vmem:[#allocation17_spill] sm:$0xff] }
  0x9f   :  { %v3132_v39 = vmul.f32 0.2, %v4609_v21  ;;  %4610 = vst [vmem:[#allocation14_spill] sm:$0xff] %v3135_v44  ;;  %v3144_v51 = vmul.f32 0.2, %v4612_v28  ;;  %4616 = vst [vmem:[#allocation18_spill] sm:$0xff] %v3150_v57  ;;  %v3155_v44 = vsel %vm539_vm3, %v2584_v35, %v667_v34  ;;  %v3170_v57 = vsel %vm540_vm4, %v2588_v6, %v668_v61 }
  0xa0   :  { %v3147_v49 = vmul.f32 0.2, %v2652_v33  ;;  %4617 = vst [vmem:[#allocation101_spill] sm:$0xff] %v3155_v44  ;;  %v3159_v45 = vmul.f32 0.2, %v2660_v9  ;;  %4621 = vst [vmem:[#allocation103_spill] sm:$0xff] %v3170_v57 }
  0xa1   :  { %4613 = vst [vmem:[#allocation16_spill] sm:$0xff] %v3144_v51  ;;  %v3162_v43 = vmul.f32 0.2, %v4619_v60  ;;  %v3165_v51 = vmul.f32 0.2, %v2668_v23  ;;  %v4622_v35 = vld [vmem:[#allocation20_spill] sm:$0xff] }
  0xa2   :  { %4614 = vst [vmem:[#allocation17_spill] sm:$0xff] %v3147_v49  ;;  %4618 = vst [vmem:[#allocation102_spill] sm:$0xff] %v3159_v45  ;;  %v3174_v34 = vmul.f32 0.2, %v4622_v35  ;;  %v3177_v44 = vmul.f32 0.2, %v2676_v5 }
  0xa3   :  { %4620 = vst [vmem:[#allocation19_spill] sm:$0xff] %v3165_v51  ;;  %v4625_v45 = vld [vmem:[#allocation21_spill] sm:$0xff]  ;;  %v3185_v51 = vsel %vm541_vm5, %v2592_v18, %v669_v36  ;;  %vm553_vm1 = vcmp.gt.f32.partialorder %v4609_v21, 0.0  ;;  %v3189_v6 = vmul.f32 0.2, %v2684_v12  ;;  %v4629_v61 = vld [vmem:[#allocation22_spill] sm:$0xff] }
  0xa4   :  { %4623 = vst [vmem:[#allocation20_spill] sm:$0xff] %v3174_v34  ;;  %4624 = vst [vmem:[#allocation104_spill] sm:$0xff] %v3177_v44  ;;  %v3180_v49 = vmul.f32 0.2, %v4625_v45  ;;  %v3192_v57 = vmul.f32 0.2, %v4629_v61 }
  0xa5   :  { %4627 = vst [vmem:[#allocation105_spill] sm:$0xff] %v3185_v51  ;;  %4628 = vst [vmem:[#allocation106_spill] sm:$0xff] %v3189_v6  ;;  %v3195_v34 = vmul.f32 0.2, %v2692_v29  ;;  %vm554_vm2 = vcmp.gt.f32.partialorder %v2644_v41, 0.0  ;;  %v4632_v18 = vld [vmem:[#allocation24_spill] sm:$0xff] }
  0xa6   :  { %4626 = vst [vmem:[#allocation21_spill] sm:$0xff] %v3180_v49  ;;  %v3200_v49 = vsel %vm542_vm6, %v2596_v15, %v670_v58  ;;  %v3204_v36 = vmul.f32 0.2, %v4632_v18  ;;  %v3207_v51 = vmul.f32 0.2, %v2700_v10  ;;  %v4634_v6 = vld [vmem:[#allocation25_spill] sm:$0xff]  ;;  %v3230_v18 = vsel %vm544_vm8, %v2604_v30, %v672_v62 }
  0xa7   :  { %4630 = vst [vmem:[#allocation22_spill] sm:$0xff] %v3195_v34  ;;  %4631 = vst [vmem:[#allocation107_spill] sm:$0xff] %v3200_v49  ;;  %v3210_v44 = vmul.f32 0.2, %v4634_v6  ;;  %v3215_v34 = vsel %vm543_vm7, %v2600_v27, %v671_v59  ;;  %vm555_vm3 = vcmp.gt.f32.partialorder %v4612_v28, 0.0  ;;  %v4637_v58 = vld [vmem:[#allocation26_spill] sm:$0xff] }
  0xa8   :  { %4633 = vst [vmem:[#allocation108_spill] sm:$0xff] %v3204_v36  ;;  %4635 = vst [vmem:[#allocation25_spill] sm:$0xff] %v3215_v34  ;;  %v3219_v15 = vmul.f32 0.2, %v2708_v0  ;;  %v3222_v29 = vmul.f32 0.2, %v4637_v58 }
  0xa9   :  { %v3225_v36 = vmul.f32 0.2, %v2716_v1  ;;  %4639 = vst [vmem:[#allocation110_spill] sm:$0xff] %v3230_v18  ;;  %vm556_vm4 = vcmp.gt.f32.partialorder %v2652_v33, 0.0  ;;  %v4640_v27 = vld [vmem:[#allocation27_spill] sm:$0xff]  ;;  %v4643_v49 = vld [vmem:[#allocation28_spill] sm:$0xff] }
  0xaa   :  { %4636 = vst [vmem:[#allocation109_spill] sm:$0xff] %v3219_v15  ;;  %v3234_v59 = vmul.f32 0.2, %v4640_v27  ;;  %v3237_v34 = vmul.f32 0.2, %v2724_v2  ;;  %vm557_vm5 = vcmp.gt.f32.partialorder %v4615_v54, 0.0 }
  0xab   :  { %4638 = vst [vmem:[#allocation26_spill] sm:$0xff] %v3225_v36  ;;  %v3240_v15 = vmul.f32 0.2, %v4643_v49  ;;  %v3245_v36 = vsel %vm545_vm9, %v4601_v47, %v673_v52  ;;  %v3249_v30 = vmul.f32 0.2, %v2732_v3  ;;  %v4647_v62 = vld [vmem:[#allocation29_spill] sm:$0xff] }
  0xac   :  { %4641 = vst [vmem:[#allocation27_spill] sm:$0xff] %v3234_v59  ;;  %4642 = vst [vmem:[#allocation111_spill] sm:$0xff] %v3237_v34  ;;  %v3252_v18 = vmul.f32 0.2, %v4647_v62  ;;  %v3255_v59 = vmul.f32 0.2, %v2740_v4 }
  0xad   :  { %4644 = vst [vmem:[#allocation28_spill] sm:$0xff] %v3240_v15  ;;  %4645 = vst [vmem:[#allocation112_spill] sm:$0xff] %v3245_v36  ;;  %v3260_v15 = vsel %vm546_vm10, %v2612_v11, %v674_v40  ;;  %vm558_vm6 = vcmp.gt.f32.partialorder %v2660_v9, 0.0  ;;  %v4651_v47 = vld [vmem:[#allocation30_spill] sm:$0xff]  ;;  %v3267_v36 = vmul.f32 0.2, %v2748_v7 }
  0xae   :  { %4646 = vst [vmem:[#allocation113_spill] sm:$0xff] %v3249_v30  ;;  %4648 = vst [vmem:[#allocation29_spill] sm:$0xff] %v3252_v18  ;;  %v3264_v52 = vmul.f32 0.2, %v4651_v47  ;;  %v4654_v30 = vld [vmem:[#allocation31_spill] sm:$0xff]  ;;  %vm559_vm7 = vcmp.gt.f32.partialorder %v4619_v60, 0.0 }
  0xaf   :  { %4649 = vst [vmem:[#allocation114_spill] sm:$0xff] %v3255_v59  ;;  %4650 = vst [vmem:[#allocation115_spill] sm:$0xff] %v3260_v15  ;;  %v3270_v34 = vmul.f32 0.2, %v4654_v30  ;;  %v3275_v59 = vsel %vm547_vm11, %v4604_v63, %v675_v42  ;;  %v3279_v11 = vmul.f32 0.2, %v2756_v8 }
  0xb0   :  { %4652 = vst [vmem:[#allocation30_spill] sm:$0xff] %v3264_v52  ;;  %4653 = vst [vmem:[#allocation116_spill] sm:$0xff] %v3267_v36  ;;  %v4658_v40 = vld [vmem:[#allocation32_spill] sm:$0xff]  ;;  %v3285_v52 = vmul.f32 0.2, %v2764_v13  ;;  %vm560_vm8 = vcmp.gt.f32.partialorder %v2668_v23, 0.0 }
  0xb1   :  { %4655 = vst [vmem:[#allocation31_spill] sm:$0xff] %v3270_v34  ;;  %4656 = vst [vmem:[#allocation117_spill] sm:$0xff] %v3275_v59  ;;  %v3282_v15 = vmul.f32 0.2, %v4658_v40  ;;  %v3290_v34 = vsel %vm548_vm12, %v2620_v16, %v676_v56  ;;  %v4662_v42 = vld [vmem:[#allocation34_spill] sm:$0xff]  ;;  %vm561_vm9 = vcmp.gt.f32.partialorder %v4622_v35, 0.0 }
  0xb2   :  { %4657 = vst [vmem:[#allocation118_spill] sm:$0xff] %v3279_v11  ;;  %4660 = vst [vmem:[#allocation120_spill] sm:$0xff] %v3285_v52  ;;  %v3294_v63 = vmul.f32 0.2, %v4662_v42  ;;  %v3297_v59 = vmul.f32 0.2, %v2772_v14  ;;  %v3306_v52 = vsel %vm549_vm13, %v4606_v53, %v3114_v48 }
  0xb3   :  { %4659 = vst [vmem:[#allocation119_spill] sm:$0xff] %v3282_v15  ;;  %4661 = vst [vmem:[#allocation121_spill] sm:$0xff] %v3290_v34  ;;  %v4665_v11 = vld [vmem:[#allocation36_spill] sm:$0xff]  ;;  %v3310_v16 = vmul.f32 0.2, %v2780_v19  ;;  %v4669_v56 = vld [vmem:[#allocation38_spill] sm:$0xff] }
  0xb4   :  { %4663 = vst [vmem:[#allocation122_spill] sm:$0xff] %v3294_v63  ;;  %4664 = vst [vmem:[#allocation123_spill] sm:$0xff] %v3297_v59  ;;  %v3300_v36 = vmul.f32 0.2, %v4665_v11  ;;  %v3313_v15 = vmul.f32 0.2, %v4669_v56 }
  0xb5   :  { %4667 = vst [vmem:[#allocation125_spill] sm:$0xff] %v3306_v52  ;;  %4668 = vst [vmem:[#allocation126_spill] sm:$0xff] %v3310_v16  ;;  %v3316_v63 = vmul.f32 0.2, %v2788_v20  ;;  %vm562_vm10 = vcmp.gt.f32.partialorder %v2676_v5, 0.0  ;;  %v4673_v48 = vld [vmem:[#allocation39_spill] sm:$0xff] }
  0xb6   :  { %4666 = vst [vmem:[#allocation124_spill] sm:$0xff] %v3300_v36  ;;  %4670 = vst [vmem:[#allocation127_spill] sm:$0xff] %v3313_v15  ;;  %v3322_v36 = vsel %vm550_vm14, %v2628_v22, %v3117_v55  ;;  %v3326_v53 = vmul.f32 0.2, %v4673_v48  ;;  %v3329_v59 = vmul.f32 0.2, %v2796_v25 }
  0xb7   :  { %4671 = vst [vmem:[#allocation128_spill] sm:$0xff] %v3316_v63  ;;  %4672 = vst [vmem:[#allocation129_spill] sm:$0xff] %v3322_v36  ;;  %v4676_v16 = vld [vmem:[#allocation40_spill] sm:$0xff]  ;;  %v3338_v63 = vsel %vm551_vm15, %v4607_v50, %v3120_v46  ;;  %vm563_vm11 = vcmp.gt.f32.partialorder %v4625_v45, 0.0  ;;  %v3342_v22 = vmul.f32 0.2, %v2804_v26 }
  0xb8   :  { %4674 = vst [vmem:[#allocation130_spill] sm:$0xff] %v3326_v53  ;;  %4675 = vst [vmem:[#allocation131_spill] sm:$0xff] %v3329_v59  ;;  %v3332_v56 = vmul.f32 0.2, %v4676_v16  ;;  %v4680_v55 = vld [vmem:[#allocation41_spill] sm:$0xff]  ;;  %vm564_vm12 = vcmp.gt.f32.partialorder %v2684_v12, 0.0 }
  0xb9   :  { %4678 = vst [vmem:[#allocation133_spill] sm:$0xff] %v3338_v63  ;;  %4679 = vst [vmem:[#allocation134_spill] sm:$0xff] %v3342_v22  ;;  %v3345_v15 = vmul.f32 0.2, %v4680_v55  ;;  %v3348_v53 = vmul.f32 0.2, %v2812_v31 }
  0xba   :  { %4677 = vst [vmem:[#allocation132_spill] sm:$0xff] %v3332_v56  ;;  %v3354_v56 = vsel %vm552_vm0, %v2636_v17, %v3129_v24  ;;  %v4684_v50 = vld [vmem:[#allocation42_spill] sm:$0xff]  ;;  %v3361_v59 = vmul.f32 0.2, %v2820_v32  ;;  %v4687_v22 = vld [vmem:[#allocation43_spill] sm:$0xff]  ;;  %vm568_vm13 = vcmp.gt.f32.partialorder %v2700_v10, 0.0 }
  0xbb   :  { %4681 = vst [vmem:[#allocation135_spill] sm:$0xff] %v3345_v15  ;;  %4682 = vst [vmem:[#allocation136_spill] sm:$0xff] %v3348_v53  ;;  %v3358_v46 = vmul.f32 0.2, %v4684_v50  ;;  %v3364_v55 = vmul.f32 0.2, %v4687_v22  ;;  %v3370_v53 = vsel %vm553_vm1, %v4609_v21, %v3132_v39 }
  0xbc   :  { %4683 = vst [vmem:[#allocation137_spill] sm:$0xff] %v3354_v56  ;;  %4686 = vst [vmem:[#allocation139_spill] sm:$0xff] %v3361_v59  ;;  %v3375_v17 = vmul.f32 0.2, %v2828_v37  ;;  %v4690_v24 = vld [vmem:[#allocation44_spill] sm:$0xff]  ;;  %vm600_vm15 = vcmp.gt.f32.partialorder %v2828_v37, 0.0 }
  0xbd   :  { %4685 = vst [vmem:[#allocation138_spill] sm:$0xff] %v3358_v46  ;;  %4688 = vst [vmem:[#allocation140_spill] sm:$0xff] %v3364_v55  ;;  %v3378_v46 = vmul.f32 0.2, %v4690_v24  ;;  %v3381_v59 = vmul.f32 0.2, %v2836_v38 }
  0xbe   :  { %4689 = vst [vmem:[#allocation141_spill] sm:$0xff] %v3370_v53  ;;  %v4691_v55 = vld [vmem:[#allocation14_spill] sm:$0xff]  ;;  %vm601_vm0 = vcmp.gt.f32.partialorder %v4690_v24, 0.0  ;;  %v4694_v21 = vld [vmem:[#allocation63_spill] sm:$0xff]  ;;  %v4695_v22 = vld [vmem:[#allocation45_spill] sm:$0xff]  ;;  %vm570_vm1 = vcmp.gt.f32.partialorder %v2708_v0, 0.0 }
  0xbf   :  { %v3387_v15 = vsel %vm554_vm2, %v2644_v41, %v4691_v55  ;;  %v4693_v39 = vld [vmem:[#allocation62_spill] sm:$0xff]  ;;  %vm633_vm14 = vcmp.gt.f32.partialorder %v4694_v21, 0.0  ;;  %v3394_v32 = vmul.f32 0.2, %v4695_v22  ;;  %v4696_v50 = vld [vmem:[#allocation84_spill] sm:$0xff]  ;;  %v4700_v55 = vld [vmem:[#allocation85_spill] sm:$0xff] }
  0xc0   :  { %4692 = vst [vmem:[#allocation44_spill] sm:$0xff] %v3387_v15  ;;  %v3397_v31 = vmul.f32 0.2, %v4696_v50  ;;  %v4697_v26 = vld [vmem:[#allocation46_spill] sm:$0xff]  ;;  %v4698_v53 = vld [vmem:[#allocation16_spill] sm:$0xff]  ;;  %v4701_v25 = vld [vmem:[#allocation47_spill] sm:$0xff] }
  0xc1   :  { %v3400_v16 = vmul.f32 0.2, %v4697_v26  ;;  %v3406_v41 = vsel %vm555_vm3, %v4612_v28, %v4698_v53  ;;  %v3411_v15 = vmul.f32 0.2, %v4700_v55  ;;  %v3414_v56 = vmul.f32 0.2, %v4701_v25 }
  0xc2   :  { %4699 = vst [vmem:[#allocation14_spill] sm:$0xff] %v3406_v41  ;;  %v4702_v48 = vld [vmem:[#allocation86_spill] sm:$0xff]  ;;  %v4704_v20 = vld [vmem:[#allocation17_spill] sm:$0xff]  ;;  %vm602_vm3 = vcmp.gt.f32.partialorder %v2836_v38, 0.0  ;;  %v4707_v53 = vld [vmem:[#allocation48_spill] sm:$0xff]  ;;  %vm605_vm2 = vcmp.gt.f32.partialorder %v4697_v26, 0.0 }
  0xc3   :  { %v3417_v63 = vmul.f32 0.2, %v4702_v48  ;;  %v3423_v36 = vsel %vm556_vm4, %v2652_v33, %v4704_v20  ;;  %v4706_v28 = vld [vmem:[#allocation2_spill] sm:$0xff]  ;;  %v3428_v41 = vmul.f32 0.2, %v4707_v53  ;;  %v4709_v52 = vld [vmem:[#allocation87_spill] sm:$0xff] }
  0xc4   :  { %4705 = vst [vmem:[#allocation63_spill] sm:$0xff] %v3423_v36  ;;  %v3431_v19 = vmul.f32 0.2, %v4709_v52  ;;  %v4711_v34 = vld [vmem:[#allocation49_spill] sm:$0xff]  ;;  %v4713_v14 = vld [vmem:[#allocation18_spill] sm:$0xff]  ;;  %vm571_vm4 = vcmp.gt.f32.partialorder %v4637_v58, 0.0 }
  0xc5   :  { %4703 = vst [vmem:[#allocation62_spill] sm:$0xff] %v3417_v63  ;;  %4708 = vst [vmem:[#allocation45_spill] sm:$0xff] %v3428_v41  ;;  %v3434_v11 = vmul.f32 0.2, %v4711_v34  ;;  %v3440_v42 = vsel %vm557_vm5, %v4615_v54, %v4713_v14  ;;  %v4715_v33 = vld [vmem:[#allocation88_spill] sm:$0xff]  ;;  %v4717_v36 = vld [vmem:[#allocation50_spill] sm:$0xff] }
  0xc6   :  { %4710 = vst [vmem:[#allocation84_spill] sm:$0xff] %v3431_v19  ;;  %4714 = vst [vmem:[#allocation16_spill] sm:$0xff] %v3440_v42  ;;  %v3444_v20 = vmul.f32 0.2, %v4715_v33  ;;  %v3447_v13 = vmul.f32 0.2, %v4717_v36 }
  0xc7   :  { %4712 = vst [vmem:[#allocation46_spill] sm:$0xff] %v3434_v11  ;;  %v4719_v41 = vld [vmem:[#allocation89_spill] sm:$0xff]  ;;  %v4721_v19 = vld [vmem:[#allocation102_spill] sm:$0xff]  ;;  %vm603_vm5 = vcmp.gt.f32.partialorder %v4695_v22, 0.0  ;;  %v4723_v14 = vld [vmem:[#allocation64_spill] sm:$0xff] }
  0xc8   :  { %4716 = vst [vmem:[#allocation85_spill] sm:$0xff] %v3444_v20  ;;  %4718 = vst [vmem:[#allocation47_spill] sm:$0xff] %v3447_v13  ;;  %v3450_v40 = vmul.f32 0.2, %v4719_v41  ;;  %v3456_v11 = vsel %vm558_vm6, %v2660_v9, %v4721_v19  ;;  %v4724_v54 = vld [vmem:[#allocation51_spill] sm:$0xff]  ;;  %v4726_v20 = vld [vmem:[#allocation90_spill] sm:$0xff] }
  0xc9   :  { %4722 = vst [vmem:[#allocation17_spill] sm:$0xff] %v3456_v11  ;;  %v3461_v42 = vmul.f32 0.2, %v4724_v54  ;;  %v3464_v18 = vmul.f32 0.2, %v4726_v20  ;;  %v4728_v13 = vld [vmem:[#allocation52_spill] sm:$0xff] }
  0xca   :  { %4720 = vst [vmem:[#allocation86_spill] sm:$0xff] %v3450_v40  ;;  %v3467_v63 = vmul.f32 0.2, %v4728_v13  ;;  %v3473_v40 = vsel %vm559_vm7, %v4619_v60, %v3162_v43  ;;  %vm572_vm6 = vcmp.gt.f32.partialorder %v2716_v1, 0.0  ;;  %v4731_v9 = vld [vmem:[#allocation91_spill] sm:$0xff]  ;;  %v4733_v11 = vld [vmem:[#allocation53_spill] sm:$0xff] }
  0xcb   :  { %4725 = vst [vmem:[#allocation2_spill] sm:$0xff] %v3461_v42  ;;  %4727 = vst [vmem:[#allocation48_spill] sm:$0xff] %v3464_v18  ;;  %v3477_v19 = vmul.f32 0.2, %v4731_v9  ;;  %v3480_v54 = vmul.f32 0.2, %v4733_v11 }
  0xcc   :  { %4729 = vst [vmem:[#allocation87_spill] sm:$0xff] %v3467_v63  ;;  %4730 = vst [vmem:[#allocation49_spill] sm:$0xff] %v3473_v40  ;;  %v4735_v42 = vld [vmem:[#allocation92_spill] sm:$0xff]  ;;  %v4737_v18 = vld [vmem:[#allocation19_spill] sm:$0xff]  ;;  %vm604_vm7 = vcmp.gt.f32.partialorder %v4696_v50, 0.0 }
  0xcd   :  { %4732 = vst [vmem:[#allocation18_spill] sm:$0xff] %v3477_v19  ;;  %4734 = vst [vmem:[#allocation88_spill] sm:$0xff] %v3480_v54  ;;  %v3483_v20 = vmul.f32 0.2, %v4735_v42  ;;  %v3489_v63 = vsel %vm560_vm8, %v2668_v23, %v4737_v18  ;;  %v4739_v43 = vld [vmem:[#allocation3_spill] sm:$0xff]  ;;  %v4740_v60 = vld [vmem:[#allocation54_spill] sm:$0xff] }
  0xce   :  { %4738 = vst [vmem:[#allocation89_spill] sm:$0xff] %v3489_v63  ;;  %v3494_v40 = vmul.f32 0.2, %v4740_v60  ;;  %v4742_v19 = vld [vmem:[#allocation93_spill] sm:$0xff]  ;;  %v4744_v54 = vld [vmem:[#allocation55_spill] sm:$0xff]  ;;  %vm573_vm8 = vcmp.gt.f32.partialorder %v4640_v27, 0.0 }
  0xcf   :  { %4736 = vst [vmem:[#allocation50_spill] sm:$0xff] %v3483_v20  ;;  %v3497_v9 = vmul.f32 0.2, %v4742_v19  ;;  %v3500_v11 = vmul.f32 0.2, %v4744_v54  ;;  %v4746_v20 = vld [vmem:[#allocation20_spill] sm:$0xff] }
  0xd0   :  { %4741 = vst [vmem:[#allocation102_spill] sm:$0xff] %v3494_v40  ;;  %v3506_v42 = vsel %vm561_vm9, %v4622_v35, %v4746_v20  ;;  %v4748_v23 = vld [vmem:[#allocation94_spill] sm:$0xff]  ;;  %v760_v63 = vmul.f32 0.2, %v4693_v39  ;;  %v761_v40 = vmul.f32 0.2, %v4694_v21 }
  0xd1   :  { %4743 = vst [vmem:[#allocation64_spill] sm:$0xff] %v3497_v9  ;;  %4745 = vst [vmem:[#allocation19_spill] sm:$0xff] %v3500_v11  ;;  %v3510_v18 = vmul.f32 0.2, %v4748_v23  ;;  %v4750_v19 = vld [vmem:[#allocation104_spill] sm:$0xff]  ;;  %v4752_v9 = vld [vmem:[#allocation65_spill] sm:$0xff] }
  0xd2   :  { %4747 = vst [vmem:[#allocation3_spill] sm:$0xff] %v3506_v42  ;;  %v3518_v11 = vsel %vm562_vm10, %v2676_v5, %v4750_v19  ;;  %v4753_v35 = vld [vmem:[#allocation56_spill] sm:$0xff]  ;;  %v4755_v42 = vld [vmem:[#allocation95_spill] sm:$0xff]  ;;  %v4759_v60 = vld [vmem:[#allocation21_spill] sm:$0xff]  ;;  %vm606_vm9 = vcmp.gt.f32.partialorder %v4700_v55, 0.0  ;;  %vm4770_vm10 = vcmp.gt.f32.partialorder %v4634_v6, 0.0 }
  0xd3   :  { %4749 = vst [vmem:[#allocation20_spill] sm:$0xff] %v3510_v18  ;;  %4751 = vst [vmem:[#allocation104_spill] sm:$0xff] %v3518_v11  ;;  %v3523_v20 = vmul.f32 0.2, %v4753_v35  ;;  %v3526_v23 = vmul.f32 0.2, %v4755_v42  ;;  %v3535_v13 = vsel %vm563_vm11, %v4625_v45, %v4759_v60 }
  0xd4   :  { %v4757_v18 = vld [vmem:[#allocation57_spill] sm:$0xff]  ;;  %4760 = vst [vmem:[#allocation21_spill] sm:$0xff] %v3535_v13  ;;  %v4761_v5 = vld [vmem:[#allocation58_spill] sm:$0xff]  ;;  %v4763_v11 = vld [vmem:[#allocation59_spill] sm:$0xff] }
  0xd5   :  { %4754 = vst [vmem:[#allocation65_spill] sm:$0xff] %v3523_v20  ;;  %4756 = vst [vmem:[#allocation95_spill] sm:$0xff] %v3526_v23  ;;  %v3529_v54 = vmul.f32 0.2, %v4757_v18  ;;  %v3539_v19 = vmul.f32 0.2, %v4761_v5 }
  0xd6   :  { %v3542_v35 = vmul.f32 0.2, %v4763_v11  ;;  %v762_v20 = vmul.f32 0.2, %v4706_v28  ;;  %v4765_v23 = vld [vmem:[#allocation106_spill] sm:$0xff]  ;;  %v4767_v45 = vld [vmem:[#allocation4_spill] sm:$0xff] }
  0xd7   :  { %4758 = vst [vmem:[#allocation57_spill] sm:$0xff] %v3529_v54  ;;  %4762 = vst [vmem:[#allocation58_spill] sm:$0xff] %v3539_v19  ;;  %v3549_v54 = vsel %vm564_vm12, %v2684_v12, %v4765_v23  ;;  %vm638_vm11 = vcmp.gt.f32.partialorder %v4767_v45, 0.0  ;;  %v4768_v60 = vld [vmem:[#allocation60_spill] sm:$0xff]  ;;  %v763_v19 = vmul.f32 0.2, %v4723_v14  ;;  %v825_v12 = vsel %vm4770_vm10, %v4634_v6, %v3210_v44 }
  0xd8   :  { %4764 = vst [vmem:[#allocation59_spill] sm:$0xff] %v3542_v35  ;;  %4766 = vst [vmem:[#allocation106_spill] sm:$0xff] %v3549_v54  ;;  %v3554_v13 = vmul.f32 0.2, %v4768_v60  ;;  %v824_v35 = vsel %vm568_vm13, %v2700_v10, %v3207_v51  ;;  %v856_v23 = vsel %vm600_vm15, %v2828_v37, %v3375_v17  ;;  %vm4771_vm13 = vcmp.gt.f32.partialorder %v4693_v39, 0.0  ;;  %v4772_v51 = vld [vmem:[#allocation66_spill] sm:$0xff] }
  0xd9   :  { %v888_v10 = vsel %vm4771_vm13, %v4693_v39, %v760_v63  ;;  %v889_v44 = vsel %vm633_vm14, %v4694_v21, %v761_v40  ;;  %vm607_vm10 = vcmp.gt.f32.partialorder %v4701_v25, 0.0  ;;  %vm639_vm12 = vcmp.gt.f32.partialorder %v4772_v51, 0.0  ;;  %v4773_v6 = vld [vmem:[#allocation61_spill] sm:$0xff]  ;;  %v4778_v39 = vld [vmem:[#allocation78_spill] sm:$0xff] }
  0xda   :  { %4769 = vst [vmem:[#allocation4_spill] sm:$0xff] %v3554_v13  ;;  %v857_v13 = vsel %vm601_vm0, %v4690_v24, %v3378_v46  ;;  %v3583_v54 = vmul.f32 0.2, %v4773_v6  ;;  %v764_v37 = vmul.f32 0.2, %v4739_v43  ;;  %vm4775_vm15 = vcmp.gt.f32.partialorder %v4629_v61, 0.0 }
  0xdb   :  { %v3590_v46 = vsel %vm4775_vm15, %v4629_v61, %v3192_v57  ;;  %v4776_v63 = vld [vmem:[#allocation109_spill] sm:$0xff]  ;;  %vm576_vm14 = vcmp.gt.f32.partialorder %v2732_v3, 0.0  ;;  %v858_v17 = vsel %vm602_vm3, %v2836_v38, %v3381_v59  ;;  %vm4777_vm0 = vcmp.gt.f32.partialorder %v4706_v28, 0.0 }
  0xdc   :  { %4774 = vst [vmem:[#allocation60_spill] sm:$0xff] %v3583_v54  ;;  %v826_v40 = vsel %vm570_vm1, %v2708_v0, %v4776_v63  ;;  %v890_v24 = vsel %vm4777_vm0, %v4706_v28, %v762_v20  ;;  %v4779_v21 = vld [vmem:[#allocation13_spill] sm:$0xff]  ;;  %v957_v61 = vadd.f32 %v825_v12, %v824_v35  ;;  %vm608_vm13 = vcmp.gt.f32.partialorder %v4702_v48, 0.0  ;;  %v4782_v20 = vld [vmem:[#allocation15_spill] sm:$0xff] }
  0xdd   :  { %v920_v57 = vadd.f32 %v4779_v21, %v4778_v39  ;;  %v4780_v54 = vld [vmem:[#allocation5_spill] sm:$0xff]  ;;  %v765_v0 = vmul.f32 0.2, %v4752_v9  ;;  %v827_v63 = vsel %vm571_vm4, %v4637_v58, %v3222_v29  ;;  %v994_v38 = vadd.f32 %v857_v13, %v856_v23  ;;  %v4783_v21 = vld [vmem:[#allocation67_spill] sm:$0xff]  ;;  %v4784_v13 = vld [vmem:[#allocation26_spill] sm:$0xff] }
  0xde   :  { %vm640_vm15 = vcmp.gt.f32.partialorder %v4780_v54, 0.0  ;;  %v1031_v59 = vadd.f32 %v889_v44, %v888_v10  ;;  %vm577_vm1 = vcmp.gt.f32.partialorder %v4647_v62, 0.0  ;;  %v859_v28 = vsel %vm603_vm5, %v4695_v22, %v3394_v32 }
  0xdf   :  { %vm4781_vm3 = vcmp.gt.f32.partialorder %v4723_v14, 0.0  ;;  %v921_v12 = vadd.f32 %v920_v57, %v4782_v20  ;;  %v958_v39 = vadd.f32 %v957_v61, %v826_v40  ;;  %vm609_vm0 = vcmp.gt.f32.partialorder %v4707_v53, 0.0  ;;  %v4787_v40 = vld [vmem:[#allocation6_spill] sm:$0xff] }
  0xe0   :  { %v891_v35 = vsel %vm4781_vm3, %v4723_v14, %v763_v19  ;;  %v766_v29 = vmul.f32 0.2, %v4767_v45  ;;  %v828_v58 = vsel %vm572_vm6, %v2716_v1, %v4784_v13  ;;  %v995_v23 = vadd.f32 %v994_v38, %v858_v17  ;;  %v4786_v19 = vld [vmem:[#allocation101_spill] sm:$0xff]  ;;  %v4788_v17 = vld [vmem:[#allocation27_spill] sm:$0xff]  ;;  %v4791_v38 = vld [vmem:[#allocation68_spill] sm:$0xff] }
  0xe1   :  { %v1032_v32 = vadd.f32 %v1031_v59, %v890_v24  ;;  %vm578_vm5 = vcmp.gt.f32.partialorder %v2740_v4, 0.0  ;;  %v860_v22 = vsel %vm604_vm7, %v4696_v50, %v3397_v31  ;;  %vm4785_vm3 = vcmp.gt.f32.partialorder %v4739_v43, 0.0  ;;  %v4792_v59 = vld [vmem:[#allocation111_spill] sm:$0xff]  ;;  %v4796_v13 = vld [vmem:[#allocation28_spill] sm:$0xff] }
  0xe2   :  { %v892_v14 = vsel %vm4785_vm3, %v4739_v43, %v764_v37  ;;  %v922_v10 = vadd.f32 %v921_v12, %v4786_v19  ;;  %v959_v44 = vadd.f32 %v958_v39, %v827_v63  ;;  %vm610_vm4 = vcmp.gt.f32.partialorder %v4709_v52, 0.0  ;;  %v4790_v37 = vld [vmem:[#allocation103_spill] sm:$0xff]  ;;  %v4795_v39 = vld [vmem:[#allocation96_spill] sm:$0xff]  ;;  %v4800_v19 = vld [vmem:[#allocation113_spill] sm:$0xff] }
  0xe3   :  { %v767_v1 = vmul.f32 0.2, %v4772_v51  ;;  %v829_v24 = vsel %vm573_vm8, %v4640_v27, %v4788_v17  ;;  %v996_v57 = vadd.f32 %v995_v23, %v859_v28  ;;  %v1033_v31 = vadd.f32 %v1032_v32, %v891_v35  ;;  %v4802_v17 = vld [vmem:[#allocation25_spill] sm:$0xff] }
  0xe4   :  { %v861_v50 = vsel %vm605_vm2, %v4697_v26, %v3400_v16  ;;  %vm4789_vm3 = vcmp.gt.f32.partialorder %v4752_v9, 0.0  ;;  %v923_v61 = vadd.f32 %v922_v10, %v4790_v37  ;;  %v960_v63 = vadd.f32 %v959_v44, %v828_v58 }
  0xe5   :  { %v893_v43 = vsel %vm4789_vm3, %v4752_v9, %v765_v0  ;;  %vm611_vm6 = vcmp.gt.f32.partialorder %v4711_v34, 0.0  ;;  %vm643_vm8 = vcmp.gt.f32.partialorder %v4791_v38, 0.0  ;;  %v768_v27 = vmul.f32 0.2, %v4780_v54  ;;  %v4794_v0 = vld [vmem:[#allocation105_spill] sm:$0xff] }
  0xe6   :  { %vm4793_vm7 = vcmp.gt.f32.partialorder %v2724_v2, 0.0  ;;  %v997_v35 = vadd.f32 %v996_v57, %v860_v22  ;;  %v1034_v26 = vadd.f32 %v1033_v31, %v892_v14  ;;  %v862_v16 = vsel %vm606_vm9, %v4700_v55, %v3411_v15  ;;  %v4799_v14 = vld [vmem:[#allocation7_spill] sm:$0xff]  ;;  %v4803_v31 = vld [vmem:[#allocation8_spill] sm:$0xff] }
  0xe7   :  { %v830_v28 = vsel %vm4793_vm7, %v2724_v2, %v4792_v59  ;;  %v894_v9 = vsel %vm638_vm11, %v4767_v45, %v766_v29  ;;  %v924_v20 = vadd.f32 %v923_v61, %v4794_v0  ;;  %v961_v12 = vadd.f32 %v960_v63, %v829_v24  ;;  %v4798_v29 = vld [vmem:[#allocation107_spill] sm:$0xff]  ;;  %v4805_v61 = vld [vmem:[#allocation32_spill] sm:$0xff]  ;;  %v4806_v63 = vld [vmem:[#allocation45_spill] sm:$0xff] }
  0xe8   :  { %vm612_vm3 = vcmp.gt.f32.partialorder %v4715_v33, 0.0  ;;  %vm644_vm7 = vcmp.gt.f32.partialorder %v4795_v39, 0.0  ;;  %v769_v2 = vmul.f32 0.2, %v4783_v21  ;;  %vm4797_vm2 = vcmp.gt.f32.partialorder %v4643_v49, 0.0  ;;  %v4808_v59 = vld [vmem:[#allocation110_spill] sm:$0xff] }
  0xe9   :  { %v831_v58 = vsel %vm4797_vm2, %v4643_v49, %v4796_v13  ;;  %v998_v23 = vadd.f32 %v997_v35, %v861_v50  ;;  %v1035_v15 = vadd.f32 %v1034_v26, %v893_v43  ;;  %vm581_vm9 = vcmp.gt.f32.partialorder %v4654_v30, 0.0  ;;  %v4804_v50 = vld [vmem:[#allocation29_spill] sm:$0xff]  ;;  %v4809_v26 = vld [vmem:[#allocation51_spill] sm:$0xff]  ;;  %v4813_v13 = vld [vmem:[#allocation84_spill] sm:$0xff] }
  0xea   :  { %v863_v55 = vsel %vm607_vm10, %v4701_v25, %v3414_v56  ;;  %v895_v45 = vsel %vm639_vm12, %v4772_v51, %v767_v1  ;;  %v925_v32 = vadd.f32 %v924_v20, %v4798_v29  ;;  %v962_v22 = vadd.f32 %v961_v12, %v830_v28  ;;  %v4801_v56 = vld [vmem:[#allocation62_spill] sm:$0xff]  ;;  %v4812_v12 = vld [vmem:[#allocation33_spill] sm:$0xff] }
  0xeb   :  { %vm613_vm11 = vcmp.gt.f32.partialorder %v4717_v36, 0.0  ;;  %vm645_vm2 = vcmp.gt.f32.partialorder %v4799_v14, 0.0  ;;  %v770_v49 = vmul.f32 0.2, %v4787_v40  ;;  %v832_v10 = vsel %vm576_vm14, %v2732_v3, %v4800_v19  ;;  %v4818_v29 = vld [vmem:[#allocation30_spill] sm:$0xff] }
  0xec   :  { %v999_v44 = vadd.f32 %v998_v23, %v862_v16  ;;  %v1036_v25 = vadd.f32 %v1035_v15, %v894_v9  ;;  %vm582_vm10 = vcmp.gt.f32.partialorder %v2756_v8, 0.0  ;;  %v864_v51 = vsel %vm608_vm13, %v4702_v48, %v4801_v56  ;;  %v4810_v16 = vld [vmem:[#allocation69_spill] sm:$0xff]  ;;  %v4811_v9 = vld [vmem:[#allocation114_spill] sm:$0xff] }
  0xed   :  { %v896_v1 = vsel %vm640_vm15, %v4780_v54, %v768_v27  ;;  %v926_v24 = vadd.f32 %v925_v32, %v4802_v17  ;;  %v963_v57 = vadd.f32 %v962_v22, %v831_v58  ;;  %vm614_vm12 = vcmp.gt.f32.partialorder %v4719_v41, 0.0  ;;  %v4815_v58 = vld [vmem:[#allocation112_spill] sm:$0xff]  ;;  %v4820_v19 = vld [vmem:[#allocation34_spill] sm:$0xff] }
  0xee   :  { %v771_v3 = vmul.f32 0.2, %v4791_v38  ;;  %v833_v43 = vsel %vm577_vm1, %v4647_v62, %v4804_v50  ;;  %v1000_v37 = vadd.f32 %v999_v44, %v863_v55  ;;  %v1037_v48 = vadd.f32 %v1036_v25, %v895_v45  ;;  %v4816_v55 = vld [vmem:[#allocation90_spill] sm:$0xff]  ;;  %v4817_v45 = vld [vmem:[#allocation97_spill] sm:$0xff]  ;;  %v4822_v44 = vld [vmem:[#allocation115_spill] sm:$0xff] }
  0xef   :  { %vm583_vm13 = vcmp.gt.f32.partialorder %v4805_v61, 0.0  ;;  %v865_v54 = vsel %vm609_vm0, %v4707_v53, %v4806_v63  ;;  %vm4807_vm15 = vcmp.gt.f32.partialorder %v4783_v21, 0.0  ;;  %v927_v28 = vadd.f32 %v926_v24, %v4808_v59  ;;  %v4825_v17 = vld [vmem:[#allocation116_spill] sm:$0xff]  ;;  %v4827_v50 = vld [vmem:[#allocation35_spill] sm:$0xff] }
  0xf0   :  { %v897_v27 = vsel %vm4807_vm15, %v4783_v21, %v769_v2  ;;  %v964_v35 = vadd.f32 %v963_v57, %v832_v10  ;;  %vm615_vm14 = vcmp.gt.f32.partialorder %v4809_v26, 0.0  ;;  %v772_v62 = vmul.f32 0.2, %v4795_v39  ;;  %v4821_v10 = vld [vmem:[#allocation46_spill] sm:$0xff]  ;;  %v4832_v59 = vld [vmem:[#allocation31_spill] sm:$0xff] }
  0xf1   :  { %v834_v0 = vsel %vm578_vm5, %v2740_v4, %v4811_v9  ;;  %v1001_v20 = vadd.f32 %v1000_v37, %v864_v51  ;;  %v1038_v53 = vadd.f32 %v1037_v48, %v896_v1  ;;  %v866_v21 = vsel %vm610_vm4, %v4709_v52, %v4813_v13  ;;  %v4823_v51 = vld [vmem:[#allocation52_spill] sm:$0xff]  ;;  %v4824_v1 = vld [vmem:[#allocation9_spill] sm:$0xff] }
  0xf2   :  { %vm4814_vm15 = vcmp.gt.f32.partialorder %v4787_v40, 0.0  ;;  %v928_v23 = vadd.f32 %v927_v28, %v4815_v58  ;;  %v965_v15 = vadd.f32 %v964_v35, %v833_v43  ;;  %vm616_vm1 = vcmp.gt.f32.partialorder %v4816_v55, 0.0  ;;  %v4828_v43 = vld [vmem:[#allocation85_spill] sm:$0xff]  ;;  %v4833_v9 = vld [vmem:[#allocation36_spill] sm:$0xff]  ;;  %v4838_v58 = vld [vmem:[#allocation118_spill] sm:$0xff] }
  0xf3   :  { %v898_v2 = vsel %vm4814_vm15, %v4787_v40, %v770_v49  ;;  %vm648_vm5 = vcmp.gt.f32.partialorder %v4817_v45, 0.0  ;;  %v773_v4 = vmul.f32 0.2, %v4799_v14  ;;  %vm4819_vm0 = vcmp.gt.f32.partialorder %v4651_v47, 0.0  ;;  %v4829_v37 = vld [vmem:[#allocation117_spill] sm:$0xff] }
  0xf4   :  { %v835_v32 = vsel %vm4819_vm0, %v4651_v47, %v4818_v29  ;;  %v1002_v22 = vadd.f32 %v1001_v20, %v865_v54  ;;  %v1039_v52 = vadd.f32 %v1038_v53, %v897_v27  ;;  %v867_v40 = vsel %vm611_vm6, %v4711_v34, %v4821_v10  ;;  %v4830_v54 = vld [vmem:[#allocation91_spill] sm:$0xff]  ;;  %v4831_v27 = vld [vmem:[#allocation98_spill] sm:$0xff]  ;;  %v4835_v20 = vld [vmem:[#allocation121_spill] sm:$0xff] }
  0xf5   :  { %v899_v49 = vsel %vm643_vm8, %v4791_v38, %v771_v3  ;;  %v929_v25 = vadd.f32 %v928_v23, %v4822_v44  ;;  %v966_v56 = vadd.f32 %v965_v15, %v834_v0  ;;  %vm617_vm15 = vcmp.gt.f32.partialorder %v4823_v51, 0.0  ;;  %v4834_v0 = vld [vmem:[#allocation47_spill] sm:$0xff]  ;;  %v4839_v29 = vld [vmem:[#allocation37_spill] sm:$0xff] }
  0xf6   :  { %vm649_vm0 = vcmp.gt.f32.partialorder %v4824_v1, 0.0  ;;  %v774_v47 = vmul.f32 0.2, %v4803_v31  ;;  %vm4826_vm4 = vcmp.gt.f32.partialorder %v2748_v7, 0.0  ;;  %v1003_v57 = vadd.f32 %v1002_v22, %v866_v21  ;;  %v4836_v21 = vld [vmem:[#allocation53_spill] sm:$0xff]  ;;  %v4845_v44 = vld [vmem:[#allocation119_spill] sm:$0xff] }
  0xf7   :  { %v836_v24 = vsel %vm4826_vm4, %v2748_v7, %v4825_v17  ;;  %v1040_v34 = vadd.f32 %v1039_v52, %v898_v2  ;;  %vm586_vm6 = vcmp.gt.f32.partialorder %v4827_v50, 0.0  ;;  %v868_v38 = vsel %vm612_vm3, %v4715_v33, %v4828_v43  ;;  %v4837_v2 = vld [vmem:[#allocation70_spill] sm:$0xff]  ;;  %v4842_v22 = vld [vmem:[#allocation125_spill] sm:$0xff] }
  0xf8   :  { %v900_v3 = vsel %vm644_vm7, %v4795_v39, %v772_v62  ;;  %v930_v48 = vadd.f32 %v929_v25, %v4829_v37  ;;  %v967_v63 = vadd.f32 %v966_v56, %v835_v32  ;;  %vm618_vm8 = vcmp.gt.f32.partialorder %v4830_v54, 0.0  ;;  %v4840_v32 = vld [vmem:[#allocation86_spill] sm:$0xff]  ;;  %v4852_v37 = vld [vmem:[#allocation120_spill] sm:$0xff] }
  0xf9   :  { %vm650_vm4 = vcmp.gt.f32.partialorder %v4831_v27, 0.0  ;;  %v775_v7 = vmul.f32 0.2, %v4810_v16  ;;  %v837_v28 = vsel %vm581_vm9, %v4654_v30, %v4832_v59  ;;  %v1004_v35 = vadd.f32 %v1003_v57, %v867_v40  ;;  %v4843_v40 = vld [vmem:[#allocation92_spill] sm:$0xff]  ;;  %v4846_v17 = vld [vmem:[#allocation38_spill] sm:$0xff]  ;;  %v4849_v57 = vld [vmem:[#allocation129_spill] sm:$0xff] }
  0xfa   :  { %v1041_v33 = vadd.f32 %v1040_v34, %v899_v49  ;;  %vm587_vm3 = vcmp.gt.f32.partialorder %v4833_v9, 0.0  ;;  %v869_v39 = vsel %vm613_vm11, %v4717_v36, %v4834_v0  ;;  %v901_v62 = vsel %vm645_vm2, %v4799_v14, %v773_v4  ;;  %v4844_v49 = vld [vmem:[#allocation99_spill] sm:$0xff] }
  0xfb   :  { %v931_v53 = vadd.f32 %v930_v48, %v4835_v20  ;;  %v968_v13 = vadd.f32 %v967_v63, %v836_v24  ;;  %vm619_vm7 = vcmp.gt.f32.partialorder %v4836_v21, 0.0  ;;  %v776_v30 = vmul.f32 0.2, %v4817_v45  ;;  %v4847_v24 = vld [vmem:[#allocation2_spill] sm:$0xff]  ;;  %v4854_v59 = vld [vmem:[#allocation79_spill] sm:$0xff] }
  0xfc   :  { %v838_v23 = vsel %vm582_vm10, %v2756_v8, %v4838_v58  ;;  %v1005_v15 = vadd.f32 %v1004_v35, %v868_v38  ;;  %v1042_v36 = vadd.f32 %v1041_v33, %v900_v3  ;;  %vm588_vm11 = vcmp.gt.f32.partialorder %v4839_v29, 0.0  ;;  %v4850_v38 = vld [vmem:[#allocation54_spill] sm:$0xff]  ;;  %v4856_v35 = vld [vmem:[#allocation133_spill] sm:$0xff]  ;;  %v4861_v58 = vld [vmem:[#allocation39_spill] sm:$0xff] }
  0xfd   :  { %v870_v14 = vsel %vm614_vm12, %v4719_v41, %v4840_v32  ;;  %vm4841_vm2 = vcmp.gt.f32.partialorder %v4803_v31, 0.0  ;;  %v932_v52 = vadd.f32 %v931_v53, %v4842_v22  ;;  %v969_v10 = vadd.f32 %v968_v13, %v837_v28  ;;  %v4851_v3 = vld [vmem:[#allocation10_spill] sm:$0xff]  ;;  %v4855_v28 = vld [vmem:[#allocation48_spill] sm:$0xff]  ;;  %v4866_v22 = vld [vmem:[#allocation123_spill] sm:$0xff] }
  0xfe   :  { %v902_v4 = vsel %vm4841_vm2, %v4803_v31, %v774_v47  ;;  %vm620_vm9 = vcmp.gt.f32.partialorder %v4843_v40, 0.0  ;;  %v777_v8 = vmul.f32 0.2, %v4824_v1  ;;  %v839_v25 = vsel %vm583_vm13, %v4805_v61, %v4845_v44  ;;  %v4859_v20 = vld [vmem:[#allocation122_spill] sm:$0xff]  ;;  %v4867_v44 = vld [vmem:[#allocation80_spill] sm:$0xff] }
  0xff   :  { %v1006_v56 = vadd.f32 %v1005_v15, %v869_v39  ;;  %v1043_v41 = vadd.f32 %v1042_v36, %v901_v62  ;;  %v871_v31 = vsel %vm615_vm14, %v4809_v26, %v4847_v24  ;;  %vm4848_vm2 = vcmp.gt.f32.partialorder %v4810_v16, 0.0  ;;  %v4857_v39 = vld [vmem:[#allocation93_spill] sm:$0xff]  ;;  %v4858_v62 = vld [vmem:[#allocation71_spill] sm:$0xff] }
 0x100   :  { %v903_v47 = vsel %vm4848_vm2, %v4810_v16, %v775_v7  ;;  %v933_v34 = vadd.f32 %v932_v52, %v4849_v57  ;;  %v970_v43 = vadd.f32 %v969_v10, %v838_v23  ;;  %vm621_vm10 = vcmp.gt.f32.partialorder %v4850_v38, 0.0  ;;  %v4862_v23 = vld [vmem:[#allocation87_spill] sm:$0xff]  ;;  %v4863_v15 = vld [vmem:[#allocation137_spill] sm:$0xff]  ;;  %v4872_v57 = vld [vmem:[#allocation124_spill] sm:$0xff] }
 0x101   :  { %vm653_vm13 = vcmp.gt.f32.partialorder %v4851_v3, 0.0  ;;  %v778_v61 = vmul.f32 0.2, %v4831_v27  ;;  %vm4853_vm12 = vcmp.gt.f32.partialorder %v4812_v12, 0.0  ;;  %v1007_v63 = vadd.f32 %v1006_v56, %v870_v14  ;;  %v4864_v14 = vld [vmem:[#allocation55_spill] sm:$0xff]  ;;  %v4869_v56 = vld [vmem:[#allocation141_spill] sm:$0xff] }
 0x102   :  { %v840_v48 = vsel %vm4853_vm12, %v4812_v12, %v4852_v37  ;;  %v1044_v26 = vadd.f32 %v1043_v41, %v902_v4  ;;  %v872_v16 = vsel %vm616_vm1, %v4816_v55, %v4855_v28  ;;  %v904_v7 = vsel %vm648_vm5, %v4817_v45, %v776_v30  ;;  %v4865_v4 = vld [vmem:[#allocation72_spill] sm:$0xff] }
 0x103   :  { %v934_v33 = vadd.f32 %v933_v34, %v4856_v35  ;;  %v971_v0 = vadd.f32 %v970_v43, %v839_v25  ;;  %vm622_vm2 = vcmp.gt.f32.partialorder %v4857_v39, 0.0  ;;  %vm654_vm12 = vcmp.gt.f32.partialorder %v4858_v62, 0.0  ;;  %v4868_v25 = vld [vmem:[#allocation18_spill] sm:$0xff]  ;;  %v4873_v37 = vld [vmem:[#allocation40_spill] sm:$0xff] }
 0x104   :  { %v779_v12 = vmul.f32 0.2, %v4837_v2  ;;  %vm4860_vm14 = vcmp.gt.f32.partialorder %v4820_v19, 0.0  ;;  %v1008_v13 = vadd.f32 %v1007_v63, %v871_v31  ;;  %v1045_v55 = vadd.f32 %v1044_v26, %v903_v47  ;;  %v4870_v31 = vld [vmem:[#allocation94_spill] sm:$0xff]  ;;  %v4871_v47 = vld [vmem:[#allocation73_spill] sm:$0xff]  ;;  %v4876_v63 = vld [vmem:[#allocation44_spill] sm:$0xff] }
 0x105   :  { %v841_v53 = vsel %vm4860_vm14, %v4820_v19, %v4859_v20  ;;  %vm591_vm1 = vcmp.gt.f32.partialorder %v4861_v58, 0.0  ;;  %v873_v45 = vsel %vm617_vm15, %v4823_v51, %v4862_v23  ;;  %v905_v30 = vsel %vm649_vm0, %v4824_v1, %v777_v8  ;;  %v4879_v35 = vld [vmem:[#allocation126_spill] sm:$0xff]  ;;  %v4880_v20 = vld [vmem:[#allocation81_spill] sm:$0xff] }
 0x106   :  { %v935_v36 = vadd.f32 %v934_v33, %v4863_v15  ;;  %v972_v32 = vadd.f32 %v971_v0, %v840_v48  ;;  %vm623_vm5 = vcmp.gt.f32.partialorder %v4864_v14, 0.0  ;;  %vm655_vm14 = vcmp.gt.f32.partialorder %v4865_v4, 0.0  ;;  %v4874_v48 = vld [vmem:[#allocation88_spill] sm:$0xff] }
 0x107   :  { %v780_v19 = vmul.f32 0.2, %v4844_v49  ;;  %v842_v52 = vsel %vm586_vm6, %v4827_v50, %v4866_v22  ;;  %v1009_v10 = vadd.f32 %v1008_v13, %v872_v16  ;;  %v1046_v51 = vadd.f32 %v1045_v55, %v904_v7  ;;  %v4877_v16 = vld [vmem:[#allocation56_spill] sm:$0xff]  ;;  %v4878_v7 = vld [vmem:[#allocation74_spill] sm:$0xff] }
 0x108   :  { %vm592_vm15 = vcmp.gt.f32.partialorder %v4867_v44, 0.0  ;;  %v874_v1 = vsel %vm618_vm8, %v4830_v54, %v4868_v25  ;;  %v906_v8 = vsel %vm650_vm4, %v4831_v27, %v778_v61  ;;  %v936_v41 = vadd.f32 %v935_v36, %v4869_v56  ;;  %v4883_v13 = vld [vmem:[#allocation14_spill] sm:$0xff]  ;;  %v4890_v25 = vld [vmem:[#allocation75_spill] sm:$0xff] }
 0x109   :  { %v973_v24 = vadd.f32 %v972_v32, %v841_v53  ;;  %vm624_vm0 = vcmp.gt.f32.partialorder %v4870_v31, 0.0  ;;  %v781_v50 = vmul.f32 0.2, %v4851_v3  ;;  %v843_v34 = vsel %vm587_vm3, %v4833_v9, %v4872_v57  ;;  %v4881_v53 = vld [vmem:[#allocation50_spill] sm:$0xff]  ;;  %v4887_v32 = vld [vmem:[#allocation41_spill] sm:$0xff]  ;;  %v4895_v57 = vld [vmem:[#allocation16_spill] sm:$0xff] }
 0x10a   :  { %v1010_v43 = vadd.f32 %v1009_v10, %v873_v45  ;;  %v1047_v54 = vadd.f32 %v1046_v51, %v905_v30  ;;  %vm593_vm8 = vcmp.gt.f32.partialorder %v4873_v37, 0.0  ;;  %v875_v27 = vsel %vm619_vm7, %v4836_v21, %v4874_v48  ;;  %v4884_v45 = vld [vmem:[#allocation100_spill] sm:$0xff]  ;;  %v4885_v30 = vld [vmem:[#allocation127_spill] sm:$0xff]  ;;  %v4888_v22 = vld [vmem:[#allocation102_spill] sm:$0xff] }
 0x10b   :  { %vm4875_vm4 = vcmp.gt.f32.partialorder %v4837_v2, 0.0  ;;  %v937_v26 = vadd.f32 %v936_v41, %v4876_v63  ;;  %v974_v28 = vadd.f32 %v973_v24, %v842_v52  ;;  %vm625_vm6 = vcmp.gt.f32.partialorder %v4877_v16, 0.0  ;;  %v4889_v52 = vld [vmem:[#allocation63_spill] sm:$0xff]  ;;  %v4893_v41 = vld [vmem:[#allocation82_spill] sm:$0xff]  ;;  %v4894_v24 = vld [vmem:[#allocation64_spill] sm:$0xff] }
 0x10c   :  { %v907_v61 = vsel %vm4875_vm4, %v4837_v2, %v779_v12  ;;  %v782_v9 = vmul.f32 0.2, %v4858_v62  ;;  %v844_v33 = vsel %vm588_vm11, %v4839_v29, %v4879_v35  ;;  %v1011_v0 = vadd.f32 %v1010_v43, %v874_v1  ;;  %v4891_v1 = vld [vmem:[#allocation128_spill] sm:$0xff]  ;;  %v4897_v48 = vld [vmem:[#allocation130_spill] sm:$0xff] }
 0x10d   :  { %v1048_v21 = vadd.f32 %v1047_v54, %v906_v8  ;;  %v876_v2 = vsel %vm620_vm9, %v4843_v40, %v4881_v53  ;;  %vm4882_vm4 = vcmp.gt.f32.partialorder %v4844_v49, 0.0  ;;  %v938_v55 = vadd.f32 %v937_v26, %v4883_v13  ;;  %v4896_v54 = vld [vmem:[#allocation11_spill] sm:$0xff]  ;;  %v4898_v63 = vld [vmem:[#allocation42_spill] sm:$0xff] }
 0x10e   :  { %v908_v12 = vsel %vm4882_vm4, %v4844_v49, %v780_v19  ;;  %v975_v23 = vadd.f32 %v974_v28, %v843_v34  ;;  %vm626_vm3 = vcmp.gt.f32.partialorder %v4755_v42, 0.0  ;;  %vm658_vm11 = vcmp.gt.f32.partialorder %v4884_v45, 0.0  ;;  %v4899_v26 = vld [vmem:[#allocation19_spill] sm:$0xff] }
 0x10f   :  { %v783_v29 = vmul.f32 0.2, %v4865_v4  ;;  %vm4886_vm7 = vcmp.gt.f32.partialorder %v4846_v17, 0.0  ;;  %v1012_v36 = vadd.f32 %v1011_v0, %v875_v27  ;;  %v1049_v40 = vadd.f32 %v1048_v21, %v907_v61  ;;  %v4901_v0 = vld [vmem:[#allocation76_spill] sm:$0xff]  ;;  %v4902_v21 = vld [vmem:[#allocation131_spill] sm:$0xff] }
 0x110   :  { %v845_v15 = vsel %vm4886_vm7, %v4846_v17, %v4885_v30  ;;  %v877_v49 = vsel %vm621_vm10, %v4850_v38, %v4888_v22  ;;  %v909_v19 = vsel %vm653_vm13, %v4851_v3, %v781_v50  ;;  %v939_v10 = vadd.f32 %v938_v55, %v4889_v52  ;;  %v4904_v13 = vld [vmem:[#allocation83_spill] sm:$0xff] }
 0x111   :  { %v976_v51 = vadd.f32 %v975_v23, %v844_v33  ;;  %vm627_vm4 = vcmp.gt.f32.partialorder %v4757_v18, 0.0  ;;  %vm659_vm7 = vcmp.gt.f32.partialorder %v4890_v25, 0.0  ;;  %v784_v17 = vmul.f32 0.2, %v4871_v47  ;;  %v4911_v52 = vld [vmem:[#allocation43_spill] sm:$0xff] }
 0x112   :  { %vm4892_vm9 = vcmp.gt.f32.partialorder %v4854_v59, 0.0  ;;  %v1013_v56 = vadd.f32 %v1012_v36, %v876_v2  ;;  %v1050_v38 = vadd.f32 %v1049_v40, %v908_v12  ;;  %vm596_vm10 = vcmp.gt.f32.partialorder %v4893_v41, 0.0  ;;  %v4903_v12 = vld [vmem:[#allocation23_spill] sm:$0xff]  ;;  %v4909_v40 = vld [vmem:[#allocation132_spill] sm:$0xff] }
 0x113   :  { %v846_v8 = vsel %vm4892_vm9, %v4854_v59, %v4891_v1  ;;  %v878_v3 = vsel %vm622_vm2, %v4857_v39, %v4894_v24  ;;  %v910_v50 = vsel %vm654_vm12, %v4858_v62, %v782_v9  ;;  %v940_v34 = vadd.f32 %v939_v10, %v4895_v57  ;;  %v4900_v9 = vld [vmem:[#allocation17_spill] sm:$0xff] }
 0x114   :  { %v977_v43 = vadd.f32 %v976_v51, %v845_v15  ;;  %vm628_vm13 = vcmp.gt.f32.partialorder %v4761_v5, 0.0  ;;  %vm660_vm9 = vcmp.gt.f32.partialorder %v4896_v54, 0.0  ;;  %v785_v59 = vmul.f32 0.2, %v4878_v7 }
 0x115   :  { %v847_v27 = vsel %vm591_vm1, %v4861_v58, %v4897_v48  ;;  %v1014_v61 = vadd.f32 %v1013_v56, %v877_v49  ;;  %v1051_v39 = vadd.f32 %v1050_v38, %v909_v19  ;;  %vm597_vm2 = vcmp.gt.f32.partialorder %v4898_v63, 0.0  ;;  %v4910_v19 = vld [vmem:[#allocation24_spill] sm:$0xff]  ;;  %v4916_v38 = vld [vmem:[#allocation134_spill] sm:$0xff] }
 0x116   :  { %v879_v62 = vsel %vm623_vm5, %v4864_v14, %v4899_v26  ;;  %v911_v28 = vsel %vm655_vm14, %v4865_v4, %v783_v29  ;;  %v941_v35 = vadd.f32 %v940_v34, %v4900_v9  ;;  %v978_v33 = vadd.f32 %v977_v43, %v846_v8  ;;  %v4905_v4 = vld [vmem:[#allocation20_spill] sm:$0xff]  ;;  %v4907_v29 = vld [vmem:[#allocation49_spill] sm:$0xff]  ;;  %v4919_v34 = vld [vmem:[#allocation3_spill] sm:$0xff] }
 0x117   :  { %v786_v58 = vmul.f32 0.2, %v4884_v45  ;;  %v848_v53 = vsel %vm592_vm15, %v4867_v44, %v4902_v21  ;;  %v1015_v2 = vadd.f32 %v1014_v61, %v878_v3  ;;  %v1052_v14 = vadd.f32 %v1051_v39, %v910_v50  ;;  %v4908_v44 = vld [vmem:[#allocation77_spill] sm:$0xff]  ;;  %v4918_v50 = vld [vmem:[#allocation95_spill] sm:$0xff] }
 0x118   :  { %vm566_vm5 = vcmp.gt.f32.partialorder %v4903_v12, 0.0  ;;  %vm598_vm14 = vcmp.gt.f32.partialorder %v4904_v13, 0.0  ;;  %v880_v55 = vsel %vm624_vm0, %v4870_v31, %v4905_v4  ;;  %vm4906_vm1 = vcmp.gt.f32.partialorder %v4871_v47, 0.0  ;;  %v4922_v26 = vld [vmem:[#allocation57_spill] sm:$0xff] }
 0x119   :  { %v912_v23 = vsel %vm4906_vm1, %v4871_v47, %v784_v17  ;;  %v942_v30 = vadd.f32 %v941_v35, %v4907_v29  ;;  %v979_v15 = vadd.f32 %v978_v33, %v847_v27  ;;  %v787_v36 = vmul.f32 0.2, %v4890_v25  ;;  %v4912_v47 = vld [vmem:[#allocation65_spill] sm:$0xff]  ;;  %v4920_v27 = vld [vmem:[#allocation135_spill] sm:$0xff]  ;;  %v4924_v33 = vld [vmem:[#allocation136_spill] sm:$0xff] }
 0x11a   :  { %v849_v22 = vsel %vm593_vm8, %v4873_v37, %v4909_v40  ;;  %v1016_v49 = vadd.f32 %v1015_v2, %v879_v62  ;;  %v1053_v31 = vadd.f32 %v1052_v14, %v911_v28  ;;  %vm567_vm0 = vcmp.gt.f32.partialorder %v4910_v19, 0.0  ;;  %v4914_v17 = vld [vmem:[#allocation89_spill] sm:$0xff]  ;;  %v4915_v37 = vld [vmem:[#allocation12_spill] sm:$0xff] }
 0x11b   :  { %v881_v10 = vsel %vm625_vm6, %v4877_v16, %v4912_v47  ;;  %vm4913_vm12 = vcmp.gt.f32.partialorder %v4878_v7, 0.0  ;;  %v943_v1 = vadd.f32 %v942_v30, %v4914_v17  ;;  %v980_v8 = vadd.f32 %v979_v15, %v848_v53  ;;  %v4923_v62 = vld [vmem:[#allocation104_spill] sm:$0xff]  ;;  %v4925_v53 = vld [vmem:[#allocation58_spill] sm:$0xff]  ;;  %v4926_v2 = vld [vmem:[#allocation21_spill] sm:$0xff] }
 0x11c   :  { %v913_v51 = vsel %vm4913_vm12, %v4878_v7, %v785_v59  ;;  %vm631_vm8 = vcmp.gt.f32.partialorder %v4773_v6, 0.0  ;;  %vm663_vm15 = vcmp.gt.f32.partialorder %v4915_v37, 0.0  ;;  %v788_v56 = vmul.f32 0.2, %v4896_v54  ;;  %v4928_v15 = vld [vmem:[#allocation59_spill] sm:$0xff] }
 0x11d   :  { %vm4917_vm1 = vcmp.gt.f32.partialorder %v4880_v20, 0.0  ;;  %v1017_v3 = vadd.f32 %v1016_v49, %v880_v55  ;;  %v1054_v16 = vadd.f32 %v1053_v31, %v912_v23  ;;  %v882_v7 = vsel %vm626_vm3, %v4755_v42, %v4918_v50  ;;  %v4927_v23 = vld [vmem:[#allocation138_spill] sm:$0xff] }
 0x11e   :  { %v850_v24 = vsel %vm4917_vm1, %v4880_v20, %v4916_v38  ;;  %v914_v57 = vsel %vm658_vm11, %v4884_v45, %v786_v58  ;;  %v944_v43 = vadd.f32 %v943_v1, %v4919_v34  ;;  %v981_v59 = vadd.f32 %v980_v8, %v849_v22  ;;  %v4932_v49 = vld [vmem:[#allocation22_spill] sm:$0xff] }
 0x11f   :  { %v789_v48 = vmul.f32 0.2, %v4901_v0  ;;  %vm4921_vm6 = vcmp.gt.f32.partialorder %v4887_v32, 0.0  ;;  %v1018_v61 = vadd.f32 %v1017_v3, %v881_v10  ;;  %v1055_v39 = vadd.f32 %v1054_v16, %v913_v51 }
 0x120   :  { %v851_v20 = vsel %vm4921_vm6, %v4887_v32, %v4920_v27  ;;  %v883_v42 = vsel %vm627_vm4, %v4757_v18, %v4922_v26  ;;  %v915_v45 = vsel %vm659_vm7, %v4890_v25, %v787_v36  ;;  %v945_v28 = vadd.f32 %v944_v43, %v4923_v62  ;;  %v4931_v36 = vld [vmem:[#allocation106_spill] sm:$0xff] }
 0x121   :  { %v982_v9 = vadd.f32 %v981_v59, %v850_v24  ;;  %v790_v35 = vmul.f32 0.2, %v4908_v44  ;;  %v852_v32 = vsel %vm596_vm10, %v4893_v41, %v4924_v33  ;;  %v1019_v58 = vadd.f32 %v1018_v61, %v882_v7 }
 0x122   :  { %v1056_v21 = vadd.f32 %v1055_v39, %v914_v57  ;;  %v884_v18 = vsel %vm628_vm13, %v4761_v5, %v4925_v53  ;;  %v916_v25 = vsel %vm660_vm9, %v4896_v54, %v788_v56  ;;  %v946_v14 = vadd.f32 %v945_v28, %v4926_v2 }
 0x123   :  { %v983_v4 = vadd.f32 %v982_v9, %v851_v20  ;;  %v791_v55 = vmul.f32 0.2, %v4915_v37  ;;  %v853_v41 = vsel %vm597_vm2, %v4898_v63, %v4927_v23  ;;  %v1020_v29 = vadd.f32 %v1019_v58, %v883_v42  ;;  %v4933_v63 = vld [vmem:[#allocation139_spill] sm:$0xff] }
 0x124   :  { %v1057_v30 = vadd.f32 %v1056_v21, %v915_v45  ;;  %vm4929_vm3 = vcmp.gt.f32.partialorder %v4763_v11, 0.0  ;;  %vm4930_vm11 = vcmp.gt.f32.partialorder %v4901_v0, 0.0  ;;  %v947_v40 = vadd.f32 %v946_v14, %v4931_v36 }
 0x125   :  { %v885_v5 = vsel %vm4929_vm3, %v4763_v11, %v4928_v15  ;;  %v917_v54 = vsel %vm4930_vm11, %v4901_v0, %v789_v48  ;;  %v984_v22 = vadd.f32 %v983_v4, %v852_v32  ;;  %v822_v31 = vsel %vm566_vm5, %v4903_v12, %v4932_v49  ;;  %v4934_v11 = vld [vmem:[#allocation4_spill] sm:$0xff]  ;;  %v1124_v4 = vld [vmem:[%s4072_s2] ss:$0 sm:$0xff] }
 0x126   :  { %v854_v47 = vsel %vm598_vm14, %v4904_v13, %v4933_v63  ;;  %v1021_v10 = vadd.f32 %v1020_v29, %v884_v18  ;;  %v1058_v51 = vadd.f32 %v1057_v30, %v916_v25  ;;  %vm4935_vm4 = vcmp.gt.f32.partialorder %v4768_v60, 0.0  ;;  %v4937_v12 = vld [vmem:[#allocation108_spill] sm:$0xff] }
 0x127   :  { %v886_v0 = vsel %vm4935_vm4, %v4768_v60, %v4934_v11  ;;  %vm4936_vm7 = vcmp.gt.f32.partialorder %v4908_v44, 0.0  ;;  %v948_v1 = vadd.f32 %v947_v40, %v3590_v46  ;;  %v985_v8 = vadd.f32 %v984_v22, %v853_v41  ;;  %v4938_v13 = vld [vmem:[#allocation140_spill] sm:$0xff] }
 0x128   :  { %v918_v17 = vsel %vm4936_vm7, %v4908_v44, %v790_v35  ;;  %v823_v56 = vsel %vm567_vm0, %v4910_v19, %v4937_v12  ;;  %vm4939_vm10 = vcmp.gt.f32.partialorder %v4911_v52, 0.0  ;;  %v1022_v24 = vadd.f32 %v1021_v10, %v885_v5  ;;  %v4940_v60 = vld [vmem:[#allocation60_spill] sm:$0xff] }
 0x129   :  { %v855_v38 = vsel %vm4939_vm10, %v4911_v52, %v4938_v13  ;;  %v1059_v3 = vadd.f32 %v1058_v51, %v917_v54  ;;  %v887_v44 = vsel %vm631_vm8, %v4773_v6, %v4940_v60  ;;  %v919_v46 = vsel %vm663_vm15, %v4915_v37, %v791_v55  ;;  %v1125_v51 = vld [vmem:[%s4072_s2 + $0x1] ss:$0 sm:$0xff] }
 0x12a   :  { %v949_v16 = vadd.f32 %v948_v1, %v822_v31  ;;  %v986_v50 = vadd.f32 %v985_v8, %v854_v47  ;;  %v1023_v7 = vadd.f32 %v1022_v24, %v886_v0  ;;  %vm1087_vm13 = vcmask 1041409  }
 0x12b   :  { %v1060_v19 = vadd.f32 %v1059_v3, %v918_v17  ;;  %vm1090_vm9 = vcmask 1042434   ;;  %vm1093_vm2 = vcmask 1043459   ;;  %vm1096_vm12 = vcmask 1043456  }
 0x12c   :  { %v950_v57 = vadd.f32 %v949_v16, %v823_v56  ;;  %v987_v34 = vadd.f32 %v986_v50, %v855_v38  ;;  %v1024_v43 = vadd.f32 %v1023_v7, %v887_v44  ;;  %v1451_v10 = vmov 0  }
 0x12d   :  { %v1061_v59 = vadd.f32 %v1060_v19, %v919_v46  ;;  %1446 = vset.pattern.permute.xlu0 %v1451_v10 }
 0x12e   :  { %v951_v52 = vrot.slane %v950_v57, 4  ;;  %v988_v48 = vrot.slane %v987_v34, 4  ;;  %v1025_v27 = vrot.slane %v1024_v43, 4 }
 0x12f   :  { %v1062_v20 = vrot.slane %v1061_v59, 4 }
 0x130   :  { %v952_v61 = vadd.f32 %v951_v52, %v950_v57  ;;  %v989_v39 = vadd.f32 %v988_v48, %v987_v34  ;;  %v1026_v26 = vadd.f32 %v1025_v27, %v1024_v43 }
 0x131   :  { %v1063_v6 = vadd.f32 %v1062_v20, %v1061_v59 }
 0x132   :  { %v953_v42 = vrot.slane %v952_v61, 2  ;;  %v990_v45 = vrot.slane %v989_v39, 2  ;;  %v1027_v62 = vrot.slane %v1026_v26, 2 }
 0x133   :  { %v1064_v37 = vrot.slane %v1063_v6, 2 }
 0x134   :  { %v954_v28 = vadd.f32 %v953_v42, %v952_v61  ;;  %v991_v9 = vadd.f32 %v990_v45, %v989_v39  ;;  %v1028_v35 = vadd.f32 %v1027_v62, %v1026_v26 }
 0x135   :  { %v1065_v33 = vadd.f32 %v1064_v37, %v1063_v6 }
 0x136   :  { %v955_v32 = vrot.slane %v954_v28, 1  ;;  %v992_v58 = vrot.slane %v991_v9, 1  ;;  %v1029_v21 = vrot.slane %v1028_v35, 1 }
 0x137   :  { %v1066_v53 = vrot.slane %v1065_v33, 1 }
 0x138   :  { %v956_v18 = vadd.f32 %v955_v32, %v954_v28  ;;  %v993_v25 = vadd.f32 %v992_v58, %v991_v9  ;;  %v1030_v2 = vadd.f32 %v1029_v21, %v1028_v35 }
 0x139   :  { %v1067_v14 = vadd.f32 %v1066_v53, %v1065_v33 }
 0x13a   :  { %v1069_v55 = vmul.f32 0.00390625, %v956_v18  ;;  %v1070_v23 = vmul.f32 0.00390625, %v993_v25  ;;  %v1071_v41 = vmul.f32 0.00390625, %v1030_v2 }
 0x13b   :  { %v1072_v29 = vmul.f32 0.00390625, %v1067_v14 }
 0x13c   :  { %v1078_v30 = vmul.f32 %v1124_v4, %v1069_v55  ;;  %v1079_v15 = vmul.f32 %v1124_v4, %v1070_v23  ;;  %v1080_v5 = vmul.f32 %v1124_v4, %v1071_v41 }
 0x13d   :  { %v1081_v54 = vmul.f32 %v1124_v4, %v1072_v29 }
 0x13e   :  { %v1086_v36 = vrot.slane %v1079_v15, 7  ;;  %v1089_v40 = vrot.slane %v1080_v5, 6 }
 0x13f   :  { %v1092_v22 = vrot.slane %v1081_v54, 5 }
 0x140   :  { %v1088_v49 = vsel %vm1087_vm13, %v1086_v36, %v1078_v30 }
 0x141   :  { %v1091_v31 = vsel %vm1090_vm9, %v1089_v40, %v1088_v49 }
 0x142   :  { %v1094_v63 = vsel %vm1093_vm2, %v1092_v22, %v1091_v31 }
 0x143   :  { %v1097_v47 = vsel %vm1096_vm12, %v1094_v63, 0.0 }
 0x144   :  { %1098 = vadd.xlane.f32.xlu0 %v1097_v47 }
 0x1d1   :  { %v1099_v11 = vpop.xlane.xlu0 %1098 }
 0x1d2   :  { %v1105_v0 = vadd.f32 %v1125_v51, %v1099_v11 }
 0x1d4   :  { %v1106_v17 = vsub.f32 0.0, %v1105_v0 }
 0x1d6   :  { %v1107_v1 = vmul.f32 1.442695, %v1106_v17 }
 0x1d8   :  { %1447 = vpow2.f32 %v1107_v1 }
 0x1e2   :  { %v1448_v8 = vpop.eup %1447 }
 0x1e3   :  { %v1109_v12 = vadd.f32 1.0, %v1448_v8 }
 0x1e5   :  { %1449 = vrcp.f32 %v1109_v12 }
 0x1ef   :  { %v1450_v56 = vpop.eup %1449 }
 0x1f0   :  { %1114 = vperm.xlu0 %1446, %v1450_v56  }
 0x26f   :  { %v1115_v13 = vpop.permute.xlu0 %1114 }
 0x270   :  { %1117 = vst [vmem:[%s4073_s3] sm:$0xf] %v1115_v13 }

// kernel: discriminator_forward.2
= control target key start
LH: loop header
LB: loop body
LE: loop exit
PB: predicated region body
PF: predicated region fallthrough
CT: control target
= control target key end

     0   :  { %s9304_s15 = smov 0   ;;  %s10450_s0 = inlined_call_operand.vmem [shape: bf16[4,32,32,33], index: 0, kind: input, shape index: {}]   ;;  %s10451_s1 = inlined_call_operand.vmem [shape: bf16[33,128], index: 1, kind: input, shape index: {}]   ;;  %s10452_s2 = inlined_call_operand.vmem [shape: bf16[12,128,128], index: 2, kind: input, shape index: {}]   ;;  %s10453_s3 = inlined_call_operand.vmem [shape: bf16[4,256,128], index: 3, kind: output, shape index: {0}]   ;;  %s10454_s4 = inlined_call_operand.vmem [shape: f32[4,2,128], index: 4, kind: output, shape index: {1}]  }
   0x1 LB: > { %s6998_s16 = sadd.s32 4294967295, %s9274_s15   ;;  %p7002_p0 = scmp.ge.s32.totalorder %s9274_s15, 1  ;;  %s9274_s15 = sphi %s9304_s15, %s15_s15  }
   0x2   : > { %p165_p1 = scmp.lt.s32.totalorder %s9274_s15, 5 }
   0x4   : > { %p166_p2 = pnand %p7002_p0, %p165_p1 }
   0x6   : > { %169 = sbr.rel (%p166_p2) target bundleno = 1053 (0x41d), region = 32 }
   0xd   : > { %v9094_v0 = vld [vmem:[%s10451_s1] sm:$0xff]   ;;  %vm695_vm0 = vcmask 1040384   ;;  %v9095_v1 = vld [vmem:[%s10451_s1 + $0x8] sm:$0xff]   ;;  %v9096_v2 = vld [vmem:[%s10451_s1 + $0x10] ss:$0 sps:$4 sm:$0x11]  }
   0xe   : > { %7999 = vmatprep.subr.bf16.mxu1 %v9094_v0  ;;  %v9276_v3 = vmov 0   ;;  %p195_p3 = scmp.lt.s32.totalorder %s6998_s16, 3  ;;  %vm598_vm1 = vcmask 269312   ;;  %v9099_v6 = vld [vmem:[%s10451_s1] sm:$0xff]   ;;  %v9110_v11 = vld [vmem:[%s10451_s1 + $0x8] sm:$0xff]   ;;  %v9155_v33 = vld [vmem:[%s10452_s2 + $0x110] sm:$0xff]  }
   0xf   : > { %v697_v4 = vsel %vm695_vm0, 65535, %v9276_v3  ;;  %8000 = vmatpush3.bf16.msra.mxu1 %v9094_v0  ;;  %v9121_v9 = vld [vmem:[%s10451_s1 + $0x10] ss:$0 sps:$4 sm:$0x11]   ;;  %v9151_v29 = vld [vmem:[%s10452_s2 + $0x100] sm:$0xff]   ;;  %v9153_v32 = vld [vmem:[%s10452_s2 + $0x108] sm:$0xff]  }
  0x10   : > { %8001 = vmatprep.subr.bf16.mxu1 %v9095_v1  ;;  %v699_v5 = vand.u32 %v9096_v2, %v697_v4  ;;  %s10616_s16 = smov (!%p195_p3, %s6998_s16), 3  ;;  %v1589_v12 = vand.u32 %v9121_v9, %v697_v4  ;;  %8331 = vmatprep.subr.bf16.mxu0 %v9151_v29  ;;  %v9157_v36 = vld [vmem:[%s10452_s2 + $0x118] sm:$0xff]   ;;  %v9159_v39 = vld [vmem:[%s10452_s2 + $0x120] sm:$0xff]   ;;  %v9161_v41 = vld [vmem:[%s10452_s2 + $0x128] sm:$0xff]   ;;  %vm2830_vm5 = vcmask 1045504   ;;  %vm2266_vm6 = vcmask 1046528  }
  0x11   : > { %s7512_s23 = sshll.u32 %s10616_s16, 9  ;;  %8332 = vmatpush3.bf16.msra.mxu0 %v9151_v29  ;;  %v9163_v43 = vld [vmem:[%s10452_s2 + $0x130] sm:$0xff]   ;;  %v9165_v45 = vld [vmem:[%s10452_s2 + $0x138] sm:$0xff]   ;;  %v9455_v63 = vld [vmem:[%s10452_s2 + $0x140] sm:$0xff]   ;;  %s7513_s26 = sshll.u32 %s10616_s16, 7 }
  0x12   : > { %s9331_s28 = scalar_lea.vmem %s10450_s0, %s7512_s23  ;;  %8333 = vmatprep.subr.bf16.mxu0 %v9153_v32  ;;  %s10400_s29 = scalar_lea.vmem %s10453_s3, %s7513_s26 }
  0x13   : > { %8002 = vmatpush3.bf16.msra.mxu1 %v9095_v1  ;;  %v9097_v7 = vld [vmem:[%s9331_s28] sm:$0xff]   ;;  %v9098_v8 = vld [vmem:[%s9331_s28 + $0x8] sm:$0xff]   ;;  %v9100_v10 = vld [vmem:[%s9331_s28 + $0x10] sm:$0xff]   ;;  %s7007_s30 = sshll.u32 %s10616_s16, 1 }
  0x14   : > { %8003 = vmatprep.subr.bf16.mxu1 %v699_v5  ;;  %8005 = vmatprep.mubr.msk.bf16.mxu1 %vm598_vm1, %v9097_v7  ;;  %v9101_v13 = vld [vmem:[%s9331_s28 + $0x18] sm:$0xff]   ;;  %v9102_v14 = vld [vmem:[%s9331_s28 + $0x20] sm:$0xff]   ;;  %v9103_v15 = vld [vmem:[%s9331_s28 + $0x28] sm:$0xff]   ;;  %s208_s7 = scalar_lea.vmem %s10454_s4, %s7007_s30 }
  0x15   : > { %v9104_v16 = vld [vmem:[%s9331_s28 + $0x30] sm:$0xff]   ;;  %v9105_v17 = vld [vmem:[%s9331_s28 + $0x38] sm:$0xff]   ;;  %v9106_v18 = vld [vmem:[%s9331_s28 + $0x40] sm:$0xff]   ;;  %8334 = vmatpush3.bf16.msra.mxu0 %v9153_v32 }
  0x16   : > { %v9107_v19 = vld [vmem:[%s9331_s28 + $0x48] sm:$0xff]   ;;  %v9108_v20 = vld [vmem:[%s9331_s28 + $0x50] sm:$0xff]   ;;  %v9109_v21 = vld [vmem:[%s9331_s28 + $0x58] sm:$0xff]   ;;  %8335 = vmatprep.subr.bf16.mxu0 %v9155_v33 }
  0x17   : > { %8004 = vmatpush3.bf16.msra.mxu1 %v699_v5  ;;  %v9111_v22 = vld [vmem:[%s9331_s28 + $0x60] sm:$0xff]   ;;  %v9112_v23 = vld [vmem:[%s9331_s28 + $0x68] sm:$0xff]   ;;  %v9113_v24 = vld [vmem:[%s9331_s28 + $0x70] sm:$0xff]  }
  0x18   : > { %8069 = vmatprep.subr.bf16.mxu1 %v9099_v6  ;;  %v9114_v25 = vld [vmem:[%s9331_s28 + $0x78] sm:$0xff]   ;;  %v9115_v26 = vld [vmem:[%s9331_s28 + $0x80] sm:$0xff]   ;;  %v9116_v27 = vld [vmem:[%s9331_s28 + $0x88] sm:$0xff]  }
  0x19   : > { %v9117_v28 = vld [vmem:[%s9331_s28 + $0x90] sm:$0xff]   ;;  %v9118_v30 = vld [vmem:[%s9331_s28 + $0x98] sm:$0xff]   ;;  %v9119_v31 = vld [vmem:[%s9331_s28 + $0xa0] sm:$0xff]   ;;  %8336 = vmatpush3.bf16.msra.mxu0 %v9155_v33 }
  0x1a   : > { %8006 = vmatmul.mubr.msk.bf16.vlgmr.msra.gmra.mrb[0].mxu1 %vm598_vm1, %v9098_v8  ;;  %v9120_v34 = vld [vmem:[%s9331_s28 + $0xa8] sm:$0xff]   ;;  %v9122_v35 = vld [vmem:[%s9331_s28 + $0xb0] sm:$0xff]   ;;  %v9123_v37 = vld [vmem:[%s9331_s28 + $0xb8] sm:$0xff]   ;;  %8337 = vmatprep.subr.bf16.mxu0 %v9157_v36 }
  0x1b   : > { %8070 = vmatpush3.bf16.msra.mxu1 %v9099_v6  ;;  %8009 = vmatprep.mubr.msk.bf16.mxu1 %vm598_vm1, %v9100_v10  ;;  %v9124_v38 = vld [vmem:[%s9331_s28 + $0xc0] sm:$0xff]   ;;  %v9125_v40 = vld [vmem:[%s9331_s28 + $0xc8] sm:$0xff]   ;;  %v9126_v42 = vld [vmem:[%s9331_s28 + $0xd0] sm:$0xff]  }
  0x1c   : > { %8071 = vmatprep.subr.bf16.mxu1 %v9110_v11  ;;  %v9127_v44 = vld [vmem:[%s9331_s28 + $0xd8] sm:$0xff]   ;;  %v9128_v46 = vld [vmem:[%s9331_s28 + $0xe0] sm:$0xff]   ;;  %v9129_v47 = vld [vmem:[%s9331_s28 + $0xe8] sm:$0xff]  }
  0x1d   : > { %8338 = vmatpush3.bf16.msra.mxu0 %v9157_v36  ;;  %v9130_v48 = vld [vmem:[%s9331_s28 + $0xf0] sm:$0xff]   ;;  %v9131_v49 = vld [vmem:[%s9331_s28 + $0xf8] sm:$0xff]   ;;  %v9132_v50 = vld [vmem:[%s9331_s28 + $0x100] sm:$0xff]  }
  0x1e   : > { %8339 = vmatprep.subr.bf16.mxu0 %v9159_v39  ;;  %v9133_v51 = vld [vmem:[%s9331_s28 + $0x108] sm:$0xff]   ;;  %v9134_v52 = vld [vmem:[%s9331_s28 + $0x110] sm:$0xff]   ;;  %v9135_v53 = vld [vmem:[%s9331_s28 + $0x118] sm:$0xff]  }
  0x1f   : > { %8072 = vmatpush3.bf16.msra.mxu1 %v9110_v11  ;;  %v9136_v54 = vld [vmem:[%s9331_s28 + $0x120] sm:$0xff]   ;;  %v9137_v55 = vld [vmem:[%s9331_s28 + $0x128] sm:$0xff]   ;;  %v9138_v56 = vld [vmem:[%s9331_s28 + $0x130] sm:$0xff]  }
  0x20   : > { %8073 = vmatprep.subr.bf16.mxu1 %v1589_v12  ;;  %v9139_v57 = vld [vmem:[%s9331_s28 + $0x138] sm:$0xff]   ;;  %v9140_v58 = vld [vmem:[%s9331_s28 + $0x140] sm:$0xff]   ;;  %v9141_v59 = vld [vmem:[%s9331_s28 + $0x148] sm:$0xff]  }
  0x21   : > { %8340 = vmatpush3.bf16.msra.mxu0 %v9159_v39  ;;  %v9142_v60 = vld [vmem:[%s9331_s28 + $0x150] sm:$0xff]   ;;  %v9143_v61 = vld [vmem:[%s9331_s28 + $0x158] sm:$0xff]   ;;  %v9144_v62 = vld [vmem:[%s9331_s28 + $0x160] sm:$0xff]  }
  0x22   : > { %8010 = vmatmul.mubr.msk.bf16.gmra.mrb[4].mxu1 %vm598_vm1, %v9101_v13  ;;  %8341 = vmatprep.subr.bf16.mxu0 %v9161_v41  ;;  %v9145_v0 = vld [vmem:[%s9331_s28 + $0x168] sm:$0xff]   ;;  %v9146_v1 = vld [vmem:[%s9331_s28 + $0x170] sm:$0xff]   ;;  %v9147_v2 = vld [vmem:[%s9331_s28 + $0x178] sm:$0xff]  }
  0x23   : > { %8013 = vmatprep.mubr.msk.bf16.mxu1 %vm598_vm1, %v9102_v14  ;;  %8074 = vmatpush3.bf16.msra.mxu1 %v1589_v12  ;;  %v9148_v3 = vld [vmem:[%s9331_s28 + $0x180] sm:$0xff]   ;;  %v9149_v4 = vld [vmem:[%s9331_s28 + $0x188] sm:$0xff]   ;;  %v9150_v5 = vld [vmem:[%s9331_s28 + $0x190] sm:$0xff]  }
  0x24   : > { %v9176_v6 = vld [vmem:[%s10452_s2 + $0x40] sm:$0xff]   ;;  %v9152_v7 = vld [vmem:[%s9331_s28 + $0x198] sm:$0xff]   ;;  %v9178_v8 = vld [vmem:[%s10452_s2 + $0x48] sm:$0xff]  }
  0x25   : > { %8342 = vmatpush3.bf16.msra.mxu0 %v9161_v41  ;;  %8139 = vmatprep.subr.bf16.mxu1 %v9176_v6  ;;  %v9154_v9 = vld [vmem:[%s9331_s28 + $0x1a0] sm:$0xff]   ;;  %v9180_v10 = vld [vmem:[%s10452_s2 + $0x50] sm:$0xff]   ;;  %v9156_v11 = vld [vmem:[%s9331_s28 + $0x1a8] sm:$0xff]  }
  0x26   : > { %8343 = vmatprep.subr.bf16.mxu0 %v9163_v43  ;;  %v9182_v12 = vld [vmem:[%s10452_s2 + $0x58] sm:$0xff]   ;;  %v9158_v13 = vld [vmem:[%s9331_s28 + $0x1b0] sm:$0xff]   ;;  %v9184_v14 = vld [vmem:[%s10452_s2 + $0x60] sm:$0xff]  }
  0x29   : > { %8344 = vmatpush3.bf16.msra.mxu0 %v9163_v43 }
  0x2a   : > { %8014 = vmatmul.mubr.msk.bf16.gmra.mrb[8].mxu1 %vm598_vm1, %v9103_v15  ;;  %8345 = vmatprep.subr.bf16.mxu0 %v9165_v45 }
  0x2b   : > { %8017 = vmatprep.mubr.msk.bf16.mxu1 %vm598_vm1, %v9104_v16 }
  0x2d   : > { %8346 = vmatpush3.bf16.msra.mxu0 %v9165_v45  ;;  %v9166_v45 = vld [vmem:[%s9331_s28 + $0x1d0] sm:$0xff]  }
  0x2e   : > { %8379 = vmatprep.subr.bf16.mxu0 %v9455_v63 }
  0x32   : > { %8018 = vmatmul.mubr.msk.bf16.gmra.mrb[12].mxu1 %vm598_vm1, %v9105_v17 }
  0x33   : > { %8021 = vmatprep.mubr.msk.bf16.mxu1 %vm598_vm1, %v9106_v18  ;;  %v9160_v18 = vld [vmem:[%s9331_s28 + $0x1b8] sm:$0xff]  }
  0x3a   : > { %8022 = vmatmul.mubr.msk.bf16.gmra.mrb[16].mxu1 %vm598_vm1, %v9107_v19  ;;  %v9185_v19 = vld [vmem:[%s10452_s2 + $0x68] sm:$0xff]  }
  0x3b   : > { %8025 = vmatprep.mubr.msk.bf16.mxu1 %vm598_vm1, %v9108_v20 }
  0x42   : > { %8026 = vmatmul.mubr.msk.bf16.gmra.mrb[20].mxu1 %vm598_vm1, %v9109_v21 }
  0x43   : > { %8029 = vmatprep.mubr.msk.bf16.mxu1 %vm598_vm1, %v9111_v22  ;;  %v9162_v22 = vld [vmem:[%s9331_s28 + $0x1c0] sm:$0xff]  }
  0x4a   : > { %8030 = vmatmul.mubr.msk.bf16.gmra.mrb[24].mxu1 %vm598_vm1, %v9112_v23 }
  0x4b   : > { %8033 = vmatprep.mubr.msk.bf16.mxu1 %vm598_vm1, %v9113_v24 }
  0x52   : > { %8034 = vmatmul.mubr.msk.bf16.gmra.mrb[28].mxu1 %vm598_vm1, %v9114_v25 }
  0x53   : > { %8037 = vmatprep.mubr.msk.bf16.mxu1 %vm598_vm1, %v9115_v26 }
  0x5a   : > { %8038 = vmatmul.mubr.msk.bf16.gmra.mrb[32].mxu1 %vm598_vm1, %v9116_v27  ;;  %v9186_v27 = vld [vmem:[%s10452_s2 + $0x70] sm:$0xff]  }
  0x5b   : > { %8041 = vmatprep.mubr.msk.bf16.mxu1 %vm598_vm1, %v9117_v28 }
  0x62   : > { %8042 = vmatmul.mubr.msk.bf16.gmra.mrb[36].mxu1 %vm598_vm1, %v9118_v30 }
  0x63   : > { %8045 = vmatprep.mubr.msk.bf16.mxu1 %vm598_vm1, %v9119_v31 }
  0x6a   : > { %8046 = vmatmul.mubr.msk.bf16.gmra.mrb[40].mxu1 %vm598_vm1, %v9120_v34 }
  0x6b   : > { %8049 = vmatprep.mubr.msk.bf16.mxu1 %vm598_vm1, %v9122_v35  ;;  %v9164_v35 = vld [vmem:[%s9331_s28 + $0x1c8] sm:$0xff]  }
  0x72   : > { %8050 = vmatmul.mubr.msk.bf16.gmra.mrb[44].mxu1 %vm598_vm1, %v9123_v37 }
  0x73   : > { %8053 = vmatprep.mubr.msk.bf16.mxu1 %vm598_vm1, %v9124_v38 }
  0x7a   : > { %8054 = vmatmul.mubr.msk.bf16.gmra.mrb[48].mxu1 %vm598_vm1, %v9125_v40  ;;  %v9187_v40 = vld [vmem:[%s10452_s2 + $0x78] sm:$0xff]  }
  0x7b   : > { %8057 = vmatprep.mubr.msk.bf16.mxu1 %vm598_vm1, %v9126_v42 }
  0x82   : > { %8058 = vmatmul.mubr.msk.bf16.gmra.mrb[52].mxu1 %vm598_vm1, %v9127_v44 }
  0x83   : > { %8061 = vmatprep.mubr.msk.bf16.mxu1 %vm598_vm1, %v9128_v46 }
  0x8a   : > { %8062 = vmatmul.mubr.msk.bf16.gmra.mrb[56].mxu1 %vm598_vm1, %v9129_v47 }
  0x8b   : > { %8065 = vmatprep.mubr.msk.bf16.mxu1 %vm598_vm1, %v9130_v48 }
  0x92   : > { %8066 = vmatmul.mubr.msk.bf16.gmra.mrb[60].mxu1 %vm598_vm1, %v9131_v49 }
  0x93   : > { %8075 = vmatprep.mubr.msk.bf16.mxu1 %vm598_vm1, %v9132_v50 }
  0x9a   : > { %8076 = vmatmul.mubr.msk.bf16.vlgmr.msra.gmra.mrb[64].mxu1 %vm598_vm1, %v9133_v51 }
  0x9b   : > { %8079 = vmatprep.mubr.msk.bf16.mxu1 %vm598_vm1, %v9134_v52  ;;  %8140 = vmatpush3.bf16.msra.mxu1 %v9176_v6 }
  0x9c   : > { %8141 = vmatprep.subr.bf16.mxu1 %v9178_v8 }
  0x9f   : > { %8142 = vmatpush3.bf16.msra.mxu1 %v9178_v8 }
  0xa0   : > { %8143 = vmatprep.subr.bf16.mxu1 %v9180_v10 }
  0xa2   : > { %8080 = vmatmul.mubr.msk.bf16.gmra.mrb[68].mxu1 %vm598_vm1, %v9135_v53 }
  0xa3   : > { %8083 = vmatprep.mubr.msk.bf16.mxu1 %vm598_vm1, %v9136_v54  ;;  %8144 = vmatpush3.bf16.msra.mxu1 %v9180_v10 }
  0xa4   : > { %8145 = vmatprep.subr.bf16.mxu1 %v9182_v12 }
  0xa7   : > { %8146 = vmatpush3.bf16.msra.mxu1 %v9182_v12 }
  0xa8   : > { %8147 = vmatprep.subr.bf16.mxu1 %v9184_v14 }
  0xaa   : > { %8084 = vmatmul.mubr.msk.bf16.gmra.mrb[72].mxu1 %vm598_vm1, %v9137_v55 }
  0xab   : > { %8087 = vmatprep.mubr.msk.bf16.mxu1 %vm598_vm1, %v9138_v56  ;;  %8148 = vmatpush3.bf16.msra.mxu1 %v9184_v14 }
  0xac   : > { %8149 = vmatprep.subr.bf16.mxu1 %v9185_v19 }
  0xaf   : > { %8150 = vmatpush3.bf16.msra.mxu1 %v9185_v19 }
  0xb0   : > { %8151 = vmatprep.subr.bf16.mxu1 %v9186_v27 }
  0xb2   : > { %8088 = vmatmul.mubr.msk.bf16.gmra.mrb[76].mxu1 %vm598_vm1, %v9139_v57 }
  0xb3   : > { %8091 = vmatprep.mubr.msk.bf16.mxu1 %vm598_vm1, %v9140_v58  ;;  %8152 = vmatpush3.bf16.msra.mxu1 %v9186_v27 }
  0xb4   : > { %8153 = vmatprep.subr.bf16.mxu1 %v9187_v40 }
  0xb7   : > { %8154 = vmatpush3.bf16.msra.mxu1 %v9187_v40 }
  0xba   : > { %8092 = vmatmul.mubr.msk.bf16.gmra.mrb[80].mxu1 %vm598_vm1, %v9141_v59 }
  0xbb   : > { %8095 = vmatprep.mubr.msk.bf16.mxu1 %vm598_vm1, %v9142_v60  ;;  %v9167_v60 = vld [vmem:[%s9331_s28 + $0x1d8] sm:$0xff]  }
  0xc2   : > { %8096 = vmatmul.mubr.msk.bf16.gmra.mrb[84].mxu1 %vm598_vm1, %v9143_v61 }
  0xc3   : > { %8099 = vmatprep.mubr.msk.bf16.mxu1 %vm598_vm1, %v9144_v62 }
  0xca   : > { %8100 = vmatmul.mubr.msk.bf16.gmra.mrb[88].mxu1 %vm598_vm1, %v9145_v0 }
  0xcb   : > { %8103 = vmatprep.mubr.msk.bf16.mxu1 %vm598_vm1, %v9146_v1 }
  0xd2   : > { %8104 = vmatmul.mubr.msk.bf16.gmra.mrb[92].mxu1 %vm598_vm1, %v9147_v2 }
  0xd3   : > { %8107 = vmatprep.mubr.msk.bf16.mxu1 %vm598_vm1, %v9148_v3 }
  0xda   : > { %8108 = vmatmul.mubr.msk.bf16.gmra.mrb[96].mxu1 %vm598_vm1, %v9149_v4 }
  0xdb   : > { %8111 = vmatprep.mubr.msk.bf16.mxu1 %vm598_vm1, %v9150_v5 }
  0xe2   : > { %8112 = vmatmul.mubr.msk.bf16.gmra.mrb[100].mxu1 %vm598_vm1, %v9152_v7  ;;  %v9168_v7 = vld [vmem:[%s9331_s28 + $0x1e0] sm:$0xff]  }
  0xe3   : > { %8115 = vmatprep.mubr.msk.bf16.mxu1 %vm598_vm1, %v9154_v9 }
  0xea   : > { %8116 = vmatmul.mubr.msk.bf16.gmra.mrb[104].mxu1 %vm598_vm1, %v9156_v11 }
  0xeb   : > { %8119 = vmatprep.mubr.msk.bf16.mxu1 %vm598_vm1, %v9158_v13 }
  0xed   : > { %v8007_v15 = vpop.f32.mrb[0].mxu1 }
  0xee   : > { %vm992_vm2 = vcmp.gt.f32.partialorder %v8007_v15, 0.0  ;;  %v1056_v16 = vmul.f32 0.2, %v8007_v15  ;;  %v735_v17 = vpop.f32.mrb[1].mxu1 }
  0xef   : > { %vm990_vm3 = vcmp.gt.f32.partialorder %v735_v17, 0.0  ;;  %v1054_v20 = vmul.f32 0.2, %v735_v17  ;;  %v8008_v21 = vpop.f32.mrb[2].mxu1 }
  0xf0   : > { %v738_v23 = vpop.f32.mrb[3].mxu1  ;;  %v1120_v24 = vsel %vm992_vm2, %v8007_v15, %v1056_v16  ;;  %v9173_v16 = vld [vmem:[%s10452_s2 + $0x148] sm:$0xff]  }
  0xf1   : > { %vm991_vm4 = vcmp.gt.f32.partialorder %v738_v23, 0.0  ;;  %v9499_v25 = vsel %vm990_vm3, %v735_v17, %v1054_v20  ;;  %v1055_v26 = vmul.f32 0.2, %v738_v23  ;;  %v3590_v28 = vrot.slane %v1120_v24, 1 }
  0xf2   : > { %10508 = vst [vmem:[#allocation3_spill] sm:$0xff] %v9499_v25  ;;  %8120 = vmatmul.mubr.msk.bf16.gmra.mrb[108].mxu1 %vm598_vm1, %v9160_v18  ;;  %v3976_v29 = vrot.slane %v1120_v24, 2  ;;  %v3587_v33 = vrot.slane %v9499_v25, 1  ;;  %v3973_v37 = vrot.slane %v9499_v25, 2 }
  0xf3   : > { %8123 = vmatprep.mubr.msk.bf16.mxu1 %vm598_vm1, %v9162_v22  ;;  %v9506_v30 = vsel %vm991_vm4, %v738_v23, %v1055_v26  ;;  %v9169_v23 = vld [vmem:[%s9331_s28 + $0x1e8] sm:$0xff]  }
  0xf4   : > { %10509 = vst [vmem:[#allocation4_spill] sm:$0xff] %v9506_v30  ;;  %v3974_v31 = vrot.slane %v9506_v30, 2  ;;  %v3588_v34 = vrot.slane %v9506_v30, 1 }
  0xf5   : > { %v8011_v32 = vpop.f32.mrb[4].mxu1 }
  0xf6   : > { %vm996_vm7 = vcmp.gt.f32.partialorder %v8011_v32, 0.0  ;;  %v1060_v38 = vmul.f32 0.2, %v8011_v32  ;;  %v751_v39 = vpop.f32.mrb[5].mxu1  ;;  %v3589_v43 = vsel %vm2266_vm6, %v3587_v33, %v3588_v34  ;;  %v3591_v44 = vsel %vm2266_vm6, %v3588_v34, %v3590_v28 }
  0xf7   : > { %vm994_vm8 = vcmp.gt.f32.partialorder %v751_v39, 0.0  ;;  %v1058_v41 = vmul.f32 0.2, %v751_v39  ;;  %v8012_v42 = vpop.f32.mrb[6].mxu1  ;;  %v3699_v47 = vpack.c.bf16 %v3591_v44, %v3589_v43  ;;  %v9522_v48 = vsel %vm2830_vm5, %v3973_v37, %v3974_v31 }
  0xf8   : > { %v754_v46 = vpop.f32.mrb[7].mxu1  ;;  %v9525_v49 = vsel %vm2830_vm5, %v3974_v31, %v3976_v29  ;;  %v1124_v50 = vsel %vm996_vm7, %v8011_v32, %v1060_v38 }
  0xf9   : > { %vm995_vm9 = vcmp.gt.f32.partialorder %v754_v46, 0.0  ;;  %v1122_v51 = vsel %vm994_vm8, %v751_v39, %v1058_v41  ;;  %v1059_v52 = vmul.f32 0.2, %v754_v46  ;;  %8347 = vmatprep.mubr.bf16.mxu0 %v3699_v47  ;;  %v3981_v54 = vrot.slane %v1124_v50, 2 }
  0xfa   : > { %8124 = vmatmul.mubr.msk.bf16.gmra.mrb[112].mxu1 %vm598_vm1, %v9164_v35  ;;  %v3978_v56 = vrot.slane %v1122_v51, 2  ;;  %v3595_v62 = vrot.slane %v1124_v50, 1  ;;  %v3592_v0 = vrot.slane %v1122_v51, 1  ;;  %v9170_v35 = vld [vmem:[%s9331_s28 + $0x1f0] sm:$0xff]   ;;  %v10455_v41 = vmov 0.0  }
  0xfb   : > { %8127 = vmatprep.mubr.msk.bf16.mxu1 %vm598_vm1, %v9166_v45  ;;  %v1123_v55 = vsel %vm995_vm9, %v754_v46, %v1059_v52  ;;  %v2267_v42 = vrot.slane %v10455_v41, 1  ;;  %v9175_v46 = vld [vmem:[%s10452_s2 + $0x158] sm:$0xff]  }
  0xfc   : > { %v3593_v57 = vrot.slane %v1123_v55, 1  ;;  %v3979_v58 = vrot.slane %v1123_v55, 2  ;;  %v9532_v61 = vpack.c.bf16 %v1123_v55, %v1122_v51 }
  0xfd   : > { %v8015_v59 = vpop.f32.mrb[8].mxu1  ;;  %v9574_v52 = vpack.c.bf16 %v2267_v42, %v2267_v42 }
  0xfe   : > { %10510 = vst [vmem:[#allocation5_spill] sm:$0xff] %v9532_v61  ;;  %vm1000_vm10 = vcmp.gt.f32.partialorder %v8015_v59, 0.0  ;;  %v1064_v1 = vmul.f32 0.2, %v8015_v59  ;;  %v767_v2 = vpop.f32.mrb[9].mxu1  ;;  %v3980_v3 = vsel %vm2830_vm5, %v3978_v56, %v3979_v58  ;;  %v3982_v4 = vsel %vm2830_vm5, %v3979_v58, %v3981_v54  ;;  %v9171_v58 = vld [vmem:[%s9331_s28 + $0x1f8] sm:$0xff]  }
  0xff   : > { %vm998_vm11 = vcmp.gt.f32.partialorder %v767_v2, 0.0  ;;  %v1062_v5 = vmul.f32 0.2, %v767_v2  ;;  %v8016_v6 = vpop.f32.mrb[10].mxu1  ;;  %v9537_v8 = vpack.c.bf16 %v3982_v4, %v3980_v3  ;;  %v3594_v10 = vsel %vm2266_vm6, %v3592_v0, %v3593_v57  ;;  %10516 = vst [vmem:[#allocation11_spill] sm:$0xff] %v9574_v52 }
 0x100   : > { %v770_v9 = vpop.f32.mrb[11].mxu1  ;;  %v3596_v11 = vsel %vm2266_vm6, %v3593_v57, %v3595_v62  ;;  %v1128_v12 = vsel %vm1000_vm10, %v8015_v59, %v1064_v1  ;;  %v9177_v6 = vld [vmem:[%s10452_s2 + $0x160] sm:$0xff]  }
 0x101   : > { %10511 = vst [vmem:[#allocation6_spill] sm:$0xff] %v9537_v8  ;;  %vm999_vm12 = vcmp.gt.f32.partialorder %v770_v9, 0.0  ;;  %v1126_v13 = vsel %vm998_vm11, %v767_v2, %v1062_v5  ;;  %v1063_v14 = vmul.f32 0.2, %v770_v9  ;;  %v9541_v15 = vpack.c.bf16 %v3596_v11, %v3594_v10 }
 0x102   : > { %8128 = vmatmul.mubr.msk.bf16.gmra.mrb[116].mxu1 %vm598_vm1, %v9167_v60  ;;  %v3600_v17 = vrot.slane %v1128_v12, 1  ;;  %v3597_v19 = vrot.slane %v1126_v13, 1  ;;  %v3986_v26 = vrot.slane %v1128_v12, 2  ;;  %v3983_v27 = vrot.slane %v1126_v13, 2 }
 0x103   : > { %10512 = vst [vmem:[#allocation7_spill] sm:$0xff] %v9541_v15  ;;  %8131 = vmatprep.mubr.msk.bf16.mxu1 %vm598_vm1, %v9168_v7  ;;  %v1127_v18 = vsel %vm999_vm12, %v770_v9, %v1063_v14  ;;  %8348 = vmatmul.mubr.bf16.vlgmr.msra.gmra.mrb[0].mxu0 %v9541_v15 }
 0x104   : > { %v3598_v20 = vrot.slane %v1127_v18, 1  ;;  %v3984_v21 = vrot.slane %v1127_v18, 2  ;;  %8380 = vmatpush3.bf16.msra.mxu0 %v9455_v63  ;;  %v9551_v24 = vpack.c.bf16 %v1127_v18, %v1126_v13  ;;  %v9174_v63 = vld [vmem:[%s10452_s2 + $0x150] sm:$0xff]  }
 0x105   : > { %v8019_v22 = vpop.f32.mrb[12].mxu1  ;;  %8381 = vmatprep.subr.bf16.mxu0 %v9173_v16 }
 0x106   : > { %10513 = vst [vmem:[#allocation8_spill] sm:$0xff] %v9551_v24  ;;  %vm1004_vm13 = vcmp.gt.f32.partialorder %v8019_v22, 0.0  ;;  %v1068_v28 = vmul.f32 0.2, %v8019_v22  ;;  %v783_v29 = vpop.f32.mrb[13].mxu1  ;;  %v3599_v33 = vsel %vm2266_vm6, %v3597_v19, %v3598_v20  ;;  %v3601_v34 = vsel %vm2266_vm6, %v3598_v20, %v3600_v17 }
 0x107   : > { %vm1002_vm14 = vcmp.gt.f32.partialorder %v783_v29, 0.0  ;;  %v1066_v31 = vmul.f32 0.2, %v783_v29  ;;  %v8020_v32 = vpop.f32.mrb[14].mxu1  ;;  %v9559_v38 = vpack.c.bf16 %v3601_v34, %v3599_v33  ;;  %v3985_v39 = vsel %vm2830_vm5, %v3983_v27, %v3984_v21 }
 0x108   : > { %v786_v37 = vpop.f32.mrb[15].mxu1  ;;  %v3987_v40 = vsel %vm2830_vm5, %v3984_v21, %v3986_v26  ;;  %v1132_v43 = vsel %vm1004_vm13, %v8019_v22, %v1068_v28  ;;  %8382 = vmatpush3.bf16.msra.mxu0 %v9173_v16  ;;  %v9179_v16 = vld [vmem:[%s10452_s2 + $0x168] sm:$0xff]   ;;  %v9181_v26 = vld [vmem:[%s10452_s2 + $0x170] sm:$0xff]  }
 0x109   : > { %10514 = vst [vmem:[#allocation9_spill] sm:$0xff] %v9559_v38  ;;  %vm1003_vm15 = vcmp.gt.f32.partialorder %v786_v37, 0.0  ;;  %v1130_v44 = vsel %vm1002_vm14, %v783_v29, %v1066_v31  ;;  %v1067_v45 = vmul.f32 0.2, %v786_v37  ;;  %8351 = vmatprep.mubr.bf16.mxu0 %v9559_v38  ;;  %v9571_v47 = vpack.c.bf16 %v3987_v40, %v3985_v39  ;;  %8383 = vmatprep.subr.bf16.mxu0 %v9174_v63 }
 0x10a   : > { %8132 = vmatmul.mubr.msk.bf16.gmra.mrb[120].mxu1 %vm598_vm1, %v9169_v23  ;;  %v3605_v50 = vrot.slane %v1132_v43, 1  ;;  %v3602_v54 = vrot.slane %v1130_v44, 1  ;;  %v3991_v60 = vrot.slane %v1132_v43, 2  ;;  %v3988_v62 = vrot.slane %v1130_v44, 2 }
 0x10b   : > { %10515 = vst [vmem:[#allocation10_spill] sm:$0xff] %v9571_v47  ;;  %8135 = vmatprep.mubr.msk.bf16.mxu1 %vm598_vm1, %v9170_v35  ;;  %v1131_v51 = vsel %vm1003_vm15, %v786_v37, %v1067_v45 }
 0x10c   : > { %v3603_v55 = vrot.slane %v1131_v51, 1  ;;  %v3989_v56 = vrot.slane %v1131_v51, 2  ;;  %8384 = vmatpush3.bf16.msra.mxu0 %v9174_v63  ;;  %v9577_v59 = vpack.c.bf16 %v1131_v51, %v1130_v44 }
 0x10d   : > { %v8023_v57 = vpop.f32.mrb[16].mxu1  ;;  %8385 = vmatprep.subr.bf16.mxu0 %v9175_v46 }
 0x10e   : > { %10517 = vst [vmem:[#allocation12_spill] sm:$0xff] %v9577_v59  ;;  %vm1008_vm2 = vcmp.gt.f32.partialorder %v8023_v57, 0.0  ;;  %v1072_v0 = vmul.f32 0.2, %v8023_v57  ;;  %v799_v1 = vpop.f32.mrb[17].mxu1  ;;  %v3604_v4 = vsel %vm2266_vm6, %v3602_v54, %v3603_v55  ;;  %v3606_v5 = vsel %vm2266_vm6, %v3603_v55, %v3605_v50 }
 0x10f   : > { %vm1006_vm3 = vcmp.gt.f32.partialorder %v799_v1, 0.0  ;;  %v1070_v2 = vmul.f32 0.2, %v799_v1  ;;  %v8024_v3 = vpop.f32.mrb[18].mxu1  ;;  %v9584_v9 = vpack.c.bf16 %v3606_v5, %v3604_v4  ;;  %v3990_v10 = vsel %vm2830_vm5, %v3988_v62, %v3989_v56 }
 0x110   : > { %v802_v7 = vpop.f32.mrb[19].mxu1  ;;  %v3992_v11 = vsel %vm2830_vm5, %v3989_v56, %v3991_v60  ;;  %v1136_v12 = vsel %vm1008_vm2, %v8023_v57, %v1072_v0  ;;  %8386 = vmatpush3.bf16.msra.mxu0 %v9175_v46  ;;  %v9183_v46 = vld [vmem:[%s10452_s2 + $0x178] sm:$0xff]   ;;  %v9616_v60 = vld [vmem:[%s10452_s2 + $0x180] sm:$0xff]  }
 0x111   : > { %10518 = vst [vmem:[#allocation13_spill] sm:$0xff] %v9584_v9  ;;  %vm1007_vm4 = vcmp.gt.f32.partialorder %v802_v7, 0.0  ;;  %v1134_v13 = vsel %vm1006_vm3, %v799_v1, %v1070_v2  ;;  %v1071_v14 = vmul.f32 0.2, %v802_v7  ;;  %8352 = vmatmul.mubr.bf16.gmra.mrb[4].mxu0 %v9584_v9  ;;  %v9593_v17 = vpack.c.bf16 %v3992_v11, %v3990_v10  ;;  %8387 = vmatprep.subr.bf16.mxu0 %v9177_v6 }
 0x112   : > { %8136 = vmatmul.mubr.msk.bf16.gmra.mrb[124].mxu1 %vm598_vm1, %v9171_v58  ;;  %v3610_v18 = vrot.slane %v1136_v12, 1  ;;  %v3607_v20 = vrot.slane %v1134_v13, 1  ;;  %v3996_v28 = vrot.slane %v1136_v12, 2  ;;  %v3993_v29 = vrot.slane %v1134_v13, 2 }
 0x113   : > { %10519 = vst [vmem:[#allocation14_spill] sm:$0xff] %v9593_v17  ;;  %8155 = vmatprep.mubr.bf16.mxu1 %v9574_v52  ;;  %v1135_v19 = vsel %vm1007_vm4, %v802_v7, %v1071_v14 }
 0x114   : > { %v3608_v21 = vrot.slane %v1135_v19, 1  ;;  %v3994_v22 = vrot.slane %v1135_v19, 2  ;;  %8388 = vmatpush3.bf16.msra.mxu0 %v9177_v6  ;;  %v9599_v27 = vpack.c.bf16 %v1135_v19, %v1134_v13 }
 0x115   : > { %v8027_v23 = vpop.f32.mrb[20].mxu1  ;;  %8389 = vmatprep.subr.bf16.mxu0 %v9179_v16 }
 0x116   : > { %10520 = vst [vmem:[#allocation15_spill] sm:$0xff] %v9599_v27  ;;  %vm1012_vm1 = vcmp.gt.f32.partialorder %v8027_v23, 0.0  ;;  %v1076_v31 = vmul.f32 0.2, %v8027_v23  ;;  %v815_v32 = vpop.f32.mrb[21].mxu1  ;;  %v3609_v35 = vsel %vm2266_vm6, %v3607_v20, %v3608_v21  ;;  %v3611_v63 = vsel %vm2266_vm6, %v3608_v21, %v3610_v18 }
 0x117   : > { %vm1010_vm7 = vcmp.gt.f32.partialorder %v815_v32, 0.0  ;;  %v1074_v33 = vmul.f32 0.2, %v815_v32  ;;  %v8028_v34 = vpop.f32.mrb[22].mxu1  ;;  %v9603_v39 = vpack.c.bf16 %v3611_v63, %v3609_v35  ;;  %v3995_v40 = vsel %vm2830_vm5, %v3993_v29, %v3994_v22 }
 0x118   : > { %v818_v37 = vpop.f32.mrb[23].mxu1  ;;  %v3997_v42 = vsel %vm2830_vm5, %v3994_v22, %v3996_v28  ;;  %v1140_v43 = vsel %vm1012_vm1, %v8027_v23, %v1076_v31  ;;  %8390 = vmatpush3.bf16.msra.mxu0 %v9179_v16 }
 0x119   : > { %10521 = vst [vmem:[#allocation16_spill] sm:$0xff] %v9603_v39  ;;  %vm1011_vm8 = vcmp.gt.f32.partialorder %v818_v37, 0.0  ;;  %v1138_v44 = vsel %vm1010_vm7, %v815_v32, %v1074_v33  ;;  %v1075_v45 = vmul.f32 0.2, %v818_v37  ;;  %8355 = vmatprep.mubr.bf16.mxu0 %v9603_v39  ;;  %8391 = vmatprep.subr.bf16.mxu0 %v9181_v26  ;;  %v9611_v50 = vpack.c.bf16 %v3997_v42, %v3995_v40 }
 0x11a   : > { %v3615_v51 = vrot.slane %v1140_v43, 1  ;;  %v3612_v55 = vrot.slane %v1138_v44, 1  ;;  %v4001_v0 = vrot.slane %v1140_v43, 2  ;;  %v3998_v1 = vrot.slane %v1138_v44, 2 }
 0x11b   : > { %10522 = vst [vmem:[#allocation17_spill] sm:$0xff] %v9611_v50  ;;  %v1139_v54 = vsel %vm1011_vm8, %v818_v37, %v1075_v45 }
 0x11c   : > { %v3613_v56 = vrot.slane %v1139_v54, 1  ;;  %v3999_v57 = vrot.slane %v1139_v54, 2  ;;  %8392 = vmatpush3.bf16.msra.mxu0 %v9181_v26  ;;  %v9618_v62 = vpack.c.bf16 %v1139_v54, %v1138_v44 }
 0x11d   : > { %v8031_v58 = vpop.f32.mrb[24].mxu1  ;;  %8393 = vmatprep.subr.bf16.mxu0 %v9183_v46 }
 0x11e   : > { %10523 = vst [vmem:[#allocation18_spill] sm:$0xff] %v9618_v62  ;;  %vm1016_vm9 = vcmp.gt.f32.partialorder %v8031_v58, 0.0  ;;  %v1080_v2 = vmul.f32 0.2, %v8031_v58  ;;  %v831_v3 = vpop.f32.mrb[25].mxu1  ;;  %v3614_v6 = vsel %vm2266_vm6, %v3612_v55, %v3613_v56  ;;  %v3616_v7 = vsel %vm2266_vm6, %v3613_v56, %v3615_v51 }
 0x11f   : > { %vm1014_vm10 = vcmp.gt.f32.partialorder %v831_v3, 0.0  ;;  %v1078_v4 = vmul.f32 0.2, %v831_v3  ;;  %v8032_v5 = vpop.f32.mrb[26].mxu1  ;;  %v9622_v11 = vpack.c.bf16 %v3616_v7, %v3614_v6  ;;  %v4000_v12 = vsel %vm2830_vm5, %v3998_v1, %v3999_v57 }
 0x120   : > { %v834_v10 = vpop.f32.mrb[27].mxu1  ;;  %v4002_v13 = vsel %vm2830_vm5, %v3999_v57, %v4001_v0  ;;  %v1144_v14 = vsel %vm1016_vm9, %v8031_v58, %v1080_v2  ;;  %8394 = vmatpush3.bf16.msra.mxu0 %v9183_v46 }
 0x121   : > { %10524 = vst [vmem:[#allocation19_spill] sm:$0xff] %v9622_v11  ;;  %vm1015_vm11 = vcmp.gt.f32.partialorder %v834_v10, 0.0  ;;  %v1142_v16 = vsel %vm1014_vm10, %v831_v3, %v1078_v4  ;;  %v1079_v18 = vmul.f32 0.2, %v834_v10  ;;  %8356 = vmatmul.mubr.bf16.gmra.mrb[8].mxu0 %v9622_v11  ;;  %8427 = vmatprep.subr.bf16.mxu0 %v9616_v60  ;;  %v9628_v19 = vpack.c.bf16 %v4002_v13, %v4000_v12 }
 0x122   : > { %v3620_v20 = vrot.slane %v1144_v14, 1  ;;  %v3617_v22 = vrot.slane %v1142_v16, 1  ;;  %v4006_v31 = vrot.slane %v1144_v14, 2  ;;  %v4003_v32 = vrot.slane %v1142_v16, 2 }
 0x123   : > { %10525 = vst [vmem:[#allocation20_spill] sm:$0xff] %v9628_v19  ;;  %v1143_v21 = vsel %vm1015_vm11, %v834_v10, %v1079_v18 }
 0x124   : > { %v3618_v23 = vrot.slane %v1143_v21, 1  ;;  %v4004_v26 = vrot.slane %v1143_v21, 2  ;;  %v9630_v29 = vpack.c.bf16 %v1143_v21, %v1142_v16 }
 0x125   : > { %v8035_v28 = vpop.f32.mrb[28].mxu1 }
 0x126   : > { %10526 = vst [vmem:[#allocation21_spill] sm:$0xff] %v9630_v29  ;;  %vm1020_vm12 = vcmp.gt.f32.partialorder %v8035_v28, 0.0  ;;  %v1084_v33 = vmul.f32 0.2, %v8035_v28  ;;  %v847_v34 = vpop.f32.mrb[29].mxu1  ;;  %v3619_v37 = vsel %vm2266_vm6, %v3617_v22, %v3618_v23  ;;  %v3621_v40 = vsel %vm2266_vm6, %v3618_v23, %v3620_v20 }
 0x127   : > { %vm1018_vm13 = vcmp.gt.f32.partialorder %v847_v34, 0.0  ;;  %v1082_v35 = vmul.f32 0.2, %v847_v34  ;;  %v8036_v63 = vpop.f32.mrb[30].mxu1  ;;  %v9634_v43 = vpack.c.bf16 %v3621_v40, %v3619_v37  ;;  %v4005_v44 = vsel %vm2830_vm5, %v4003_v32, %v4004_v26 }
 0x128   : > { %v850_v42 = vpop.f32.mrb[31].mxu1  ;;  %v4007_v45 = vsel %vm2830_vm5, %v4004_v26, %v4006_v31  ;;  %v1148_v46 = vsel %vm1020_vm12, %v8035_v28, %v1084_v33 }
 0x129   : > { %10527 = vst [vmem:[#allocation22_spill] sm:$0xff] %v9634_v43  ;;  %vm1019_vm14 = vcmp.gt.f32.partialorder %v850_v42, 0.0  ;;  %v1146_v51 = vsel %vm1018_vm13, %v847_v34, %v1082_v35  ;;  %v1083_v54 = vmul.f32 0.2, %v850_v42  ;;  %8359 = vmatprep.mubr.bf16.mxu0 %v9634_v43  ;;  %v9639_v55 = vpack.c.bf16 %v4007_v45, %v4005_v44 }
 0x12a   : > { %v3625_v56 = vrot.slane %v1148_v46, 1  ;;  %v3622_v58 = vrot.slane %v1146_v51, 1  ;;  %v4011_v4 = vrot.slane %v1148_v46, 2  ;;  %v4008_v5 = vrot.slane %v1146_v51, 2 }
 0x12b   : > { %10528 = vst [vmem:[#allocation23_spill] sm:$0xff] %v9639_v55  ;;  %v1147_v57 = vsel %vm1019_vm14, %v850_v42, %v1083_v54 }
 0x12c   : > { %v3623_v0 = vrot.slane %v1147_v57, 1  ;;  %v4009_v1 = vrot.slane %v1147_v57, 2  ;;  %v9641_v3 = vpack.c.bf16 %v1147_v57, %v1146_v51 }
 0x12d   : > { %v8039_v2 = vpop.f32.mrb[32].mxu1 }
 0x12e   : > { %10529 = vst [vmem:[#allocation24_spill] sm:$0xff] %v9641_v3  ;;  %vm1024_vm15 = vcmp.gt.f32.partialorder %v8039_v2, 0.0  ;;  %v1088_v6 = vmul.f32 0.2, %v8039_v2  ;;  %v863_v7 = vpop.f32.mrb[33].mxu1  ;;  %v3624_v13 = vsel %vm2266_vm6, %v3622_v58, %v3623_v0  ;;  %v3626_v14 = vsel %vm2266_vm6, %v3623_v0, %v3625_v56 }
 0x12f   : > { %vm1022_vm2 = vcmp.gt.f32.partialorder %v863_v7, 0.0  ;;  %v1086_v10 = vmul.f32 0.2, %v863_v7  ;;  %v8040_v12 = vpop.f32.mrb[34].mxu1  ;;  %v9645_v18 = vpack.c.bf16 %v3626_v14, %v3624_v13  ;;  %v4010_v20 = vsel %vm2830_vm5, %v4008_v5, %v4009_v1 }
 0x130   : > { %v866_v16 = vpop.f32.mrb[35].mxu1  ;;  %v4012_v21 = vsel %vm2830_vm5, %v4009_v1, %v4011_v4  ;;  %v1152_v22 = vsel %vm1024_vm15, %v8039_v2, %v1088_v6 }
 0x131   : > { %10530 = vst [vmem:[#allocation25_spill] sm:$0xff] %v9645_v18  ;;  %vm1023_vm3 = vcmp.gt.f32.partialorder %v866_v16, 0.0  ;;  %v1150_v23 = vsel %vm1022_vm2, %v863_v7, %v1086_v10  ;;  %v1087_v26 = vmul.f32 0.2, %v866_v16  ;;  %8360 = vmatmul.mubr.bf16.gmra.mrb[12].mxu0 %v9645_v18  ;;  %v9650_v28 = vpack.c.bf16 %v4012_v21, %v4010_v20 }
 0x132   : > { %v3630_v31 = vrot.slane %v1152_v22, 1  ;;  %v3627_v33 = vrot.slane %v1150_v23, 1  ;;  %v4016_v40 = vrot.slane %v1152_v22, 2  ;;  %v4013_v42 = vrot.slane %v1150_v23, 2 }
 0x133   : > { %10531 = vst [vmem:[#allocation26_spill] sm:$0xff] %v9650_v28  ;;  %v1151_v32 = vsel %vm1023_vm3, %v866_v16, %v1087_v26 }
 0x134   : > { %v3628_v34 = vrot.slane %v1151_v32, 1  ;;  %v4014_v35 = vrot.slane %v1151_v32, 2  ;;  %v9652_v37 = vpack.c.bf16 %v1151_v32, %v1150_v23 }
 0x135   : > { %v8043_v63 = vpop.f32.mrb[36].mxu1 }
 0x136   : > { %10532 = vst [vmem:[#allocation27_spill] sm:$0xff] %v9652_v37  ;;  %vm1028_vm4 = vcmp.gt.f32.partialorder %v8043_v63, 0.0  ;;  %v1092_v44 = vmul.f32 0.2, %v8043_v63  ;;  %v879_v45 = vpop.f32.mrb[37].mxu1  ;;  %v3629_v54 = vsel %vm2266_vm6, %v3627_v33, %v3628_v34  ;;  %v3631_v56 = vsel %vm2266_vm6, %v3628_v34, %v3630_v31 }
 0x137   : > { %vm1026_vm1 = vcmp.gt.f32.partialorder %v879_v45, 0.0  ;;  %v1090_v46 = vmul.f32 0.2, %v879_v45  ;;  %v8044_v51 = vpop.f32.mrb[38].mxu1  ;;  %v9656_v58 = vpack.c.bf16 %v3631_v56, %v3629_v54  ;;  %v4015_v0 = vsel %vm2830_vm5, %v4013_v42, %v4014_v35 }
 0x138   : > { %v882_v57 = vpop.f32.mrb[39].mxu1  ;;  %v4017_v1 = vsel %vm2830_vm5, %v4014_v35, %v4016_v40  ;;  %v1156_v2 = vsel %vm1028_vm4, %v8043_v63, %v1092_v44 }
 0x139   : > { %10533 = vst [vmem:[#allocation28_spill] sm:$0xff] %v9656_v58  ;;  %vm1027_vm7 = vcmp.gt.f32.partialorder %v882_v57, 0.0  ;;  %v1154_v4 = vsel %vm1026_vm1, %v879_v45, %v1090_v46  ;;  %v1091_v5 = vmul.f32 0.2, %v882_v57  ;;  %8363 = vmatprep.mubr.bf16.mxu0 %v9656_v58  ;;  %v9661_v6 = vpack.c.bf16 %v4017_v1, %v4015_v0 }
 0x13a   : > { %v3635_v7 = vrot.slane %v1156_v2, 1  ;;  %v3632_v12 = vrot.slane %v1154_v4, 1  ;;  %v4021_v21 = vrot.slane %v1156_v2, 2  ;;  %v4018_v22 = vrot.slane %v1154_v4, 2 }
 0x13b   : > { %10534 = vst [vmem:[#allocation29_spill] sm:$0xff] %v9661_v6  ;;  %v1155_v10 = vsel %vm1027_vm7, %v882_v57, %v1091_v5 }
 0x13c   : > { %v3633_v13 = vrot.slane %v1155_v10, 1  ;;  %v4019_v14 = vrot.slane %v1155_v10, 2  ;;  %v9663_v20 = vpack.c.bf16 %v1155_v10, %v1154_v4 }
 0x13d   : > { %v8047_v16 = vpop.f32.mrb[40].mxu1 }
 0x13e   : > { %10535 = vst [vmem:[#allocation30_spill] sm:$0xff] %v9663_v20  ;;  %vm1032_vm8 = vcmp.gt.f32.partialorder %v8047_v16, 0.0  ;;  %v1096_v23 = vmul.f32 0.2, %v8047_v16  ;;  %v895_v26 = vpop.f32.mrb[41].mxu1  ;;  %v3634_v33 = vsel %vm2266_vm6, %v3632_v12, %v3633_v13  ;;  %v3636_v34 = vsel %vm2266_vm6, %v3633_v13, %v3635_v7 }
 0x13f   : > { %vm1030_vm9 = vcmp.gt.f32.partialorder %v895_v26, 0.0  ;;  %v1094_v31 = vmul.f32 0.2, %v895_v26  ;;  %v8048_v32 = vpop.f32.mrb[42].mxu1  ;;  %v9667_v63 = vpack.c.bf16 %v3636_v34, %v3634_v33  ;;  %v4020_v40 = vsel %vm2830_vm5, %v4018_v22, %v4019_v14 }
 0x140   : > { %v898_v35 = vpop.f32.mrb[43].mxu1  ;;  %v4022_v42 = vsel %vm2830_vm5, %v4019_v14, %v4021_v21  ;;  %v1160_v44 = vsel %vm1032_vm8, %v8047_v16, %v1096_v23 }
 0x141   : > { %10536 = vst [vmem:[#allocation31_spill] sm:$0xff] %v9667_v63  ;;  %vm1031_vm10 = vcmp.gt.f32.partialorder %v898_v35, 0.0  ;;  %v1158_v45 = vsel %vm1030_vm9, %v895_v26, %v1094_v31  ;;  %v1095_v46 = vmul.f32 0.2, %v898_v35  ;;  %8364 = vmatmul.mubr.bf16.gmra.mrb[16].mxu0 %v9667_v63  ;;  %v9672_v51 = vpack.c.bf16 %v4022_v42, %v4020_v40 }
 0x142   : > { %v3640_v54 = vrot.slane %v1160_v44, 1  ;;  %v3637_v57 = vrot.slane %v1158_v45, 1  ;;  %v4026_v5 = vrot.slane %v1160_v44, 2  ;;  %v4023_v7 = vrot.slane %v1158_v45, 2 }
 0x143   : > { %10537 = vst [vmem:[#allocation32_spill] sm:$0xff] %v9672_v51  ;;  %v1159_v56 = vsel %vm1031_vm10, %v898_v35, %v1095_v46 }
 0x144   : > { %v3638_v0 = vrot.slane %v1159_v56, 1  ;;  %v4024_v1 = vrot.slane %v1159_v56, 2  ;;  %v9674_v4 = vpack.c.bf16 %v1159_v56, %v1158_v45 }
 0x145   : > { %v8051_v2 = vpop.f32.mrb[44].mxu1 }
 0x146   : > { %10538 = vst [vmem:[#allocation33_spill] sm:$0xff] %v9674_v4  ;;  %vm1036_vm11 = vcmp.gt.f32.partialorder %v8051_v2, 0.0  ;;  %v1100_v10 = vmul.f32 0.2, %v8051_v2  ;;  %v911_v12 = vpop.f32.mrb[45].mxu1  ;;  %v3639_v16 = vsel %vm2266_vm6, %v3637_v57, %v3638_v0  ;;  %v3641_v21 = vsel %vm2266_vm6, %v3638_v0, %v3640_v54 }
 0x147   : > { %vm1034_vm12 = vcmp.gt.f32.partialorder %v911_v12, 0.0  ;;  %v1098_v13 = vmul.f32 0.2, %v911_v12  ;;  %v8052_v14 = vpop.f32.mrb[46].mxu1  ;;  %v9678_v23 = vpack.c.bf16 %v3641_v21, %v3639_v16  ;;  %v4025_v26 = vsel %vm2830_vm5, %v4023_v7, %v4024_v1 }
 0x148   : > { %v914_v22 = vpop.f32.mrb[47].mxu1  ;;  %v4027_v31 = vsel %vm2830_vm5, %v4024_v1, %v4026_v5  ;;  %v1164_v32 = vsel %vm1036_vm11, %v8051_v2, %v1100_v10 }
 0x149   : > { %10539 = vst [vmem:[#allocation34_spill] sm:$0xff] %v9678_v23  ;;  %vm1035_vm13 = vcmp.gt.f32.partialorder %v914_v22, 0.0  ;;  %v1162_v33 = vsel %vm1034_vm12, %v911_v12, %v1098_v13  ;;  %v1099_v34 = vmul.f32 0.2, %v914_v22  ;;  %8367 = vmatprep.mubr.bf16.mxu0 %v9678_v23  ;;  %v9683_v35 = vpack.c.bf16 %v4027_v31, %v4025_v26 }
 0x14a   : > { %v3645_v40 = vrot.slane %v1164_v32, 1  ;;  %v3642_v44 = vrot.slane %v1162_v33, 1  ;;  %v4031_v57 = vrot.slane %v1164_v32, 2  ;;  %v4028_v0 = vrot.slane %v1162_v33, 2 }
 0x14b   : > { %10540 = vst [vmem:[#allocation35_spill] sm:$0xff] %v9683_v35  ;;  %v1163_v42 = vsel %vm1035_vm13, %v914_v22, %v1099_v34 }
 0x14c   : > { %v3643_v45 = vrot.slane %v1163_v42, 1  ;;  %v4029_v46 = vrot.slane %v1163_v42, 2  ;;  %v9685_v56 = vpack.c.bf16 %v1163_v42, %v1162_v33  ;;  %v9699_v33 = vld [vmem:[%s10452_s2] sm:$0xff]  }
 0x14d   : > { %v8055_v54 = vpop.f32.mrb[48].mxu1  ;;  %8187 = vmatprep.subr.bf16.mxu1 %v9699_v33 }
 0x14e   : > { %10541 = vst [vmem:[#allocation36_spill] sm:$0xff] %v9685_v56  ;;  %vm1040_vm14 = vcmp.gt.f32.partialorder %v8055_v54, 0.0  ;;  %v1104_v1 = vmul.f32 0.2, %v8055_v54  ;;  %v927_v2 = vpop.f32.mrb[49].mxu1  ;;  %v3644_v10 = vsel %vm2266_vm6, %v3642_v44, %v3643_v45  ;;  %v3646_v12 = vsel %vm2266_vm6, %v3643_v45, %v3645_v40 }
 0x14f   : > { %vm1038_vm15 = vcmp.gt.f32.partialorder %v927_v2, 0.0  ;;  %v1102_v5 = vmul.f32 0.2, %v927_v2  ;;  %v8056_v7 = vpop.f32.mrb[50].mxu1  ;;  %v9689_v14 = vpack.c.bf16 %v3646_v12, %v3644_v10  ;;  %v4030_v16 = vsel %vm2830_vm5, %v4028_v0, %v4029_v46 }
 0x150   : > { %v930_v13 = vpop.f32.mrb[51].mxu1  ;;  %v4032_v21 = vsel %vm2830_vm5, %v4029_v46, %v4031_v57  ;;  %v1168_v22 = vsel %vm1040_vm14, %v8055_v54, %v1104_v1 }
 0x151   : > { %10542 = vst [vmem:[#allocation37_spill] sm:$0xff] %v9689_v14  ;;  %vm1039_vm2 = vcmp.gt.f32.partialorder %v930_v13, 0.0  ;;  %v1166_v26 = vsel %vm1038_vm15, %v927_v2, %v1102_v5  ;;  %v1103_v31 = vmul.f32 0.2, %v930_v13  ;;  %8368 = vmatmul.mubr.bf16.gmra.mrb[20].mxu0 %v9689_v14  ;;  %v9694_v32 = vpack.c.bf16 %v4032_v21, %v4030_v16 }
 0x152   : > { %v3650_v34 = vrot.slane %v1168_v22, 1  ;;  %v3647_v42 = vrot.slane %v1166_v26, 1  ;;  %v4036_v57 = vrot.slane %v1168_v22, 2  ;;  %v4033_v0 = vrot.slane %v1166_v26, 2 }
 0x153   : > { %10543 = vst [vmem:[#allocation38_spill] sm:$0xff] %v9694_v32  ;;  %v1167_v40 = vsel %vm1039_vm2, %v930_v13, %v1103_v31 }
 0x154   : > { %v3648_v44 = vrot.slane %v1167_v40, 1  ;;  %v4034_v45 = vrot.slane %v1167_v40, 2  ;;  %v9702_v54 = vpack.c.bf16 %v1167_v40, %v1166_v26 }
 0x155   : > { %v8059_v46 = vpop.f32.mrb[52].mxu1 }
 0x156   : > { %10544 = vst [vmem:[#allocation39_spill] sm:$0xff] %v9702_v54  ;;  %vm1044_vm3 = vcmp.gt.f32.partialorder %v8059_v46, 0.0  ;;  %v1108_v1 = vmul.f32 0.2, %v8059_v46  ;;  %v943_v2 = vpop.f32.mrb[53].mxu1  ;;  %v3649_v10 = vsel %vm2266_vm6, %v3647_v42, %v3648_v44  ;;  %v3651_v12 = vsel %vm2266_vm6, %v3648_v44, %v3650_v34 }
 0x157   : > { %vm1042_vm4 = vcmp.gt.f32.partialorder %v943_v2, 0.0  ;;  %v1106_v5 = vmul.f32 0.2, %v943_v2  ;;  %v8060_v7 = vpop.f32.mrb[54].mxu1  ;;  %v9706_v16 = vpack.c.bf16 %v3651_v12, %v3649_v10  ;;  %v4035_v21 = vsel %vm2830_vm5, %v4033_v0, %v4034_v45 }
 0x158   : > { %v946_v13 = vpop.f32.mrb[55].mxu1  ;;  %v4037_v31 = vsel %vm2830_vm5, %v4034_v45, %v4036_v57  ;;  %v1172_v40 = vsel %vm1044_vm3, %v8059_v46, %v1108_v1 }
 0x159   : > { %10545 = vst [vmem:[#allocation40_spill] sm:$0xff] %v9706_v16  ;;  %vm1043_vm1 = vcmp.gt.f32.partialorder %v946_v13, 0.0  ;;  %v1170_v22 = vsel %vm1042_vm4, %v943_v2, %v1106_v5  ;;  %v1107_v26 = vmul.f32 0.2, %v946_v13  ;;  %8371 = vmatprep.mubr.bf16.mxu0 %v9706_v16  ;;  %v9711_v36 = vpack.c.bf16 %v4037_v31, %v4035_v21 }
 0x15a   : > { %v3655_v7 = vrot.slane %v1172_v40, 1  ;;  %v3652_v42 = vrot.slane %v1170_v22, 1  ;;  %v4041_v12 = vrot.slane %v1172_v40, 2  ;;  %v4038_v0 = vrot.slane %v1170_v22, 2 }
 0x15b   : > { %10546 = vst [vmem:[#allocation41_spill] sm:$0xff] %v9711_v36  ;;  %v1171_v41 = vsel %vm1043_vm1, %v946_v13, %v1107_v26 }
 0x15c   : > { %v3653_v53 = vrot.slane %v1171_v41, 1  ;;  %v4039_v34 = vrot.slane %v1171_v41, 2  ;;  %v9713_v10 = vpack.c.bf16 %v1171_v41, %v1170_v22 }
 0x15d   : > { %v8063_v44 = vpop.f32.mrb[56].mxu1 }
 0x15e   : > { %10547 = vst [vmem:[#allocation42_spill] sm:$0xff] %v9713_v10  ;;  %vm1048_vm7 = vcmp.gt.f32.partialorder %v8063_v44, 0.0  ;;  %v1112_v45 = vmul.f32 0.2, %v8063_v44  ;;  %v959_v46 = vpop.f32.mrb[57].mxu1  ;;  %v3654_v2 = vsel %vm2266_vm6, %v3652_v42, %v3653_v53  ;;  %v3656_v5 = vsel %vm2266_vm6, %v3653_v53, %v3655_v7 }
 0x15f   : > { %vm1046_vm8 = vcmp.gt.f32.partialorder %v959_v46, 0.0  ;;  %v1110_v57 = vmul.f32 0.2, %v959_v46  ;;  %v8064_v1 = vpop.f32.mrb[58].mxu1  ;;  %v9717_v13 = vpack.c.bf16 %v3656_v5, %v3654_v2  ;;  %v4040_v31 = vsel %vm2830_vm5, %v4038_v0, %v4039_v34 }
 0x160   : > { %v962_v21 = vpop.f32.mrb[59].mxu1  ;;  %v4042_v41 = vsel %vm2830_vm5, %v4039_v34, %v4041_v12  ;;  %v1176_v26 = vsel %vm1048_vm7, %v8063_v44, %v1112_v45  ;;  %v10550_v42 = vpack.c.bf16 %v9525_v49, %v9522_v48 }
 0x161   : > { %10548 = vst [vmem:[#allocation43_spill] sm:$0xff] %v9717_v13  ;;  %vm1047_vm9 = vcmp.gt.f32.partialorder %v962_v21, 0.0  ;;  %v1174_v40 = vsel %vm1046_vm8, %v959_v46, %v1110_v57  ;;  %v1111_v22 = vmul.f32 0.2, %v962_v21  ;;  %8372 = vmatmul.mubr.bf16.gmra.mrb[24].mxu0 %v9717_v13  ;;  %v9722_v52 = vpack.c.bf16 %v4042_v41, %v4040_v31 }
 0x162   : > { %8395 = vmatprep.mubr.bf16.mxu0 %v10550_v42  ;;  %v4046_v53 = vrot.slane %v1176_v26, 2  ;;  %v4043_v1 = vrot.slane %v1174_v40, 2  ;;  %v3660_v34 = vrot.slane %v1176_v26, 1  ;;  %v3657_v44 = vrot.slane %v1174_v40, 1 }
 0x163   : > { %10549 = vst [vmem:[#allocation44_spill] sm:$0xff] %v9722_v52  ;;  %v1175_v7 = vsel %vm1047_vm9, %v962_v21, %v1111_v22  ;;  %v9189_v21 = vld [vmem:[%s10452_s2 + $0x188] sm:$0xff]  }
 0x164   : > { %v3658_v2 = vrot.slane %v1175_v7, 1  ;;  %v4044_v5 = vrot.slane %v1175_v7, 2  ;;  %v9727_v16 = vpack.c.bf16 %v1175_v7, %v1174_v40 }
 0x165   : > { %v8067_v0 = vpop.f32.mrb[60].mxu1 }
 0x166   : > { %10551 = vst [vmem:[#allocation45_spill] sm:$0xff] %v9727_v16  ;;  %vm1052_vm10 = vcmp.gt.f32.partialorder %v8067_v0, 0.0  ;;  %v1116_v12 = vmul.f32 0.2, %v8067_v0  ;;  %v975_v45 = vpop.f32.mrb[61].mxu1  ;;  %v4045_v31 = vsel %vm2830_vm5, %v4043_v1, %v4044_v5  ;;  %v4047_v48 = vsel %vm2830_vm5, %v4044_v5, %v4046_v53 }
 0x167   : > { %vm1050_vm11 = vcmp.gt.f32.partialorder %v975_v45, 0.0  ;;  %v1114_v46 = vmul.f32 0.2, %v975_v45  ;;  %v8068_v57 = vpop.f32.mrb[62].mxu1  ;;  %v9734_v41 = vpack.c.bf16 %v4047_v48, %v4045_v31  ;;  %v3659_v26 = vsel %vm2266_vm6, %v3657_v44, %v3658_v2  ;;  %v9190_v44 = vld [vmem:[%s10452_s2 + $0x190] sm:$0xff]  }
 0x168   : > { %v978_v49 = vpop.f32.mrb[63].mxu1  ;;  %v3661_v40 = vsel %vm2266_vm6, %v3658_v2, %v3660_v34  ;;  %v1180_v22 = vsel %vm1052_vm10, %v8067_v0, %v1116_v12 }
 0x169   : > { %10552 = vst [vmem:[#allocation46_spill] sm:$0xff] %v9734_v41  ;;  %vm1051_vm12 = vcmp.gt.f32.partialorder %v978_v49, 0.0  ;;  %v1178_v42 = vsel %vm1050_vm11, %v975_v45, %v1114_v46  ;;  %v1115_v7 = vmul.f32 0.2, %v978_v49  ;;  %8396 = vmatmul.mubr.bf16.vlgmr.msra.gmra.mrb[0].mxu0 %v9537_v8  ;;  %v9739_v1 = vpack.c.bf16 %v3661_v40, %v3659_v26 }
 0x16a   : > { %8399 = vmatprep.mubr.bf16.mxu0 %v9571_v47  ;;  %8428 = vmatpush3.bf16.msra.mxu0 %v9616_v60  ;;  %v3665_v53 = vrot.slane %v1180_v22, 1  ;;  %v3662_v2 = vrot.slane %v1178_v42, 1  ;;  %v4051_v46 = vrot.slane %v1180_v22, 2  ;;  %v4048_v57 = vrot.slane %v1178_v42, 2  ;;  %v9191_v22 = vld [vmem:[%s10452_s2 + $0x198] sm:$0xff]  }
 0x16b   : > { %10553 = vst [vmem:[#allocation47_spill] sm:$0xff] %v9739_v1  ;;  %v1179_v5 = vsel %vm1051_vm12, %v978_v49, %v1115_v7  ;;  %8429 = vmatprep.subr.bf16.mxu0 %v9189_v21 }
 0x16c   : > { %v3663_v0 = vrot.slane %v1179_v5, 1  ;;  %v4049_v34 = vrot.slane %v1179_v5, 2  ;;  %v9746_v45 = vpack.c.bf16 %v1179_v5, %v1178_v42 }
 0x16d   : > { %v8077_v12 = vpop.f32.mrb[64].mxu1 }
 0x16e   : > { %10554 = vst [vmem:[#allocation48_spill] sm:$0xff] %v9746_v45  ;;  %vm1882_vm13 = vcmp.gt.f32.partialorder %v8077_v12, 0.0  ;;  %v1946_v31 = vmul.f32 0.2, %v8077_v12  ;;  %v1625_v48 = vpop.f32.mrb[65].mxu1  ;;  %v3664_v60 = vsel %vm2266_vm6, %v3662_v2, %v3663_v0  ;;  %v3666_v49 = vsel %vm2266_vm6, %v3663_v0, %v3665_v53  ;;  %8430 = vmatpush3.bf16.msra.mxu0 %v9189_v21 }
 0x16f   : > { %vm1880_vm14 = vcmp.gt.f32.partialorder %v1625_v48, 0.0  ;;  %v1944_v26 = vmul.f32 0.2, %v1625_v48  ;;  %v8078_v40 = vpop.f32.mrb[66].mxu1  ;;  %v9750_v7 = vpack.c.bf16 %v3666_v49, %v3664_v60  ;;  %8431 = vmatprep.subr.bf16.mxu0 %v9190_v44  ;;  %v4050_v42 = vsel %vm2830_vm5, %v4048_v57, %v4049_v34  ;;  %v9192_v57 = vld [vmem:[%s10452_s2 + $0x1a0] sm:$0xff]  }
 0x170   : > { %v1628_v47 = vpop.f32.mrb[67].mxu1  ;;  %v4052_v5 = vsel %vm2830_vm5, %v4049_v34, %v4051_v46  ;;  %v2010_v8 = vsel %vm1882_vm13, %v8077_v12, %v1946_v31 }
 0x171   : > { %10555 = vst [vmem:[#allocation49_spill] sm:$0xff] %v9750_v7  ;;  %vm1881_vm15 = vcmp.gt.f32.partialorder %v1628_v47, 0.0  ;;  %v2008_v2 = vsel %vm1880_vm14, %v1625_v48, %v1944_v26  ;;  %v1945_v53 = vmul.f32 0.2, %v1628_v47  ;;  %8400 = vmatmul.mubr.bf16.gmra.mrb[4].mxu0 %v9593_v17  ;;  %v9758_v0 = vpack.c.bf16 %v4052_v5, %v4050_v42 }
 0x172   : > { %8403 = vmatprep.mubr.bf16.mxu0 %v9611_v50  ;;  %8432 = vmatpush3.bf16.msra.mxu0 %v9190_v44  ;;  %v2275_v21 = vrot.slane %v2010_v8, 1  ;;  %v2272_v49 = vrot.slane %v2008_v2, 1  ;;  %v2839_v48 = vrot.slane %v2010_v8, 2  ;;  %v2836_v26 = vrot.slane %v2008_v2, 2  ;;  %v9193_v8 = vld [vmem:[%s10452_s2 + $0x1a8] sm:$0xff]  }
 0x173   : > { %10556 = vst [vmem:[#allocation50_spill] sm:$0xff] %v9758_v0  ;;  %v2009_v60 = vsel %vm1881_vm15, %v1628_v47, %v1945_v53  ;;  %8433 = vmatprep.subr.bf16.mxu0 %v9191_v22 }
 0x174   : > { %v2273_v34 = vrot.slane %v2009_v60, 1  ;;  %v2837_v12 = vrot.slane %v2009_v60, 2  ;;  %v9764_v31 = vpack.c.bf16 %v2009_v60, %v2008_v2 }
 0x175   : > { %v8081_v46 = vpop.f32.mrb[68].mxu1 }
 0x176   : > { %vm1886_vm2 = vcmp.gt.f32.partialorder %v8081_v46, 0.0  ;;  %v1950_v40 = vmul.f32 0.2, %v8081_v46  ;;  %v1641_v42 = vpop.f32.mrb[69].mxu1  ;;  %v2274_v44 = vsel %vm2266_vm6, %v2272_v49, %v2273_v34  ;;  %v2276_v47 = vsel %vm2266_vm6, %v2273_v34, %v2275_v21  ;;  %8434 = vmatpush3.bf16.msra.mxu0 %v9191_v22  ;;  %v9201_v21 = vld [vmem:[%s10452_s2 + $0x8] sm:$0xff]  }
 0x177   : > { %vm1884_vm3 = vcmp.gt.f32.partialorder %v1641_v42, 0.0  ;;  %v1948_v5 = vmul.f32 0.2, %v1641_v42  ;;  %v8082_v53 = vpop.f32.mrb[70].mxu1  ;;  %v9768_v50 = vpack.c.bf16 %v2276_v47, %v2274_v44  ;;  %8435 = vmatprep.subr.bf16.mxu0 %v9192_v57  ;;  %v2838_v2 = vsel %vm2830_vm5, %v2836_v26, %v2837_v12 }
 0x178   : > { %v1644_v17 = vpop.f32.mrb[71].mxu1  ;;  %v2840_v60 = vsel %vm2830_vm5, %v2837_v12, %v2839_v48  ;;  %v2014_v13 = vsel %vm1886_vm2, %v8081_v46, %v1950_v40  ;;  %v9194_v12 = vld [vmem:[%s10452_s2 + $0x1b0] sm:$0xff]  }
 0x179   : > { %vm1885_vm4 = vcmp.gt.f32.partialorder %v1644_v17, 0.0  ;;  %v2012_v49 = vsel %vm1884_vm3, %v1641_v42, %v1948_v5  ;;  %v1949_v22 = vmul.f32 0.2, %v1644_v17  ;;  %8156 = vmatmul.mubr.bf16.vlgmr.msra.gmra.mrb[128].mxu1 %v9768_v50  ;;  %8404 = vmatmul.mubr.bf16.gmra.mrb[8].mxu0 %v9628_v19  ;;  %v9780_v34 = vpack.c.bf16 %v2840_v60, %v2838_v2 }
 0x17a   : > { %8407 = vmatprep.mubr.bf16.mxu0 %v9639_v55  ;;  %8436 = vmatpush3.bf16.msra.mxu0 %v9192_v57  ;;  %v2280_v26 = vrot.slane %v2014_v13, 1  ;;  %v2277_v46 = vrot.slane %v2012_v49, 1  ;;  %v9203_v57 = vld [vmem:[%s10452_s2 + $0x10] sm:$0xff]   ;;  %v2841_v5 = vrot.slane %v2012_v49, 2  ;;  %v2844_v55 = vrot.slane %v2014_v13, 2 }
 0x17b   : > { %v2013_v44 = vsel %vm1885_vm4, %v1644_v17, %v1949_v22  ;;  %8437 = vmatprep.subr.bf16.mxu0 %v9193_v8  ;;  %8188 = vmatpush3.bf16.msra.mxu1 %v9699_v33 }
 0x17c   : > { %v9787_v48 = vpack.c.bf16 %v2013_v44, %v2012_v49  ;;  %v2278_v40 = vrot.slane %v2013_v44, 1  ;;  %v2842_v42 = vrot.slane %v2013_v44, 2  ;;  %8189 = vmatprep.subr.bf16.mxu1 %v9201_v21  ;;  %v9195_v49 = vld [vmem:[%s10452_s2 + $0x1b8] sm:$0xff]  }
 0x17d   : > { %v8085_v47 = vpop.f32.mrb[72].mxu1 }
 0x17e   : > { %vm1890_vm1 = vcmp.gt.f32.partialorder %v8085_v47, 0.0  ;;  %v1954_v17 = vmul.f32 0.2, %v8085_v47  ;;  %v1657_v53 = vpop.f32.mrb[73].mxu1  ;;  %v2279_v33 = vsel %vm2266_vm6, %v2277_v46, %v2278_v40  ;;  %v2281_v22 = vsel %vm2266_vm6, %v2278_v40, %v2280_v26  ;;  %8438 = vmatpush3.bf16.msra.mxu0 %v9193_v8  ;;  %v9204_v8 = vld [vmem:[%s10452_s2 + $0x18] sm:$0xff]  }
 0x17f   : > { %vm1888_vm7 = vcmp.gt.f32.partialorder %v1657_v53, 0.0  ;;  %v1952_v2 = vmul.f32 0.2, %v1657_v53  ;;  %v8086_v60 = vpop.f32.mrb[74].mxu1  ;;  %v9794_v19 = vpack.c.bf16 %v2281_v22, %v2279_v33  ;;  %8439 = vmatprep.subr.bf16.mxu0 %v9194_v12  ;;  %8190 = vmatpush3.bf16.msra.mxu1 %v9201_v21  ;;  %v2843_v14 = vsel %vm2830_vm5, %v2841_v5, %v2842_v42  ;;  %v9814_v5 = vld [vmem:[%s10452_s2 + $0x1c0] sm:$0xff]  }
 0x180   : > { %v1660_v44 = vpop.f32.mrb[75].mxu1  ;;  %v2018_v23 = vsel %vm1890_vm1, %v8085_v47, %v1954_v17  ;;  %8191 = vmatprep.subr.bf16.mxu1 %v9203_v57  ;;  %v2845_v46 = vsel %vm2830_vm5, %v2842_v42, %v2844_v55  ;;  %v9206_v55 = vld [vmem:[%s10452_s2 + $0x20] sm:$0xff]  }
 0x181   : > { %vm1889_vm8 = vcmp.gt.f32.partialorder %v1660_v44, 0.0  ;;  %v2016_v13 = vsel %vm1888_vm7, %v1657_v53, %v1952_v2  ;;  %v1953_v26 = vmul.f32 0.2, %v1660_v44  ;;  %8159 = vmatprep.mubr.bf16.mxu1 %v9794_v19  ;;  %8408 = vmatmul.mubr.bf16.gmra.mrb[12].mxu0 %v9650_v28  ;;  %v9809_v21 = vpack.c.bf16 %v2845_v46, %v2843_v14 }
 0x182   : > { %8411 = vmatprep.mubr.bf16.mxu0 %v9661_v6  ;;  %8440 = vmatpush3.bf16.msra.mxu0 %v9194_v12  ;;  %v2285_v40 = vrot.slane %v2018_v23, 1  ;;  %v2282_v17 = vrot.slane %v2016_v13, 1  ;;  %v2846_v14 = vrot.slane %v2016_v13, 2  ;;  %v2849_v46 = vrot.slane %v2018_v23, 2 }
 0x183   : > { %v2017_v47 = vsel %vm1889_vm8, %v1660_v44, %v1953_v26  ;;  %8441 = vmatprep.subr.bf16.mxu0 %v9195_v49  ;;  %8192 = vmatpush3.bf16.msra.mxu1 %v9203_v57 }
 0x184   : > { %v2283_v53 = vrot.slane %v2017_v47, 1  ;;  %v2847_v2 = vrot.slane %v2017_v47, 2  ;;  %v9816_v33 = vpack.c.bf16 %v2017_v47, %v2016_v13  ;;  %8193 = vmatprep.subr.bf16.mxu1 %v9204_v8 }
 0x185   : > { %v8089_v60 = vpop.f32.mrb[76].mxu1 }
 0x186   : > { %vm1894_vm9 = vcmp.gt.f32.partialorder %v8089_v60, 0.0  ;;  %v1958_v12 = vmul.f32 0.2, %v8089_v60  ;;  %v1673_v42 = vpop.f32.mrb[77].mxu1  ;;  %v2284_v57 = vsel %vm2266_vm6, %v2282_v17, %v2283_v53  ;;  %v2286_v26 = vsel %vm2266_vm6, %v2283_v53, %v2285_v40  ;;  %8442 = vmatpush3.bf16.msra.mxu0 %v9195_v49 }
 0x187   : > { %vm1892_vm10 = vcmp.gt.f32.partialorder %v1673_v42, 0.0  ;;  %v1956_v22 = vmul.f32 0.2, %v1673_v42  ;;  %v8090_v44 = vpop.f32.mrb[78].mxu1  ;;  %v9823_v6 = vpack.c.bf16 %v2286_v26, %v2284_v57  ;;  %8475 = vmatprep.subr.bf16.mxu0 %v9814_v5  ;;  %8194 = vmatpush3.bf16.msra.mxu1 %v9204_v8  ;;  %v2848_v13 = vsel %vm2830_vm5, %v2846_v14, %v2847_v2 }
 0x188   : > { %v1676_v47 = vpop.f32.mrb[79].mxu1  ;;  %v2022_v28 = vsel %vm1894_vm9, %v8089_v60, %v1958_v12  ;;  %8195 = vmatprep.subr.bf16.mxu1 %v9206_v55  ;;  %v9207_v44 = vld [vmem:[%s10452_s2 + $0x28] sm:$0xff]   ;;  %v2850_v23 = vsel %vm2830_vm5, %v2847_v2, %v2849_v46 }
 0x189   : > { %vm1893_vm11 = vcmp.gt.f32.partialorder %v1676_v47, 0.0  ;;  %v2020_v17 = vsel %vm1892_vm10, %v1673_v42, %v1956_v22  ;;  %v1957_v40 = vmul.f32 0.2, %v1676_v47  ;;  %8160 = vmatmul.mubr.bf16.gmra.mrb[132].mxu1 %v9823_v6  ;;  %8412 = vmatmul.mubr.bf16.gmra.mrb[16].mxu0 %v9672_v51  ;;  %v9835_v49 = vpack.c.bf16 %v2850_v23, %v2848_v13  ;;  %v9209_v42 = vld [vmem:[%s10452_s2 + $0x30] sm:$0xff]  }
 0x18a   : > { %8415 = vmatprep.mubr.bf16.mxu0 %v9683_v35  ;;  %v2290_v8 = vrot.slane %v2022_v28, 1  ;;  %v2287_v60 = vrot.slane %v2020_v17, 1  ;;  %v2854_v22 = vrot.slane %v2022_v28, 2  ;;  %v2851_v2 = vrot.slane %v2020_v17, 2 }
 0x18b   : > { %v2021_v53 = vsel %vm1893_vm11, %v1676_v47, %v1957_v40  ;;  %8196 = vmatpush3.bf16.msra.mxu1 %v9206_v55 }
 0x18c   : > { %v2288_v14 = vrot.slane %v2021_v53, 1  ;;  %v2852_v12 = vrot.slane %v2021_v53, 2  ;;  %v9837_v26 = vpack.c.bf16 %v2021_v53, %v2020_v17  ;;  %8197 = vmatprep.subr.bf16.mxu1 %v9207_v44  ;;  %v9210_v17 = vld [vmem:[%s10452_s2 + $0x38] sm:$0xff]  }
 0x18d   : > { %v8093_v57 = vpop.f32.mrb[80].mxu1 }
 0x18e   : > { %vm1898_vm12 = vcmp.gt.f32.partialorder %v8093_v57, 0.0  ;;  %v1962_v46 = vmul.f32 0.2, %v8093_v57  ;;  %v1689_v13 = vpop.f32.mrb[81].mxu1  ;;  %v2289_v55 = vsel %vm2266_vm6, %v2287_v60, %v2288_v14  ;;  %v2291_v40 = vsel %vm2266_vm6, %v2288_v14, %v2290_v8 }
 0x18f   : > { %vm1896_vm13 = vcmp.gt.f32.partialorder %v1689_v13, 0.0  ;;  %v1960_v23 = vmul.f32 0.2, %v1689_v13  ;;  %v8094_v47 = vpop.f32.mrb[82].mxu1  ;;  %v9844_v53 = vpack.c.bf16 %v2291_v40, %v2289_v55  ;;  %8198 = vmatpush3.bf16.msra.mxu1 %v9207_v44  ;;  %v2853_v51 = vsel %vm2830_vm5, %v2851_v2, %v2852_v12 }
 0x190   : > { %v1692_v35 = vpop.f32.mrb[83].mxu1  ;;  %v2855_v63 = vsel %vm2830_vm5, %v2852_v12, %v2854_v22  ;;  %v2026_v28 = vsel %vm1898_vm12, %v8093_v57, %v1962_v46  ;;  %8199 = vmatprep.subr.bf16.mxu1 %v9209_v42  ;;  %v9861_v46 = vld [vmem:[%s10452_s2 + $0x80] sm:$0xff]  }
 0x191   : > { %vm1897_vm14 = vcmp.gt.f32.partialorder %v1692_v35, 0.0  ;;  %v2024_v47 = vsel %vm1896_vm13, %v1689_v13, %v1960_v23  ;;  %v1961_v58 = vmul.f32 0.2, %v1692_v35  ;;  %8163 = vmatprep.mubr.bf16.mxu1 %v9844_v53  ;;  %8416 = vmatmul.mubr.bf16.gmra.mrb[20].mxu0 %v9694_v32  ;;  %v9853_v8 = vpack.c.bf16 %v2855_v63, %v2853_v51 }
 0x192   : > { %8419 = vmatprep.mubr.bf16.mxu0 %v9711_v36  ;;  %v2295_v44 = vrot.slane %v2026_v28, 1  ;;  %v2292_v14 = vrot.slane %v2024_v47, 1  ;;  %v2859_v13 = vrot.slane %v2026_v28, 2  ;;  %v2856_v63 = vrot.slane %v2024_v47, 2 }
 0x193   : > { %v2025_v60 = vsel %vm1897_vm14, %v1692_v35, %v1961_v58  ;;  %8200 = vmatpush3.bf16.msra.mxu1 %v9209_v42 }
 0x194   : > { %v2293_v12 = vrot.slane %v2025_v60, 1  ;;  %v2857_v57 = vrot.slane %v2025_v60, 2  ;;  %v9856_v2 = vpack.c.bf16 %v2025_v60, %v2024_v47  ;;  %8201 = vmatprep.subr.bf16.mxu1 %v9210_v17 }
 0x195   : > { %v8097_v22 = vpop.f32.mrb[84].mxu1 }
 0x196   : > { %vm1902_vm15 = vcmp.gt.f32.partialorder %v8097_v22, 0.0  ;;  %v1966_v51 = vmul.f32 0.2, %v8097_v22  ;;  %v1705_v23 = vpop.f32.mrb[85].mxu1  ;;  %v2294_v42 = vsel %vm2266_vm6, %v2292_v14, %v2293_v12  ;;  %v2296_v55 = vsel %vm2266_vm6, %v2293_v12, %v2295_v44 }
 0x197   : > { %vm1900_vm2 = vcmp.gt.f32.partialorder %v1705_v23, 0.0  ;;  %v1964_v58 = vmul.f32 0.2, %v1705_v23  ;;  %v8098_v35 = vpop.f32.mrb[86].mxu1  ;;  %v9865_v60 = vpack.c.bf16 %v2296_v55, %v2294_v42  ;;  %8202 = vmatpush3.bf16.msra.mxu1 %v9210_v17  ;;  %v2858_v36 = vsel %vm2830_vm5, %v2856_v63, %v2857_v57 }
 0x198   : > { %v1708_v40 = vpop.f32.mrb[87].mxu1  ;;  %v2860_v32 = vsel %vm2830_vm5, %v2857_v57, %v2859_v13  ;;  %v2030_v28 = vsel %vm1902_vm15, %v8097_v22, %v1966_v51  ;;  %8235 = vmatprep.subr.bf16.mxu1 %v9861_v46 }
 0x199   : > { %vm1901_vm3 = vcmp.gt.f32.partialorder %v1708_v40, 0.0  ;;  %v2028_v47 = vsel %vm1900_vm2, %v1705_v23, %v1964_v58  ;;  %v1965_v18 = vmul.f32 0.2, %v1708_v40  ;;  %8164 = vmatmul.mubr.bf16.gmra.mrb[136].mxu1 %v9865_v60  ;;  %8420 = vmatmul.mubr.bf16.gmra.mrb[24].mxu0 %v9722_v52  ;;  %v9872_v14 = vpack.c.bf16 %v2860_v32, %v2858_v36 }
 0x19a   : > { %8423 = vmatprep.mubr.bf16.mxu0 %v9734_v41  ;;  %v2300_v44 = vrot.slane %v2030_v28, 1  ;;  %v2297_v12 = vrot.slane %v2028_v47, 1  ;;  %v2864_v13 = vrot.slane %v2030_v28, 2  ;;  %v2861_v51 = vrot.slane %v2028_v47, 2 }
 0x19b   : > { %v2029_v17 = vsel %vm1901_vm3, %v1708_v40, %v1965_v18 }
 0x19c   : > { %v2298_v63 = vrot.slane %v2029_v17, 1  ;;  %v2862_v35 = vrot.slane %v2029_v17, 2  ;;  %v9875_v22 = vpack.c.bf16 %v2029_v17, %v2028_v47 }
 0x19d   : > { %v8101_v57 = vpop.f32.mrb[88].mxu1 }
 0x19e   : > { %vm1906_vm4 = vcmp.gt.f32.partialorder %v8101_v57, 0.0  ;;  %v1970_v23 = vmul.f32 0.2, %v8101_v57  ;;  %v1721_v58 = vpop.f32.mrb[89].mxu1  ;;  %v2299_v36 = vsel %vm2266_vm6, %v2297_v12, %v2298_v63  ;;  %v2301_v32 = vsel %vm2266_vm6, %v2298_v63, %v2300_v44 }
 0x19f   : > { %vm1904_vm1 = vcmp.gt.f32.partialorder %v1721_v58, 0.0  ;;  %v1968_v42 = vmul.f32 0.2, %v1721_v58  ;;  %v8102_v55 = vpop.f32.mrb[90].mxu1  ;;  %v9879_v18 = vpack.c.bf16 %v2301_v32, %v2299_v36  ;;  %v2863_v40 = vsel %vm2830_vm5, %v2861_v51, %v2862_v35 }
 0x1a0   : > { %v1724_v41 = vpop.f32.mrb[91].mxu1  ;;  %v2865_v17 = vsel %vm2830_vm5, %v2862_v35, %v2864_v13  ;;  %v2034_v52 = vsel %vm1906_vm4, %v8101_v57, %v1970_v23 }
 0x1a1   : > { %vm1905_vm7 = vcmp.gt.f32.partialorder %v1724_v41, 0.0  ;;  %v2032_v28 = vsel %vm1904_vm1, %v1721_v58, %v1968_v42  ;;  %v1969_v47 = vmul.f32 0.2, %v1724_v41  ;;  %8167 = vmatprep.mubr.bf16.mxu1 %v9879_v18  ;;  %8424 = vmatmul.mubr.bf16.gmra.mrb[28].mxu0 %v9758_v0  ;;  %v9885_v55 = vpack.c.bf16 %v2865_v17, %v2863_v40 }
 0x1a2   : > { %8443 = vmatprep.mubr.bf16.mxu0 %v9764_v31  ;;  %v2305_v44 = vrot.slane %v2034_v52, 1  ;;  %v2302_v63 = vrot.slane %v2032_v28, 1  ;;  %v2869_v35 = vrot.slane %v2034_v52, 2  ;;  %v2866_v57 = vrot.slane %v2032_v28, 2 }
 0x1a3   : > { %v2033_v12 = vsel %vm1905_vm7, %v1724_v41, %v1969_v47  ;;  %v9197_v47 = vld [vmem:[%s10452_s2 + $0x1c8] sm:$0xff]  }
 0x1a4   : > { %v2303_v36 = vrot.slane %v2033_v12, 1  ;;  %v2867_v32 = vrot.slane %v2033_v12, 2  ;;  %v9888_v43 = vpack.c.bf16 %v2033_v12, %v2032_v28 }
 0x1a5   : > { %v8105_v51 = vpop.f32.mrb[92].mxu1 }
 0x1a6   : > { %vm1910_vm8 = vcmp.gt.f32.partialorder %v8105_v51, 0.0  ;;  %v1974_v13 = vmul.f32 0.2, %v8105_v51  ;;  %v1737_v23 = vpop.f32.mrb[93].mxu1  ;;  %v2304_v40 = vsel %vm2266_vm6, %v2302_v63, %v2303_v36  ;;  %v2306_v17 = vsel %vm2266_vm6, %v2303_v36, %v2305_v44 }
 0x1a7   : > { %vm1908_vm9 = vcmp.gt.f32.partialorder %v1737_v23, 0.0  ;;  %v1972_v58 = vmul.f32 0.2, %v1737_v23  ;;  %v8106_v42 = vpop.f32.mrb[94].mxu1  ;;  %v9892_v41 = vpack.c.bf16 %v2306_v17, %v2304_v40  ;;  %v2868_v52 = vsel %vm2830_vm5, %v2866_v57, %v2867_v32 }
 0x1a8   : > { %v1740_v0 = vpop.f32.mrb[95].mxu1  ;;  %v2870_v28 = vsel %vm2830_vm5, %v2867_v32, %v2869_v35  ;;  %v2038_v12 = vsel %vm1910_vm8, %v8105_v51, %v1974_v13  ;;  %v9198_v32 = vld [vmem:[%s10452_s2 + $0x1d0] sm:$0xff]  }
 0x1a9   : > { %vm1909_vm10 = vcmp.gt.f32.partialorder %v1740_v0, 0.0  ;;  %v2036_v11 = vsel %vm1908_vm9, %v1737_v23, %v1972_v58  ;;  %v1973_v39 = vmul.f32 0.2, %v1740_v0  ;;  %8168 = vmatmul.mubr.bf16.gmra.mrb[140].mxu1 %v9892_v41  ;;  %8444 = vmatmul.mubr.bf16.vlgmr.msra.gmra.mrb[0].mxu0 %v9787_v48  ;;  %v9901_v44 = vpack.c.bf16 %v2870_v28, %v2868_v52 }
 0x1aa   : > { %8447 = vmatprep.mubr.bf16.mxu0 %v9816_v33  ;;  %8476 = vmatpush3.bf16.msra.mxu0 %v9814_v5  ;;  %v2310_v63 = vrot.slane %v2038_v12, 1  ;;  %v2307_v51 = vrot.slane %v2036_v11, 1  ;;  %v2871_v58 = vrot.slane %v2036_v11, 2  ;;  %v2874_v9 = vrot.slane %v2038_v12, 2  ;;  %v9202_v12 = vld [vmem:[%s10452_s2 + $0x1e0] sm:$0xff]  }
 0x1ab   : > { %v2037_v36 = vsel %vm1909_vm10, %v1740_v0, %v1973_v39  ;;  %8477 = vmatprep.subr.bf16.mxu0 %v9197_v47 }
 0x1ac   : > { %v2308_v35 = vrot.slane %v2037_v36, 1  ;;  %v2872_v57 = vrot.slane %v2037_v36, 2  ;;  %v9908_v23 = vpack.c.bf16 %v2037_v36, %v2036_v11  ;;  %v9199_v36 = vld [vmem:[%s10452_s2 + $0x1d8] sm:$0xff]  }
 0x1ad   : > { %v8109_v13 = vpop.f32.mrb[96].mxu1 }
 0x1ae   : > { %vm1914_vm11 = vcmp.gt.f32.partialorder %v8109_v13, 0.0  ;;  %v1978_v42 = vmul.f32 0.2, %v8109_v13  ;;  %v1753_v40 = vpop.f32.mrb[97].mxu1  ;;  %v2309_v39 = vsel %vm2266_vm6, %v2307_v51, %v2308_v35  ;;  %v2311_v0 = vsel %vm2266_vm6, %v2308_v35, %v2310_v63  ;;  %8478 = vmatpush3.bf16.msra.mxu0 %v9197_v47 }
 0x1af   : > { %vm1912_vm12 = vcmp.gt.f32.partialorder %v1753_v40, 0.0  ;;  %v1976_v17 = vmul.f32 0.2, %v1753_v40  ;;  %v8110_v5 = vpop.f32.mrb[98].mxu1  ;;  %v9912_v28 = vpack.c.bf16 %v2311_v0, %v2309_v39  ;;  %8479 = vmatprep.subr.bf16.mxu0 %v9198_v32  ;;  %v2873_v11 = vsel %vm2830_vm5, %v2871_v58, %v2872_v57 }
 0x1b0   : > { %v1756_v52 = vpop.f32.mrb[99].mxu1  ;;  %v2042_v38 = vsel %vm1914_vm11, %v8109_v13, %v1978_v42  ;;  %v2875_v47 = vsel %vm2830_vm5, %v2872_v57, %v2874_v9 }
 0x1b1   : > { %vm1913_vm13 = vcmp.gt.f32.partialorder %v1756_v52, 0.0  ;;  %v2040_v7 = vsel %vm1912_vm12, %v1753_v40, %v1976_v17  ;;  %v1977_v5 = vmul.f32 0.2, %v1756_v52  ;;  %8171 = vmatprep.mubr.bf16.mxu1 %v9912_v28  ;;  %8448 = vmatmul.mubr.bf16.gmra.mrb[4].mxu0 %v9837_v26  ;;  %v2315_v63 = vrot.slane %v2042_v38, 1 }
 0x1b2   : > { %8451 = vmatprep.mubr.bf16.mxu0 %v9856_v2  ;;  %8480 = vmatpush3.bf16.msra.mxu0 %v9198_v32  ;;  %v9925_v35 = vpack.c.bf16 %v2875_v47, %v2873_v11  ;;  %v2312_v13 = vrot.slane %v2040_v7, 1  ;;  %v2879_v39 = vrot.slane %v2042_v38, 2  ;;  %v2876_v0 = vrot.slane %v2040_v7, 2  ;;  %v9205_v38 = vld [vmem:[%s10452_s2 + $0x1e8] sm:$0xff]  }
 0x1b3   : > { %v2041_v51 = vsel %vm1913_vm13, %v1756_v52, %v1977_v5  ;;  %8481 = vmatprep.subr.bf16.mxu0 %v9199_v36 }
 0x1b4   : > { %v2313_v58 = vrot.slane %v2041_v51, 1  ;;  %v2877_v42 = vrot.slane %v2041_v51, 2  ;;  %v9927_v17 = vpack.c.bf16 %v2041_v51, %v2040_v7 }
 0x1b5   : > { %v8113_v40 = vpop.f32.mrb[100].mxu1 }
 0x1b6   : > { %vm1918_vm14 = vcmp.gt.f32.partialorder %v8113_v40, 0.0  ;;  %v1982_v32 = vmul.f32 0.2, %v8113_v40  ;;  %v1769_v9 = vpop.f32.mrb[101].mxu1  ;;  %v2314_v5 = vsel %vm2266_vm6, %v2312_v13, %v2313_v58  ;;  %v2316_v15 = vsel %vm2266_vm6, %v2313_v58, %v2315_v63  ;;  %8482 = vmatpush3.bf16.msra.mxu0 %v9199_v36  ;;  %v9208_v13 = vld [vmem:[%s10452_s2 + $0x1f0] sm:$0xff]  }
 0x1b7   : > { %vm1916_vm15 = vcmp.gt.f32.partialorder %v1769_v9, 0.0  ;;  %v1980_v57 = vmul.f32 0.2, %v1769_v9  ;;  %v8114_v52 = vpop.f32.mrb[102].mxu1  ;;  %v9931_v47 = vpack.c.bf16 %v2316_v15, %v2314_v5  ;;  %8483 = vmatprep.subr.bf16.mxu0 %v9202_v12  ;;  %v2878_v7 = vsel %vm2830_vm5, %v2876_v0, %v2877_v42 }
 0x1b8   : > { %v1772_v11 = vpop.f32.mrb[103].mxu1  ;;  %v2880_v51 = vsel %vm2830_vm5, %v2877_v42, %v2879_v39  ;;  %v2046_v1 = vsel %vm1918_vm14, %v8113_v40, %v1982_v32 }
 0x1b9   : > { %vm1917_vm2 = vcmp.gt.f32.partialorder %v1772_v11, 0.0  ;;  %v2044_v52 = vsel %vm1916_vm15, %v1769_v9, %v1980_v57  ;;  %v1981_v45 = vmul.f32 0.2, %v1772_v11  ;;  %8172 = vmatmul.mubr.bf16.gmra.mrb[144].mxu1 %v9931_v47  ;;  %8452 = vmatmul.mubr.bf16.gmra.mrb[8].mxu0 %v9875_v22  ;;  %v9940_v36 = vpack.c.bf16 %v2880_v51, %v2878_v7 }
 0x1ba   : > { %8455 = vmatprep.mubr.bf16.mxu0 %v9888_v43  ;;  %8484 = vmatpush3.bf16.msra.mxu0 %v9202_v12  ;;  %v2320_v15 = vrot.slane %v2046_v1, 1  ;;  %v2317_v58 = vrot.slane %v2044_v52, 1  ;;  %v2884_v32 = vrot.slane %v2046_v1, 2  ;;  %v2881_v9 = vrot.slane %v2044_v52, 2  ;;  %v9211_v1 = vld [vmem:[%s10452_s2 + $0x1f8] sm:$0xff]  }
 0x1bb   : > { %v2045_v63 = vsel %vm1917_vm2, %v1772_v11, %v1981_v45  ;;  %8485 = vmatprep.subr.bf16.mxu0 %v9205_v38 }
 0x1bc   : > { %v2318_v42 = vrot.slane %v2045_v63, 1  ;;  %v2882_v40 = vrot.slane %v2045_v63, 2  ;;  %v9946_v0 = vpack.c.bf16 %v2045_v63, %v2044_v52 }
 0x1bd   : > { %v8117_v39 = vpop.f32.mrb[104].mxu1 }
 0x1be   : > { %vm1922_vm3 = vcmp.gt.f32.partialorder %v8117_v39, 0.0  ;;  %v1986_v57 = vmul.f32 0.2, %v8117_v39  ;;  %v1785_v5 = vpop.f32.mrb[105].mxu1  ;;  %v2319_v45 = vsel %vm2266_vm6, %v2317_v58, %v2318_v42  ;;  %v2321_v11 = vsel %vm2266_vm6, %v2318_v42, %v2320_v15  ;;  %8486 = vmatpush3.bf16.msra.mxu0 %v9205_v38  ;;  %v9965_v42 = vld [vmem:[%s10452_s2 + $0x200] sm:$0xff]  }
 0x1bf   : > { %vm1920_vm4 = vcmp.gt.f32.partialorder %v1785_v5, 0.0  ;;  %v1984_v12 = vmul.f32 0.2, %v1785_v5  ;;  %v8118_v7 = vpop.f32.mrb[106].mxu1  ;;  %v9950_v16 = vpack.c.bf16 %v2321_v11, %v2319_v45  ;;  %8487 = vmatprep.subr.bf16.mxu0 %v9208_v13  ;;  %v2883_v52 = vsel %vm2830_vm5, %v2881_v9, %v2882_v40 }
 0x1c0   : > { %v1788_v51 = vpop.f32.mrb[107].mxu1  ;;  %v2885_v63 = vsel %vm2830_vm5, %v2882_v40, %v2884_v32  ;;  %v2050_v10 = vsel %vm1922_vm3, %v8117_v39, %v1986_v57 }
 0x1c1   : > { %vm1921_vm1 = vcmp.gt.f32.partialorder %v1788_v51, 0.0  ;;  %v2048_v7 = vsel %vm1920_vm4, %v1785_v5, %v1984_v12  ;;  %v1985_v54 = vmul.f32 0.2, %v1788_v51  ;;  %8175 = vmatprep.mubr.bf16.mxu1 %v9950_v16  ;;  %8456 = vmatmul.mubr.bf16.gmra.mrb[12].mxu0 %v9908_v23  ;;  %v9959_v38 = vpack.c.bf16 %v2885_v63, %v2883_v52 }
 0x1c2   : > { %8459 = vmatprep.mubr.bf16.mxu0 %v9927_v17  ;;  %8488 = vmatpush3.bf16.msra.mxu0 %v9208_v13  ;;  %v2325_v15 = vrot.slane %v2050_v10, 1  ;;  %v2322_v40 = vrot.slane %v2048_v7, 1  ;;  %v2889_v5 = vrot.slane %v2050_v10, 2  ;;  %v2886_v12 = vrot.slane %v2048_v7, 2 }
 0x1c3   : > { %v2049_v58 = vsel %vm1921_vm1, %v1788_v51, %v1985_v54  ;;  %8489 = vmatprep.subr.bf16.mxu0 %v9211_v1 }
 0x1c4   : > { %v2323_v39 = vrot.slane %v2049_v58, 1  ;;  %v2887_v32 = vrot.slane %v2049_v58, 2  ;;  %v9967_v57 = vpack.c.bf16 %v2049_v58, %v2048_v7 }
 0x1c5   : > { %v8121_v9 = vpop.f32.mrb[108].mxu1 }
 0x1c6   : > { %vm1926_vm7 = vcmp.gt.f32.partialorder %v8121_v9, 0.0  ;;  %v1990_v45 = vmul.f32 0.2, %v8121_v9  ;;  %v1801_v11 = vpop.f32.mrb[109].mxu1  ;;  %v2324_v51 = vsel %vm2266_vm6, %v2322_v40, %v2323_v39  ;;  %v2326_v52 = vsel %vm2266_vm6, %v2323_v39, %v2325_v15  ;;  %8490 = vmatpush3.bf16.msra.mxu0 %v9211_v1 }
 0x1c7   : > { %vm1924_vm8 = vcmp.gt.f32.partialorder %v1801_v11, 0.0  ;;  %v1988_v13 = vmul.f32 0.2, %v1801_v11  ;;  %v8122_v54 = vpop.f32.mrb[110].mxu1  ;;  %v9971_v56 = vpack.c.bf16 %v2326_v52, %v2324_v51  ;;  %8523 = vmatprep.subr.bf16.mxu0 %v9965_v42  ;;  %v2888_v58 = vsel %vm2830_vm5, %v2886_v12, %v2887_v32 }
 0x1c8   : > { %v1804_v63 = vpop.f32.mrb[111].mxu1  ;;  %v2890_v10 = vsel %vm2830_vm5, %v2887_v32, %v2889_v5  ;;  %v2054_v7 = vsel %vm1926_vm7, %v8121_v9, %v1990_v45 }
 0x1c9   : > { %vm1925_vm9 = vcmp.gt.f32.partialorder %v1804_v63, 0.0  ;;  %v2052_v4 = vsel %vm1924_vm8, %v1801_v11, %v1988_v13  ;;  %v1989_v20 = vmul.f32 0.2, %v1804_v63  ;;  %8176 = vmatmul.mubr.bf16.gmra.mrb[148].mxu1 %v9971_v56  ;;  %8460 = vmatmul.mubr.bf16.gmra.mrb[16].mxu0 %v9946_v0  ;;  %v9978_v40 = vpack.c.bf16 %v2890_v10, %v2888_v58 }
 0x1ca   : > { %8463 = vmatprep.mubr.bf16.mxu0 %v9967_v57  ;;  %v2330_v1 = vrot.slane %v2054_v7, 1  ;;  %v2327_v39 = vrot.slane %v2052_v4, 1  ;;  %v2894_v32 = vrot.slane %v2054_v7, 2  ;;  %v2891_v9 = vrot.slane %v2052_v4, 2 }
 0x1cb   : > { %10557 = vst [vmem:[#allocation51_spill] sm:$0xff] %v9978_v40  ;;  %v2053_v15 = vsel %vm1925_vm9, %v1804_v63, %v1989_v20 }
 0x1cc   : > { %v2328_v54 = vrot.slane %v2053_v15, 1  ;;  %v2892_v51 = vrot.slane %v2053_v15, 2  ;;  %v9981_v52 = vpack.c.bf16 %v2053_v15, %v2052_v4 }
 0x1cd   : > { %v8125_v12 = vpop.f32.mrb[112].mxu1 }
 0x1ce   : > { %vm1930_vm10 = vcmp.gt.f32.partialorder %v8125_v12, 0.0  ;;  %v1994_v5 = vmul.f32 0.2, %v8125_v12  ;;  %v1817_v45 = vpop.f32.mrb[113].mxu1  ;;  %v2329_v58 = vsel %vm2266_vm6, %v2327_v39, %v2328_v54  ;;  %v2331_v10 = vsel %vm2266_vm6, %v2328_v54, %v2330_v1 }
 0x1cf   : > { %vm1928_vm11 = vcmp.gt.f32.partialorder %v1817_v45, 0.0  ;;  %v1992_v11 = vmul.f32 0.2, %v1817_v45  ;;  %v8126_v13 = vpop.f32.mrb[114].mxu1  ;;  %v9985_v20 = vpack.c.bf16 %v2331_v10, %v2329_v58  ;;  %v2893_v63 = vsel %vm2830_vm5, %v2891_v9, %v2892_v51 }
 0x1d0   : > { %v1820_v37 = vpop.f32.mrb[115].mxu1  ;;  %v2895_v15 = vsel %vm2830_vm5, %v2892_v51, %v2894_v32  ;;  %v2058_v3 = vsel %vm1930_vm10, %v8125_v12, %v1994_v5 }
 0x1d1   : > { %vm1929_vm12 = vcmp.gt.f32.partialorder %v1820_v37, 0.0  ;;  %v2056_v4 = vsel %vm1928_vm11, %v1817_v45, %v1992_v11  ;;  %v1993_v7 = vmul.f32 0.2, %v1820_v37  ;;  %8179 = vmatprep.mubr.bf16.mxu1 %v9985_v20  ;;  %8464 = vmatmul.mubr.bf16.gmra.mrb[20].mxu0 %v9981_v52  ;;  %v9991_v13 = vpack.c.bf16 %v2895_v15, %v2893_v63 }
 0x1d2   : > { %v2335_v39 = vrot.slane %v2058_v3, 1  ;;  %v2332_v1 = vrot.slane %v2056_v4, 1  ;;  %v2899_v9 = vrot.slane %v2058_v3, 2  ;;  %v2896_v51 = vrot.slane %v2056_v4, 2 }
 0x1d3   : > { %10558 = vst [vmem:[#allocation52_spill] sm:$0xff] %v9991_v13  ;;  %v2057_v29 = vsel %vm1929_vm12, %v1820_v37, %v1993_v7 }
 0x1d4   : > { %v2333_v54 = vrot.slane %v2057_v29, 1  ;;  %v2897_v58 = vrot.slane %v2057_v29, 2  ;;  %v9993_v62 = vpack.c.bf16 %v2057_v29, %v2056_v4 }
 0x1d5   : > { %v8129_v10 = vpop.f32.mrb[116].mxu1 }
 0x1d6   : > { %vm1934_vm13 = vcmp.gt.f32.partialorder %v8129_v10, 0.0  ;;  %v1998_v12 = vmul.f32 0.2, %v8129_v10  ;;  %v1833_v32 = vpop.f32.mrb[117].mxu1  ;;  %8467 = vmatprep.mubr.bf16.mxu0 %v9993_v62  ;;  %v2334_v11 = vsel %vm2266_vm6, %v2332_v1, %v2333_v54  ;;  %v2336_v37 = vsel %vm2266_vm6, %v2333_v54, %v2335_v39 }
 0x1d7   : > { %vm1932_vm14 = vcmp.gt.f32.partialorder %v1833_v32, 0.0  ;;  %v1996_v5 = vmul.f32 0.2, %v1833_v32  ;;  %v8130_v45 = vpop.f32.mrb[118].mxu1  ;;  %v9998_v15 = vpack.c.bf16 %v2336_v37, %v2334_v11  ;;  %v2898_v29 = vsel %vm2830_vm5, %v2896_v51, %v2897_v58 }
 0x1d8   : > { %v1836_v63 = vpop.f32.mrb[119].mxu1  ;;  %v2900_v3 = vsel %vm2830_vm5, %v2897_v58, %v2899_v9  ;;  %v2062_v4 = vsel %vm1934_vm13, %v8129_v10, %v1998_v12 }
 0x1d9   : > { %vm1933_vm15 = vcmp.gt.f32.partialorder %v1836_v63, 0.0  ;;  %v2060_v7 = vsel %vm1932_vm14, %v1833_v32, %v1996_v5  ;;  %v1997_v27 = vmul.f32 0.2, %v1836_v63  ;;  %8180 = vmatmul.mubr.bf16.gmra.mrb[152].mxu1 %v9998_v15  ;;  %v10003_v59 = vpack.c.bf16 %v2900_v3, %v2898_v29 }
 0x1da   : > { %v2340_v45 = vrot.slane %v2062_v4, 1  ;;  %v2337_v1 = vrot.slane %v2060_v7, 1  ;;  %v2904_v37 = vrot.slane %v2062_v4, 2  ;;  %v2901_v51 = vrot.slane %v2060_v7, 2 }
 0x1db   : > { %10559 = vst [vmem:[#allocation53_spill] sm:$0xff] %v10003_v59  ;;  %v2061_v24 = vsel %vm1933_vm15, %v1836_v63, %v1997_v27 }
 0x1dc   : > { %v2338_v61 = vrot.slane %v2061_v24, 1  ;;  %v2902_v39 = vrot.slane %v2061_v24, 2  ;;  %v10005_v11 = vpack.c.bf16 %v2061_v24, %v2060_v7 }
 0x1dd   : > { %v8133_v54 = vpop.f32.mrb[120].mxu1 }
 0x1de   : > { %vm1938_vm2 = vcmp.gt.f32.partialorder %v8133_v54, 0.0  ;;  %v2002_v58 = vmul.f32 0.2, %v8133_v54  ;;  %v1849_v10 = vpop.f32.mrb[121].mxu1  ;;  %8468 = vmatmul.mubr.bf16.gmra.mrb[24].mxu0 %v10005_v11  ;;  %v2339_v32 = vsel %vm2266_vm6, %v2337_v1, %v2338_v61  ;;  %v2341_v27 = vsel %vm2266_vm6, %v2338_v61, %v2340_v45 }
 0x1df   : > { %vm1936_vm3 = vcmp.gt.f32.partialorder %v1849_v10, 0.0  ;;  %v2000_v9 = vmul.f32 0.2, %v1849_v10  ;;  %v8134_v12 = vpop.f32.mrb[122].mxu1  ;;  %v10010_v63 = vpack.c.bf16 %v2341_v27, %v2339_v32  ;;  %v2903_v24 = vsel %vm2830_vm5, %v2901_v51, %v2902_v39 }
 0x1e0   : > { %v1852_v5 = vpop.f32.mrb[123].mxu1  ;;  %v2905_v29 = vsel %vm2830_vm5, %v2902_v39, %v2904_v37  ;;  %v2066_v3 = vsel %vm1938_vm2, %v8133_v54, %v2002_v58 }
 0x1e1   : > { %vm1937_vm4 = vcmp.gt.f32.partialorder %v1852_v5, 0.0  ;;  %v2064_v4 = vsel %vm1936_vm3, %v1849_v10, %v2000_v9  ;;  %v2001_v7 = vmul.f32 0.2, %v1852_v5  ;;  %8183 = vmatprep.mubr.bf16.mxu1 %v10010_v63  ;;  %v10015_v25 = vpack.c.bf16 %v2905_v29, %v2903_v24 }
 0x1e2   : > { %v2345_v12 = vrot.slane %v2066_v3, 1  ;;  %v2342_v1 = vrot.slane %v2064_v4, 1  ;;  %v2909_v27 = vrot.slane %v2066_v3, 2  ;;  %v2906_v51 = vrot.slane %v2064_v4, 2 }
 0x1e3   : > { %10560 = vst [vmem:[#allocation54_spill] sm:$0xff] %v10015_v25  ;;  %v2065_v30 = vsel %vm1937_vm4, %v1852_v5, %v2001_v7 }
 0x1e4   : > { %v2343_v59 = vrot.slane %v2065_v30, 1  ;;  %v2907_v61 = vrot.slane %v2065_v30, 2  ;;  %v10017_v32 = vpack.c.bf16 %v2065_v30, %v2064_v4 }
 0x1e5   : > { %v8137_v45 = vpop.f32.mrb[124].mxu1 }
 0x1e6   : > { %vm1942_vm1 = vcmp.gt.f32.partialorder %v8137_v45, 0.0  ;;  %v2006_v39 = vmul.f32 0.2, %v8137_v45  ;;  %v1865_v54 = vpop.f32.mrb[125].mxu1  ;;  %8471 = vmatprep.mubr.bf16.mxu0 %v10017_v32  ;;  %v2344_v10 = vsel %vm2266_vm6, %v2342_v1, %v2343_v59  ;;  %v2346_v9 = vsel %vm2266_vm6, %v2343_v59, %v2345_v12 }
 0x1e7   : > { %vm1940_vm7 = vcmp.gt.f32.partialorder %v1865_v54, 0.0  ;;  %v2004_v37 = vmul.f32 0.2, %v1865_v54  ;;  %v8138_v58 = vpop.f32.mrb[126].mxu1  ;;  %v10022_v24 = vpack.c.bf16 %v2346_v9, %v2344_v10  ;;  %v2908_v30 = vsel %vm2830_vm5, %v2906_v51, %v2907_v61 }
 0x1e8   : > { %v1868_v5 = vpop.f32.mrb[127].mxu1  ;;  %v2910_v29 = vsel %vm2830_vm5, %v2907_v61, %v2909_v27  ;;  %v2070_v3 = vsel %vm1942_vm1, %v8137_v45, %v2006_v39  ;;  %v9278_v58 = vmov 0.0|0.0  }
 0x1e9   : > { %v2068_v4 = vsel %vm1940_vm7, %v1865_v54, %v2004_v37  ;;  %vm1941_vm8 = vcmp.gt.f32.partialorder %v1868_v5, 0.0  ;;  %v2005_v7 = vmul.f32 0.2, %v1868_v5  ;;  %8184 = vmatmul.mubr.bf16.gmra.mrb[156].mxu1 %v10022_v24  ;;  %v10027_v25 = vpack.c.bf16 %v2910_v29, %v2908_v30  ;;  %v9217_v54 = vld [vmem:[%s10452_s2 + $0x88] sm:$0xff]   ;;  %v9246_v29 = vld [vmem:[%s10452_s2 + $0x290] sm:$0xff]  }
 0x1ea   : > { %8203 = vmatprep.mubr.bf16.mxu1 %v9278_v58  ;;  %v4807_v1 = vrot.slane %v2070_v3, 1  ;;  %v5193_v59 = vrot.slane %v2070_v3, 2  ;;  %v4804_v12 = vrot.slane %v2068_v4, 1  ;;  %v5190_v9 = vrot.slane %v2068_v4, 2  ;;  %v10571_v30 = vld [vmem:[#allocation12_spill] sm:$0xff]  ;;  %v9262_v3 = vld [vmem:[%s10452_s2 + $0x110] sm:$0xff]  }
 0x1eb   : > { %v2069_v10 = vsel %vm1941_vm8, %v1868_v5, %v2005_v7  ;;  %v10570_v5 = vld [vmem:[#allocation8_spill] sm:$0xff]  ;;  %v9263_v7 = vld [vmem:[%s10452_s2 + $0x118] sm:$0xff]  }
 0x1ec   : > { %v4805_v13 = vrot.slane %v2069_v10, 1  ;;  %v5191_v51 = vrot.slane %v2069_v10, 2  ;;  %v4422_v40 = vpack.c.bf16 %v2069_v10, %v2068_v4  ;;  %v10572_v4 = vld [vmem:[#allocation15_spill] sm:$0xff] }
 0x1ed   : > { %v9264_v10 = vld [vmem:[%s10452_s2 + $0x120] sm:$0xff]  }
 0x1ee   : > { %8472 = vmatmul.mubr.bf16.gmra.mrb[28].mxu0 %v4422_v40  ;;  %v10031_v61 = vsel %vm2266_vm6, %v4804_v12, %v4805_v13  ;;  %v10034_v45 = vsel %vm2266_vm6, %v4805_v13, %v4807_v1  ;;  %v10037_v27 = vsel %vm2830_vm5, %v5190_v9, %v5191_v51  ;;  %v10040_v39 = vsel %vm2830_vm5, %v5191_v51, %v5193_v59  ;;  %v9219_v13 = vld [vmem:[%s10452_s2 + $0x90] sm:$0xff]   ;;  %v9247_v1 = vld [vmem:[%s10452_s2 + $0x298] sm:$0xff]   ;;  %v9248_v12 = vld [vmem:[%s10452_s2 + $0x2a0] sm:$0xff]  }
 0x1ef   : > { %8491 = vmatprep.mubr.bf16.mxu0 %v9768_v50  ;;  %v4856_v40 = vpack.c.bf16 %v10034_v45, %v10031_v61  ;;  %v5242_v37 = vpack.c.bf16 %v10040_v39, %v10037_v27  ;;  %v9213_v50 = vld [vmem:[%s10452_s2 + $0x208] sm:$0xff]   ;;  %v10573_v59 = vld [vmem:[#allocation18_spill] sm:$0xff]  ;;  %v10574_v9 = vld [vmem:[#allocation21_spill] sm:$0xff] }
 0x1f0   : > { %v9265_v51 = vld [vmem:[%s10452_s2 + $0x128] sm:$0xff]   ;;  %v9250_v27 = vld [vmem:[%s10452_s2 + $0x2b0] sm:$0xff]  }
 0x1f1   : > { %8204 = vmatmul.mubr.bf16.vlgmr.msra.gmra.mrb[128].mxu1 %v9764_v31  ;;  %v9220_v31 = vld [vmem:[%s10452_s2 + $0x98] sm:$0xff]   ;;  %v9249_v61 = vld [vmem:[%s10452_s2 + $0x2a8] sm:$0xff]   ;;  %v9266_v39 = vld [vmem:[%s10452_s2 + $0x130] sm:$0xff]  }
 0x1f2   : > { %8207 = vmatprep.mubr.bf16.mxu1 %v9787_v48  ;;  %8236 = vmatpush3.bf16.msra.mxu1 %v9861_v46  ;;  %v9214_v48 = vld [vmem:[%s10452_s2 + $0x210] sm:$0xff]   ;;  %v10575_v45 = vld [vmem:[#allocation24_spill] sm:$0xff] }
 0x1f3   : > { %8237 = vmatprep.subr.bf16.mxu1 %v9217_v54  ;;  %v9225_v46 = vld [vmem:[%s10452_s2 + $0xb0] sm:$0xff]  }
 0x1f6   : > { %8492 = vmatmul.mubr.bf16.vlgmr.msra.gmra.mrb[0].mxu0 %v9794_v19  ;;  %8238 = vmatpush3.bf16.msra.mxu1 %v9217_v54  ;;  %v9215_v19 = vld [vmem:[%s10452_s2 + $0x218] sm:$0xff]   ;;  %v10576_v54 = vld [vmem:[#allocation27_spill] sm:$0xff] }
 0x1f7   : > { %8495 = vmatprep.mubr.bf16.mxu0 %v9823_v6  ;;  %8524 = vmatpush3.bf16.msra.mxu0 %v9965_v42  ;;  %v9222_v6 = vld [vmem:[%s10452_s2 + $0xa0] sm:$0xff]   ;;  %v9241_v42 = vld [vmem:[%s10452_s2 + $0xf0] sm:$0xff]  }
 0x1f8   : > { %8525 = vmatprep.subr.bf16.mxu0 %v9213_v50  ;;  %8239 = vmatprep.subr.bf16.mxu1 %v9219_v13 }
 0x1f9   : > { %8208 = vmatmul.mubr.bf16.gmra.mrb[132].mxu1 %v9816_v33  ;;  %v9223_v33 = vld [vmem:[%s10452_s2 + $0xa8] sm:$0xff]  }
 0x1fa   : > { %8211 = vmatprep.mubr.bf16.mxu1 %v9837_v26  ;;  %8240 = vmatpush3.bf16.msra.mxu1 %v9219_v13  ;;  %v9218_v26 = vld [vmem:[%s10452_s2 + $0x220] sm:$0xff]  }
 0x1fb   : > { %8526 = vmatpush3.bf16.msra.mxu0 %v9213_v50  ;;  %8241 = vmatprep.subr.bf16.mxu1 %v9220_v31  ;;  %v10577_v50 = vld [vmem:[#allocation30_spill] sm:$0xff]  ;;  %v9252_v13 = vld [vmem:[%s10452_s2 + $0x2c0] sm:$0xff]  }
 0x1fc   : > { %8527 = vmatprep.subr.bf16.mxu0 %v9214_v48 }
 0x1fe   : > { %8496 = vmatmul.mubr.bf16.gmra.mrb[4].mxu0 %v9844_v53  ;;  %8242 = vmatpush3.bf16.msra.mxu1 %v9220_v31  ;;  %v9221_v53 = vld [vmem:[%s10452_s2 + $0x228] sm:$0xff]   ;;  %v10578_v31 = vld [vmem:[#allocation33_spill] sm:$0xff] }
 0x1ff   : > { %8499 = vmatprep.mubr.bf16.mxu0 %v9865_v60  ;;  %8528 = vmatpush3.bf16.msra.mxu0 %v9214_v48  ;;  %v9224_v60 = vld [vmem:[%s10452_s2 + $0x230] sm:$0xff]   ;;  %v10579_v48 = vld [vmem:[#allocation36_spill] sm:$0xff] }
 0x200   : > { %8529 = vmatprep.subr.bf16.mxu0 %v9215_v19  ;;  %8243 = vmatprep.subr.bf16.mxu1 %v9222_v6 }
 0x201   : > { %8212 = vmatmul.mubr.bf16.gmra.mrb[136].mxu1 %v9856_v2  ;;  %v9226_v2 = vld [vmem:[%s10452_s2 + $0xb8] sm:$0xff]  }
 0x202   : > { %8215 = vmatprep.mubr.bf16.mxu1 %v9875_v22  ;;  %8244 = vmatpush3.bf16.msra.mxu1 %v9222_v6  ;;  %v9227_v22 = vld [vmem:[%s10452_s2 + $0x238] sm:$0xff]  }
 0x203   : > { %8530 = vmatpush3.bf16.msra.mxu0 %v9215_v19  ;;  %8245 = vmatprep.subr.bf16.mxu1 %v9223_v33  ;;  %v10580_v19 = vld [vmem:[#allocation39_spill] sm:$0xff]  ;;  %v10581_v6 = vld [vmem:[#allocation42_spill] sm:$0xff] }
 0x204   : > { %8531 = vmatprep.subr.bf16.mxu0 %v9218_v26 }
 0x206   : > { %8500 = vmatmul.mubr.bf16.gmra.mrb[8].mxu0 %v9879_v18  ;;  %8246 = vmatpush3.bf16.msra.mxu1 %v9223_v33  ;;  %v9232_v18 = vld [vmem:[%s10452_s2 + $0xc0] sm:$0xff]   ;;  %v10582_v33 = vld [vmem:[#allocation45_spill] sm:$0xff] }
 0x207   : > { %8503 = vmatprep.mubr.bf16.mxu0 %v9892_v41  ;;  %8532 = vmatpush3.bf16.msra.mxu0 %v9218_v26  ;;  %v10561_v41 = vmov 0.0   ;;  %v10583_v26 = vld [vmem:[#allocation48_spill] sm:$0xff] }
 0x208   : > { %8533 = vmatprep.subr.bf16.mxu0 %v9221_v53  ;;  %8247 = vmatprep.subr.bf16.mxu1 %v9225_v46 }
 0x209   : > { %8216 = vmatmul.mubr.bf16.gmra.mrb[140].mxu1 %v9888_v43  ;;  %v9228_v43 = vld [vmem:[%s10452_s2 + $0x240] sm:$0xff]  }
 0x20a   : > { %8219 = vmatprep.mubr.bf16.mxu1 %v9908_v23  ;;  %8248 = vmatpush3.bf16.msra.mxu1 %v9225_v46  ;;  %v2831_v23 = vrot.slane %v10561_v41, 2  ;;  %v10585_v46 = vld [vmem:[#allocation7_spill] sm:$0xff]  ;;  %v10589_v41 = vld [vmem:[#allocation16_spill] sm:$0xff] }
 0x20b   : > { %8534 = vmatpush3.bf16.msra.mxu0 %v9221_v53  ;;  %8249 = vmatprep.subr.bf16.mxu1 %v9226_v2  ;;  %v10584_v53 = vld [vmem:[#allocation47_spill] sm:$0xff] }
 0x20c   : > { %8535 = vmatprep.subr.bf16.mxu0 %v9224_v60 }
 0x20e   : > { %8504 = vmatmul.mubr.bf16.gmra.mrb[12].mxu0 %v9912_v28  ;;  %8250 = vmatpush3.bf16.msra.mxu1 %v9226_v2  ;;  %v10125_v28 = vpack.c.bf16 %v2831_v23, %v2831_v23  ;;  %v9253_v2 = vld [vmem:[%s10452_s2 + $0x2c8] sm:$0xff]   ;;  %v10590_v23 = vld [vmem:[#allocation19_spill] sm:$0xff] }
 0x20f   : > { %8507 = vmatprep.mubr.bf16.mxu0 %v9931_v47  ;;  %8536 = vmatpush3.bf16.msra.mxu0 %v9224_v60  ;;  %v9238_v47 = vld [vmem:[%s10452_s2 + $0xe0] sm:$0xff]   ;;  %v10586_v60 = vld [vmem:[#allocation49_spill] sm:$0xff] }
 0x210   : > { %8537 = vmatprep.subr.bf16.mxu0 %v9227_v22  ;;  %8283 = vmatprep.subr.bf16.mxu1 %v9232_v18 }
 0x211   : > { %8220 = vmatmul.mubr.bf16.gmra.mrb[144].mxu1 %v9927_v17  ;;  %v9230_v17 = vld [vmem:[%s10452_s2 + $0x250] sm:$0xff]  }
 0x212   : > { %8223 = vmatprep.mubr.bf16.mxu1 %v9946_v0  ;;  %v9234_v0 = vld [vmem:[%s10452_s2 + $0x260] sm:$0xff]  }
 0x213   : > { %8538 = vmatpush3.bf16.msra.mxu0 %v9227_v22  ;;  %v10587_v22 = vld [vmem:[#allocation9_spill] sm:$0xff] }
 0x214   : > { %8571 = vmatprep.subr.bf16.mxu0 %v9228_v43 }
 0x216   : > { %8508 = vmatmul.mubr.bf16.gmra.mrb[16].mxu0 %v9950_v16  ;;  %v9235_v16 = vld [vmem:[%s10452_s2 + $0xd0] sm:$0xff]  }
 0x217   : > { %8511 = vmatprep.mubr.bf16.mxu0 %v9971_v56  ;;  %v9229_v56 = vld [vmem:[%s10452_s2 + $0x248] sm:$0xff]  }
 0x219   : > { %8224 = vmatmul.mubr.bf16.gmra.mrb[148].mxu1 %v9967_v57  ;;  %v9240_v57 = vld [vmem:[%s10452_s2 + $0x270] sm:$0xff]  }
 0x21a   : > { %8227 = vmatprep.mubr.bf16.mxu1 %v9981_v52  ;;  %v9260_v52 = vld [vmem:[%s10452_s2 + $0x100] sm:$0xff]  }
 0x21e   : > { %8512 = vmatmul.mubr.bf16.gmra.mrb[20].mxu0 %v9985_v20  ;;  %v10563_v20 = vld [vmem:[#allocation52_spill] sm:$0xff] }
 0x21f   : > { %8515 = vmatprep.mubr.bf16.mxu0 %v9998_v15  ;;  %v10564_v15 = vld [vmem:[#allocation53_spill] sm:$0xff] }
 0x221   : > { %8228 = vmatmul.mubr.bf16.gmra.mrb[152].mxu1 %v9993_v62  ;;  %v9233_v62 = vld [vmem:[%s10452_s2 + $0xc8] sm:$0xff]  }
 0x222   : > { %8231 = vmatprep.mubr.bf16.mxu1 %v10005_v11  ;;  %v10565_v11 = vld [vmem:[#allocation54_spill] sm:$0xff] }
 0x226   : > { %8516 = vmatmul.mubr.bf16.gmra.mrb[24].mxu0 %v10010_v63 }
 0x227   : > { %8519 = vmatprep.mubr.bf16.mxu0 %v10022_v24  ;;  %v9261_v24 = vld [vmem:[%s10452_s2 + $0x108] sm:$0xff]  }
 0x229   : > { %8232 = vmatmul.mubr.bf16.gmra.mrb[156].mxu1 %v10017_v32  ;;  %v10569_v32 = vld [vmem:[#allocation5_spill] sm:$0xff] }
 0x22a   : > { %8251 = vmatprep.mubr.bf16.mxu1 %v10125_v28 }
 0x22e   : > { %8520 = vmatmul.mubr.bf16.gmra.mrb[28].mxu0 %v4856_v40  ;;  %v9267_v40 = vld [vmem:[%s10452_s2 + $0x138] sm:$0xff]  }
 0x22f   : > { %8539 = vmatprep.mubr.bf16.mxu0 %v9780_v34 }
 0x231   : > { %8252 = vmatmul.mubr.bf16.vlgmr.msra.gmra.mrb[128].mxu1 %v9780_v34  ;;  %v9236_v34 = vld [vmem:[%s10452_s2 + $0xd8] sm:$0xff]  }
 0x232   : > { %8255 = vmatprep.mubr.bf16.mxu1 %v9809_v21  ;;  %8284 = vmatpush3.bf16.msra.mxu1 %v9232_v18  ;;  %v10588_v18 = vld [vmem:[#allocation13_spill] sm:$0xff] }
 0x233   : > { %8285 = vmatprep.subr.bf16.mxu1 %v9233_v62 }
 0x236   : > { %8540 = vmatmul.mubr.bf16.vlgmr.msra.gmra.mrb[0].mxu0 %v9809_v21  ;;  %8286 = vmatpush3.bf16.msra.mxu1 %v9233_v62  ;;  %v9231_v21 = vld [vmem:[%s10452_s2 + $0x258] sm:$0xff]   ;;  %v9256_v62 = vld [vmem:[%s10452_s2 + $0x2e0] sm:$0xff]  }
 0x237   : > { %8543 = vmatprep.mubr.bf16.mxu0 %v9835_v49  ;;  %8572 = vmatpush3.bf16.msra.mxu0 %v9228_v43  ;;  %v9254_v43 = vld [vmem:[%s10452_s2 + $0x2d0] sm:$0xff]  }
 0x238   : > { %8573 = vmatprep.subr.bf16.mxu0 %v9229_v56  ;;  %8287 = vmatprep.subr.bf16.mxu1 %v9235_v16 }
 0x239   : > { %8256 = vmatmul.mubr.bf16.gmra.mrb[132].mxu1 %v9835_v49  ;;  %v9239_v49 = vld [vmem:[%s10452_s2 + $0xe8] sm:$0xff]  }
 0x23a   : > { %8259 = vmatprep.mubr.bf16.mxu1 %v9853_v8  ;;  %8288 = vmatpush3.bf16.msra.mxu1 %v9235_v16  ;;  %v10591_v16 = vld [vmem:[#allocation22_spill] sm:$0xff] }
 0x23b   : > { %8574 = vmatpush3.bf16.msra.mxu0 %v9229_v56  ;;  %8289 = vmatprep.subr.bf16.mxu1 %v9236_v34  ;;  %v9257_v56 = vld [vmem:[%s10452_s2 + $0x2e8] sm:$0xff]  }
 0x23c   : > { %8575 = vmatprep.subr.bf16.mxu0 %v9230_v17 }
 0x23e   : > { %8544 = vmatmul.mubr.bf16.gmra.mrb[4].mxu0 %v9853_v8  ;;  %8290 = vmatpush3.bf16.msra.mxu1 %v9236_v34  ;;  %v9237_v8 = vld [vmem:[%s10452_s2 + $0x268] sm:$0xff]   ;;  %v10592_v34 = vld [vmem:[#allocation25_spill] sm:$0xff] }
 0x23f   : > { %8547 = vmatprep.mubr.bf16.mxu0 %v9872_v14  ;;  %8576 = vmatpush3.bf16.msra.mxu0 %v9230_v17  ;;  %v9258_v17 = vld [vmem:[%s10452_s2 + $0x2f0] sm:$0xff]  }
 0x240   : > { %8577 = vmatprep.subr.bf16.mxu0 %v9231_v21  ;;  %8291 = vmatprep.subr.bf16.mxu1 %v9238_v47 }
 0x241   : > { %8260 = vmatmul.mubr.bf16.gmra.mrb[136].mxu1 %v9872_v14  ;;  %v9242_v14 = vld [vmem:[%s10452_s2 + $0xf8] sm:$0xff]  }
 0x242   : > { %8263 = vmatprep.mubr.bf16.mxu1 %v9885_v55  ;;  %8292 = vmatpush3.bf16.msra.mxu1 %v9238_v47  ;;  %v10593_v47 = vld [vmem:[#allocation28_spill] sm:$0xff] }
 0x243   : > { %8578 = vmatpush3.bf16.msra.mxu0 %v9231_v21  ;;  %8293 = vmatprep.subr.bf16.mxu1 %v9239_v49  ;;  %v9259_v21 = vld [vmem:[%s10452_s2 + $0x2f8] sm:$0xff]  }
 0x244   : > { %8579 = vmatprep.subr.bf16.mxu0 %v9234_v0 }
 0x246   : > { %8548 = vmatmul.mubr.bf16.gmra.mrb[8].mxu0 %v9885_v55  ;;  %8294 = vmatpush3.bf16.msra.mxu1 %v9239_v49  ;;  %v9243_v55 = vld [vmem:[%s10452_s2 + $0x278] sm:$0xff]   ;;  %v10594_v49 = vld [vmem:[#allocation31_spill] sm:$0xff] }
 0x247   : > { %8551 = vmatprep.mubr.bf16.mxu0 %v9901_v44  ;;  %8580 = vmatpush3.bf16.msra.mxu0 %v9234_v0  ;;  %v10595_v0 = vld [vmem:[#allocation34_spill] sm:$0xff] }
 0x248   : > { %8581 = vmatprep.subr.bf16.mxu0 %v9237_v8  ;;  %8295 = vmatprep.subr.bf16.mxu1 %v9241_v42 }
 0x249   : > { %8264 = vmatmul.mubr.bf16.gmra.mrb[140].mxu1 %v9901_v44  ;;  %v9244_v44 = vld [vmem:[%s10452_s2 + $0x280] sm:$0xff]  }
 0x24a   : > { %8267 = vmatprep.mubr.bf16.mxu1 %v9925_v35  ;;  %8296 = vmatpush3.bf16.msra.mxu1 %v9241_v42  ;;  %v10597_v42 = vld [vmem:[#allocation40_spill] sm:$0xff] }
 0x24b   : > { %8582 = vmatpush3.bf16.msra.mxu0 %v9237_v8  ;;  %8297 = vmatprep.subr.bf16.mxu1 %v9242_v14  ;;  %v10596_v8 = vld [vmem:[#allocation37_spill] sm:$0xff] }
 0x24c   : > { %8583 = vmatprep.subr.bf16.mxu0 %v9240_v57 }
 0x24e   : > { %8552 = vmatmul.mubr.bf16.gmra.mrb[12].mxu0 %v9925_v35  ;;  %8298 = vmatpush3.bf16.msra.mxu1 %v9242_v14  ;;  %v10562_v35 = vld [vmem:[#allocation51_spill] sm:$0xff] }
 0x24f   : > { %8555 = vmatprep.mubr.bf16.mxu0 %v9940_v36  ;;  %8584 = vmatpush3.bf16.msra.mxu0 %v9240_v57  ;;  %v10598_v14 = vld [vmem:[#allocation43_spill] sm:$0xff] }
 0x250   : > { %8585 = vmatprep.subr.bf16.mxu0 %v9243_v55  ;;  %8715 = vmatprep.subr.bf16.mxu1 %v9260_v52  ;;  %v10599_v57 = vld [vmem:[#allocation11_spill] sm:$0xff] }
 0x251   : > { %8268 = vmatmul.mubr.bf16.gmra.mrb[144].mxu1 %v9940_v36  ;;  %v10566_v36 = vld [vmem:[#allocation4_spill] sm:$0xff] }
 0x252   : > { %8271 = vmatprep.mubr.bf16.mxu1 %v9959_v38 }
 0x253   : > { %8586 = vmatpush3.bf16.msra.mxu0 %v9243_v55  ;;  %v10600_v55 = vld [vmem:[#allocation6_spill] sm:$0xff] }
 0x254   : > { %8619 = vmatprep.subr.bf16.mxu0 %v9244_v44 }
 0x256   : > { %8556 = vmatmul.mubr.bf16.gmra.mrb[16].mxu0 %v9959_v38  ;;  %v10567_v38 = vld [vmem:[#allocation3_spill] sm:$0xff] }
 0x257   : > { %8559 = vmatprep.mubr.bf16.mxu0 %v10562_v35  ;;  %v10568_v63 = vpack.c.bf16 %v10566_v36, %v10567_v38  ;;  %v10607_v36 = vld [vmem:[#allocation29_spill] sm:$0xff]  ;;  %v10608_v38 = vld [vmem:[#allocation32_spill] sm:$0xff] }
 0x259   : > { %8272 = vmatmul.mubr.bf16.gmra.mrb[148].mxu1 %v10562_v35  ;;  %v10603_v35 = vld [vmem:[#allocation17_spill] sm:$0xff] }
 0x25a   : > { %8275 = vmatprep.mubr.bf16.mxu1 %v10563_v20 }
 0x25e   : > { %8560 = vmatmul.mubr.bf16.gmra.mrb[20].mxu0 %v10563_v20  ;;  %v10604_v20 = vld [vmem:[#allocation20_spill] sm:$0xff] }
 0x25f   : > { %8563 = vmatprep.mubr.bf16.mxu0 %v10564_v15 }
 0x261   : > { %8276 = vmatmul.mubr.bf16.gmra.mrb[152].mxu1 %v10564_v15  ;;  %v10605_v15 = vld [vmem:[#allocation23_spill] sm:$0xff] }
 0x262   : > { %8279 = vmatprep.mubr.bf16.mxu1 %v10565_v11 }
 0x266   : > { %8564 = vmatmul.mubr.bf16.gmra.mrb[24].mxu0 %v10565_v11  ;;  %v10606_v11 = vld [vmem:[#allocation26_spill] sm:$0xff] }
 0x267   : > { %8567 = vmatprep.mubr.bf16.mxu0 %v10027_v25 }
 0x269   : > { %8280 = vmatmul.mubr.bf16.gmra.mrb[156].mxu1 %v10027_v25  ;;  %v9245_v25 = vld [vmem:[%s10452_s2 + $0x288] sm:$0xff]  }
 0x26a   : > { %8299 = vmatprep.mubr.bf16.mxu1 %v10568_v63  ;;  %v10609_v63 = vld [vmem:[#allocation35_spill] sm:$0xff] }
 0x26e   : > { %8568 = vmatmul.mubr.bf16.gmra.mrb[28].mxu0 %v5242_v37  ;;  %v9251_v37 = vld [vmem:[%s10452_s2 + $0x2b8] sm:$0xff]  }
 0x26f   : > { %8587 = vmatprep.mubr.bf16.mxu0 %v10569_v32 }
 0x271   : > { %8300 = vmatmul.mubr.bf16.vlgmr.msra.gmra.mrb[128].mxu1 %v10569_v32  ;;  %v10610_v32 = vld [vmem:[#allocation38_spill] sm:$0xff] }
 0x272   : > { %8303 = vmatprep.mubr.bf16.mxu1 %v10570_v5  ;;  %8723 = vmatpush3.bf16.msra.mxu1 %v9260_v52  ;;  %v10602_v52 = vld [vmem:[#allocation14_spill] sm:$0xff] }
 0x273   : > { %8716 = vmatprep.subr.bf16.mxu1 %v9261_v24 }
 0x276   : > { %8588 = vmatmul.mubr.bf16.vlgmr.msra.gmra.mrb[0].mxu0 %v10570_v5  ;;  %8724 = vmatpush3.bf16.msra.mxu1 %v9261_v24  ;;  %v10611_v5 = vld [vmem:[#allocation41_spill] sm:$0xff]  ;;  %v10612_v24 = vld [vmem:[#allocation44_spill] sm:$0xff] }
 0x277   : > { %8591 = vmatprep.mubr.bf16.mxu0 %v10571_v30  ;;  %8620 = vmatpush3.bf16.msra.mxu0 %v9244_v44  ;;  %v10601_v44 = vld [vmem:[#allocation10_spill] sm:$0xff] }
 0x278   : > { %8621 = vmatprep.subr.bf16.mxu0 %v9245_v25  ;;  %8717 = vmatprep.subr.bf16.mxu1 %v9262_v3 }
 0x279   : > { %8304 = vmatmul.mubr.bf16.gmra.mrb[132].mxu1 %v10571_v30  ;;  %v10614_v30 = vld [vmem:[#allocation50_spill] sm:$0xff] }
 0x27a   : > { %8307 = vmatprep.mubr.bf16.mxu1 %v10572_v4  ;;  %8725 = vmatpush3.bf16.msra.mxu1 %v9262_v3 }
 0x27b   : > { %8622 = vmatpush3.bf16.msra.mxu0 %v9245_v25  ;;  %8718 = vmatprep.subr.bf16.mxu1 %v9263_v7  ;;  %v10613_v25 = vld [vmem:[#allocation46_spill] sm:$0xff] }
 0x27c   : > { %8623 = vmatprep.subr.bf16.mxu0 %v9246_v29 }
 0x27e   : > { %8592 = vmatmul.mubr.bf16.gmra.mrb[4].mxu0 %v10572_v4  ;;  %8726 = vmatpush3.bf16.msra.mxu1 %v9263_v7 }
 0x27f   : > { %8595 = vmatprep.mubr.bf16.mxu0 %v10573_v59  ;;  %8624 = vmatpush3.bf16.msra.mxu0 %v9246_v29 }
 0x280   : > { %8625 = vmatprep.subr.bf16.mxu0 %v9247_v1  ;;  %8719 = vmatprep.subr.bf16.mxu1 %v9264_v10 }
 0x281   : > { %8308 = vmatmul.mubr.bf16.gmra.mrb[136].mxu1 %v10573_v59 }
 0x282   : > { %8311 = vmatprep.mubr.bf16.mxu1 %v10574_v9  ;;  %8727 = vmatpush3.bf16.msra.mxu1 %v9264_v10 }
 0x283   : > { %8626 = vmatpush3.bf16.msra.mxu0 %v9247_v1  ;;  %8720 = vmatprep.subr.bf16.mxu1 %v9265_v51 }
 0x284   : > { %8627 = vmatprep.subr.bf16.mxu0 %v9248_v12 }
 0x286   : > { %8596 = vmatmul.mubr.bf16.gmra.mrb[8].mxu0 %v10574_v9  ;;  %8728 = vmatpush3.bf16.msra.mxu1 %v9265_v51 }
 0x287   : > { %8599 = vmatprep.mubr.bf16.mxu0 %v10575_v45  ;;  %8628 = vmatpush3.bf16.msra.mxu0 %v9248_v12 }
 0x288   : > { %8629 = vmatprep.subr.bf16.mxu0 %v9249_v61  ;;  %8721 = vmatprep.subr.bf16.mxu1 %v9266_v39 }
 0x289   : > { %8312 = vmatmul.mubr.bf16.gmra.mrb[140].mxu1 %v10575_v45 }
 0x28a   : > { %8315 = vmatprep.mubr.bf16.mxu1 %v10576_v54  ;;  %8729 = vmatpush3.bf16.msra.mxu1 %v9266_v39 }
 0x28b   : > { %8630 = vmatpush3.bf16.msra.mxu0 %v9249_v61  ;;  %8722 = vmatprep.subr.bf16.mxu1 %v9267_v40 }
 0x28c   : > { %8631 = vmatprep.subr.bf16.mxu0 %v9250_v27 }
 0x28e   : > { %8600 = vmatmul.mubr.bf16.gmra.mrb[12].mxu0 %v10576_v54  ;;  %8730 = vmatpush3.bf16.msra.mxu1 %v9267_v40 }
 0x28f   : > { %8603 = vmatprep.mubr.bf16.mxu0 %v10577_v50  ;;  %8632 = vmatpush3.bf16.msra.mxu0 %v9250_v27 }
 0x290   : > { %8633 = vmatprep.subr.bf16.mxu0 %v9251_v37 }
 0x291   : > { %8316 = vmatmul.mubr.bf16.gmra.mrb[144].mxu1 %v10577_v50 }
 0x292   : > { %8319 = vmatprep.mubr.bf16.mxu1 %v10578_v31 }
 0x293   : > { %8634 = vmatpush3.bf16.msra.mxu0 %v9251_v37 }
 0x294   : > { %8667 = vmatprep.subr.bf16.mxu0 %v9252_v13 }
 0x296   : > { %8604 = vmatmul.mubr.bf16.gmra.mrb[16].mxu0 %v10578_v31 }
 0x297   : > { %8607 = vmatprep.mubr.bf16.mxu0 %v10579_v48 }
 0x299   : > { %8320 = vmatmul.mubr.bf16.gmra.mrb[148].mxu1 %v10579_v48 }
 0x29a   : > { %8323 = vmatprep.mubr.bf16.mxu1 %v10580_v19 }
 0x29e   : > { %8608 = vmatmul.mubr.bf16.gmra.mrb[20].mxu0 %v10580_v19 }
 0x29f   : > { %8611 = vmatprep.mubr.bf16.mxu0 %v10581_v6 }
 0x2a1   : > { %8324 = vmatmul.mubr.bf16.gmra.mrb[152].mxu1 %v10581_v6 }
 0x2a2   : > { %8327 = vmatprep.mubr.bf16.mxu1 %v10582_v33 }
 0x2a6   : > { %8612 = vmatmul.mubr.bf16.gmra.mrb[24].mxu0 %v10582_v33 }
 0x2a7   : > { %8615 = vmatprep.mubr.bf16.mxu0 %v10583_v26 }
 0x2a9   : > { %8328 = vmatmul.mubr.bf16.gmra.mrb[156].mxu1 %v10583_v26 }
 0x2aa   : > { %8375 = vmatprep.mubr.bf16.mxu1 %v10584_v53 }
 0x2ae   : > { %8616 = vmatmul.mubr.bf16.gmra.mrb[28].mxu0 %v9278_v58  ;;  %v9255_v58 = vld [vmem:[%s10452_s2 + $0x2d8] sm:$0xff]  }
 0x2af   : > { %8635 = vmatprep.mubr.bf16.mxu0 %v10585_v46 }
 0x2b5   : > { %8376 = vmatmul.mubr.bf16.vlgmr.msra.gmra.mrb[156].mxu1 %v10586_v60 }
 0x2b6   : > { %8636 = vmatmul.mubr.bf16.vlgmr.msra.gmra.mrb[0].mxu0 %v10587_v22 }
 0x2b7   : > { %8639 = vmatprep.mubr.bf16.mxu0 %v10588_v18  ;;  %8668 = vmatpush3.bf16.msra.mxu0 %v9252_v13 }
 0x2b8   : > { %8669 = vmatprep.subr.bf16.mxu0 %v9253_v2 }
 0x2bb   : > { %8670 = vmatpush3.bf16.msra.mxu0 %v9253_v2 }
 0x2bc   : > { %8671 = vmatprep.subr.bf16.mxu0 %v9254_v43 }
 0x2be   : > { %8640 = vmatmul.mubr.bf16.gmra.mrb[4].mxu0 %v10589_v41 }
 0x2bf   : > { %8643 = vmatprep.mubr.bf16.mxu0 %v10590_v23  ;;  %8672 = vmatpush3.bf16.msra.mxu0 %v9254_v43 }
 0x2c0   : > { %8673 = vmatprep.subr.bf16.mxu0 %v9255_v58 }
 0x2c3   : > { %8674 = vmatpush3.bf16.msra.mxu0 %v9255_v58 }
 0x2c4   : > { %8675 = vmatprep.subr.bf16.mxu0 %v9256_v62 }
 0x2c6   : > { %8644 = vmatmul.mubr.bf16.gmra.mrb[8].mxu0 %v10591_v16 }
 0x2c7   : > { %8647 = vmatprep.mubr.bf16.mxu0 %v10592_v34  ;;  %8676 = vmatpush3.bf16.msra.mxu0 %v9256_v62 }
 0x2c8   : > { %8677 = vmatprep.subr.bf16.mxu0 %v9257_v56 }
 0x2cb   : > { %8678 = vmatpush3.bf16.msra.mxu0 %v9257_v56 }
 0x2cc   : > { %8679 = vmatprep.subr.bf16.mxu0 %v9258_v17 }
 0x2ce   : > { %8648 = vmatmul.mubr.bf16.gmra.mrb[12].mxu0 %v10593_v47 }
 0x2cf   : > { %8651 = vmatprep.mubr.bf16.mxu0 %v10594_v49  ;;  %8680 = vmatpush3.bf16.msra.mxu0 %v9258_v17 }
 0x2d0   : > { %8681 = vmatprep.subr.bf16.mxu0 %v9259_v21 }
 0x2d3   : > { %8682 = vmatpush3.bf16.msra.mxu0 %v9259_v21 }
 0x2d6   : > { %8652 = vmatmul.mubr.bf16.gmra.mrb[16].mxu0 %v10595_v0 }
 0x2d7   : > { %8655 = vmatprep.mubr.bf16.mxu0 %v10596_v8 }
 0x2de   : > { %8656 = vmatmul.mubr.bf16.gmra.mrb[20].mxu0 %v10597_v42 }
 0x2df   : > { %8659 = vmatprep.mubr.bf16.mxu0 %v10598_v14 }
 0x2e6   : > { %8660 = vmatmul.mubr.bf16.gmra.mrb[24].mxu0 %v10584_v53 }
 0x2e7   : > { %8663 = vmatprep.mubr.bf16.mxu0 %v10586_v60 }
 0x2ee   : > { %8664 = vmatmul.mubr.bf16.gmra.mrb[28].mxu0 %v10599_v57 }
 0x2ef   : > { %8683 = vmatprep.mubr.bf16.mxu0 %v10600_v55 }
 0x2f6   : > { %8684 = vmatmul.mubr.bf16.vlgmr.msra.gmra.mrb[0].mxu0 %v10601_v44 }
 0x2f7   : > { %8687 = vmatprep.mubr.bf16.mxu0 %v10602_v52 }
 0x2fe   : > { %8688 = vmatmul.mubr.bf16.gmra.mrb[4].mxu0 %v10603_v35 }
 0x2ff   : > { %8691 = vmatprep.mubr.bf16.mxu0 %v10604_v20 }
 0x306   : > { %8692 = vmatmul.mubr.bf16.gmra.mrb[8].mxu0 %v10605_v15 }
 0x307   : > { %8695 = vmatprep.mubr.bf16.mxu0 %v10606_v11 }
 0x30e   : > { %8696 = vmatmul.mubr.bf16.gmra.mrb[12].mxu0 %v10607_v36 }
 0x30f   : > { %8699 = vmatprep.mubr.bf16.mxu0 %v10608_v38 }
 0x316   : > { %8700 = vmatmul.mubr.bf16.gmra.mrb[16].mxu0 %v10609_v63 }
 0x317   : > { %8703 = vmatprep.mubr.bf16.mxu0 %v10610_v32 }
 0x31e   : > { %8704 = vmatmul.mubr.bf16.gmra.mrb[20].mxu0 %v10611_v5 }
 0x31f   : > { %8707 = vmatprep.mubr.bf16.mxu0 %v10612_v24 }
 0x326   : > { %8708 = vmatmul.mubr.bf16.gmra.mrb[24].mxu0 %v10613_v25 }
 0x327   : > { %8711 = vmatprep.mubr.bf16.mxu0 %v10614_v30 }
 0x32e   : > { %8712 = vmatmul.mubr.bf16.gmra.mrb[28].mxu0 %v10125_v28 }
 0x344   : > { %v8301_v29 = vpop.f32.mrb[128].mxu1 }
 0x345   : > { %v3380_v3 = vpop.f32.mrb[129].mxu1 }
 0x346   : > { %v8302_v4 = vpop.f32.mrb[130].mxu1 }
 0x347   : > { %v3383_v7 = vpop.f32.mrb[131].mxu1 }
 0x34c   : > { %v8305_v1 = vpop.f32.mrb[132].mxu1 }
 0x34d   : > { %v3396_v59 = vpop.f32.mrb[133].mxu1 }
 0x34e   : > { %v8306_v12 = vpop.f32.mrb[134].mxu1 }
 0x34f   : > { %v3399_v10 = vpop.f32.mrb[135].mxu1 }
 0x354   : > { %v10348_v9 = vpop.f32.mrb[136].mxu1 }
 0x355   : > { %v10350_v51 = vpop.f32.mrb[137].mxu1 }
 0x356   : > { %v10352_v61 = vpop.f32.mrb[138].mxu1 }
 0x357   : > { %v10354_v45 = vpop.f32.mrb[139].mxu1 }
 0x35c   : > { %v10356_v27 = vpop.f32.mrb[140].mxu1 }
 0x35d   : > { %v10358_v39 = vpop.f32.mrb[141].mxu1 }
 0x35e   : > { %v10360_v28 = vpop.f32.mrb[142].mxu1 }
 0x35f   : > { %v10362_v54 = vpop.f32.mrb[143].mxu1 }
 0x364   : > { %v10364_v40 = vpop.f32.mrb[144].mxu1 }
 0x365   : > { %v10366_v37 = vpop.f32.mrb[145].mxu1 }
 0x366   : > { %v10368_v50 = vpop.f32.mrb[146].mxu1 }
 0x367   : > { %v10370_v13 = vpop.f32.mrb[147].mxu1 }
 0x36c   : > { %v10372_v31 = vpop.f32.mrb[148].mxu1 }
 0x36d   : > { %v10374_v48 = vpop.f32.mrb[149].mxu1 }
 0x36e   : > { %v10376_v19 = vpop.f32.mrb[150].mxu1 }
 0x36f   : > { %v10378_v6 = vpop.f32.mrb[151].mxu1 }
 0x374   : > { %v10380_v33 = vpop.f32.mrb[152].mxu1 }
 0x375   : > { %v10382_v26 = vpop.f32.mrb[153].mxu1 }
 0x376   : > { %v10384_v53 = vpop.f32.mrb[154].mxu1 }
 0x377   : > { %v10386_v46 = vpop.f32.mrb[155].mxu1 }
 0x388   : > { %v10388_v2 = vpop.f32.mrb[156].mxu1 }
 0x389   : > { %v10390_v60 = vpop.f32.mrb[157].mxu1 }
 0x38a   : > { %v10392_v22 = vpop.f32.mrb[158].mxu1 }
 0x38b   : > { %v10394_v18 = vpop.f32.mrb[159].mxu1 }
 0x3c9   : > { %v8685_v43 = vpop.f32.mrb[0].mxu0 }
 0x3ca   : > { %v8731_v58 = vadd.f32 %v8685_v43, %v8301_v29  ;;  %v6485_v41 = vpop.f32.mrb[1].mxu0 }
 0x3cb   : > { %v8732_v23 = vadd.f32 %v6485_v41, %v3380_v3  ;;  %v8686_v62 = vpop.f32.mrb[2].mxu0 }
 0x3cc   : > { %v8733_v56 = vadd.f32 %v8686_v62, %v8302_v4  ;;  %v6488_v16 = vpop.f32.mrb[3].mxu0  ;;  %v6683_v8 = vmul.f32 %v8731_v58, %v8731_v58 }
 0x3cd   : > { %v8734_v34 = vadd.f32 %v6488_v16, %v3383_v7  ;;  %v6681_v21 = vmul.f32 %v8732_v23, %v8732_v23 }
 0x3ce   : > { %v7554_v17 = vpack.c.bf16 %v8733_v56, %v8731_v58  ;;  %v6684_v52 = vmul.f32 %v8733_v56, %v8733_v56 }
 0x3cf   : > { %v6644_v47 = vadd.f32 %v8734_v34, %v8732_v23  ;;  %v6682_v49 = vmul.f32 %v8734_v34, %v8734_v34  ;;  %v7549_v0 = vpack.c.bf16 %v8734_v34, %v8732_v23 }
 0x3d0   : > { %7626 = vst [vmem:[%s10400_s29 + $0x8] sm:$0xff] %v7554_v17  }
 0x3d1   : > { %v6645_v42 = vadd.f32 %v8731_v58, %v6644_v47  ;;  %v6713_v14 = vadd.f32 %v6682_v49, %v6681_v21  ;;  %7550 = vst [vmem:[%s10400_s29] sm:$0xff] %v7549_v0   ;;  %v8689_v57 = vpop.f32.mrb[4].mxu0 }
 0x3d2   : > { %v8735_v55 = vadd.f32 %v8689_v57, %v8305_v1  ;;  %v6501_v44 = vpop.f32.mrb[5].mxu0 }
 0x3d3   : > { %v6714_v35 = vadd.f32 %v6713_v14, %v6683_v8  ;;  %v8736_v20 = vadd.f32 %v6501_v44, %v3396_v59  ;;  %v6646_v15 = vadd.f32 %v8733_v56, %v6645_v42  ;;  %v8690_v11 = vpop.f32.mrb[6].mxu0 }
 0x3d4   : > { %v8737_v36 = vadd.f32 %v8690_v11, %v8306_v12  ;;  %v6504_v38 = vpop.f32.mrb[7].mxu0  ;;  %v6687_v7 = vmul.f32 %v8735_v55, %v8735_v55 }
 0x3d5   : > { %v6647_v63 = vadd.f32 %v8736_v20, %v6646_v15  ;;  %v6685_v32 = vmul.f32 %v8736_v20, %v8736_v20  ;;  %v6715_v5 = vadd.f32 %v6714_v35, %v6684_v52  ;;  %v8738_v24 = vadd.f32 %v6504_v38, %v3399_v10 }
 0x3d6   : > { %v7564_v25 = vpack.c.bf16 %v8737_v36, %v8735_v55  ;;  %v6688_v12 = vmul.f32 %v8737_v36, %v8737_v36 }
 0x3d7   : > { %v6716_v30 = vadd.f32 %v6715_v5, %v6685_v32  ;;  %v6648_v29 = vadd.f32 %v8738_v24, %v6647_v63  ;;  %v6686_v3 = vmul.f32 %v8738_v24, %v8738_v24  ;;  %v7559_v4 = vpack.c.bf16 %v8738_v24, %v8736_v20 }
 0x3d8   : > { %7628 = vst [vmem:[%s10400_s29 + $0x18] sm:$0xff] %v7564_v25  }
 0x3d9   : > { %v6649_v1 = vadd.f32 %v8735_v55, %v6648_v29  ;;  %v6717_v43 = vadd.f32 %v6716_v30, %v6686_v3  ;;  %7627 = vst [vmem:[%s10400_s29 + $0x10] sm:$0xff] %v7559_v4   ;;  %v8693_v59 = vpop.f32.mrb[8].mxu0 }
 0x3da   : > { %v8739_v58 = vadd.f32 %v8693_v59, %v10348_v9  ;;  %v6517_v41 = vpop.f32.mrb[9].mxu0 }
 0x3db   : > { %v6718_v23 = vadd.f32 %v6717_v43, %v6687_v7  ;;  %v8740_v62 = vadd.f32 %v6517_v41, %v10350_v51  ;;  %v6650_v10 = vadd.f32 %v8737_v36, %v6649_v1  ;;  %v8694_v56 = vpop.f32.mrb[10].mxu0 }
 0x3dc   : > { %v8741_v16 = vadd.f32 %v8694_v56, %v10352_v61  ;;  %v6520_v34 = vpop.f32.mrb[11].mxu0  ;;  %v6691_v57 = vmul.f32 %v8739_v58, %v8739_v58 }
 0x3dd   : > { %v6651_v17 = vadd.f32 %v8740_v62, %v6650_v10  ;;  %v6689_v21 = vmul.f32 %v8740_v62, %v8740_v62  ;;  %v6719_v47 = vadd.f32 %v6718_v23, %v6688_v12  ;;  %v8742_v49 = vadd.f32 %v6520_v34, %v10354_v45 }
 0x3de   : > { %v7574_v0 = vpack.c.bf16 %v8741_v16, %v8739_v58  ;;  %v6692_v35 = vmul.f32 %v8741_v16, %v8741_v16 }
 0x3df   : > { %v6720_v8 = vadd.f32 %v6719_v47, %v6689_v21  ;;  %v6652_v9 = vadd.f32 %v8742_v49, %v6651_v17  ;;  %v6690_v42 = vmul.f32 %v8742_v49, %v8742_v49  ;;  %v7569_v14 = vpack.c.bf16 %v8742_v49, %v8740_v62 }
 0x3e0   : > { %7630 = vst [vmem:[%s10400_s29 + $0x28] sm:$0xff] %v7574_v0  }
 0x3e1   : > { %v6653_v55 = vadd.f32 %v8739_v58, %v6652_v9  ;;  %v6721_v51 = vadd.f32 %v6720_v8, %v6690_v42  ;;  %7629 = vst [vmem:[%s10400_s29 + $0x20] sm:$0xff] %v7569_v14   ;;  %v8697_v44 = vpop.f32.mrb[12].mxu0 }
 0x3e2   : > { %v8743_v52 = vadd.f32 %v8697_v44, %v10356_v27  ;;  %v6533_v61 = vpop.f32.mrb[13].mxu0 }
 0x3e3   : > { %v6722_v20 = vadd.f32 %v6721_v51, %v6691_v57  ;;  %v8744_v15 = vadd.f32 %v6533_v61, %v10358_v39  ;;  %v6654_v45 = vadd.f32 %v8741_v16, %v6653_v55  ;;  %v8698_v11 = vpop.f32.mrb[14].mxu0 }
 0x3e4   : > { %v8745_v36 = vadd.f32 %v8698_v11, %v10360_v28  ;;  %v6536_v38 = vpop.f32.mrb[15].mxu0  ;;  %v6695_v4 = vmul.f32 %v8743_v52, %v8743_v52 }
 0x3e5   : > { %v6655_v63 = vadd.f32 %v8744_v15, %v6654_v45  ;;  %v6693_v32 = vmul.f32 %v8744_v15, %v8744_v15  ;;  %v6723_v5 = vadd.f32 %v6722_v20, %v6692_v35  ;;  %v8746_v24 = vadd.f32 %v6536_v38, %v10362_v54 }
 0x3e6   : > { %v7584_v25 = vpack.c.bf16 %v8745_v36, %v8743_v52  ;;  %v6696_v59 = vmul.f32 %v8745_v36, %v8745_v36 }
 0x3e7   : > { %v6724_v30 = vadd.f32 %v6723_v5, %v6693_v32  ;;  %v6656_v27 = vadd.f32 %v8746_v24, %v6655_v63  ;;  %v6694_v29 = vmul.f32 %v8746_v24, %v8746_v24  ;;  %v7579_v3 = vpack.c.bf16 %v8746_v24, %v8744_v15 }
 0x3e8   : > { %7632 = vst [vmem:[%s10400_s29 + $0x38] sm:$0xff] %v7584_v25  }
 0x3e9   : > { %v6657_v7 = vadd.f32 %v8743_v52, %v6656_v27  ;;  %v6725_v39 = vadd.f32 %v6724_v30, %v6694_v29  ;;  %7631 = vst [vmem:[%s10400_s29 + $0x30] sm:$0xff] %v7579_v3   ;;  %v8701_v1 = vpop.f32.mrb[16].mxu0 }
 0x3ea   : > { %v8747_v43 = vadd.f32 %v8701_v1, %v10364_v40  ;;  %v6549_v28 = vpop.f32.mrb[17].mxu0 }
 0x3eb   : > { %v6726_v58 = vadd.f32 %v6725_v39, %v6695_v4  ;;  %v8748_v41 = vadd.f32 %v6549_v28, %v10366_v37  ;;  %v6658_v54 = vadd.f32 %v8745_v36, %v6657_v7  ;;  %v8702_v12 = vpop.f32.mrb[18].mxu0 }
 0x3ec   : > { %v8749_v23 = vadd.f32 %v8702_v12, %v10368_v50  ;;  %v6552_v62 = vpop.f32.mrb[19].mxu0  ;;  %v6699_v0 = vmul.f32 %v8747_v43, %v8747_v43 }
 0x3ed   : > { %v6659_v10 = vadd.f32 %v8748_v41, %v6658_v54  ;;  %v6697_v56 = vmul.f32 %v8748_v41, %v8748_v41  ;;  %v6727_v16 = vadd.f32 %v6726_v58, %v6696_v59  ;;  %v8750_v34 = vadd.f32 %v6552_v62, %v10370_v13 }
 0x3ee   : > { %v7594_v17 = vpack.c.bf16 %v8749_v23, %v8747_v43  ;;  %v6700_v14 = vmul.f32 %v8749_v23, %v8749_v23 }
 0x3ef   : > { %v6728_v21 = vadd.f32 %v6727_v16, %v6697_v56  ;;  %v6660_v40 = vadd.f32 %v8750_v34, %v6659_v10  ;;  %v6698_v47 = vmul.f32 %v8750_v34, %v8750_v34  ;;  %v7589_v49 = vpack.c.bf16 %v8750_v34, %v8748_v41 }
 0x3f0   : > { %7634 = vst [vmem:[%s10400_s29 + $0x48] sm:$0xff] %v7594_v17  }
 0x3f1   : > { %v6661_v8 = vadd.f32 %v8747_v43, %v6660_v40  ;;  %v6729_v37 = vadd.f32 %v6728_v21, %v6698_v47  ;;  %7633 = vst [vmem:[%s10400_s29 + $0x40] sm:$0xff] %v7589_v49   ;;  %v8705_v9 = vpop.f32.mrb[20].mxu0 }
 0x3f2   : > { %v8751_v42 = vadd.f32 %v8705_v9, %v10372_v31  ;;  %v6565_v50 = vpop.f32.mrb[21].mxu0 }
 0x3f3   : > { %v6730_v57 = vadd.f32 %v6729_v37, %v6699_v0  ;;  %v8752_v55 = vadd.f32 %v6565_v50, %v10374_v48  ;;  %v6662_v13 = vadd.f32 %v8749_v23, %v6661_v8  ;;  %v8706_v51 = vpop.f32.mrb[22].mxu0 }
 0x3f4   : > { %v8753_v44 = vadd.f32 %v8706_v51, %v10376_v19  ;;  %v6568_v52 = vpop.f32.mrb[23].mxu0  ;;  %v6703_v63 = vmul.f32 %v8751_v42, %v8751_v42 }
 0x3f5   : > { %v6663_v61 = vadd.f32 %v8752_v55, %v6662_v13  ;;  %v6701_v35 = vmul.f32 %v8752_v55, %v8752_v55  ;;  %v6731_v20 = vadd.f32 %v6730_v57, %v6700_v14  ;;  %v8754_v15 = vadd.f32 %v6568_v52, %v10378_v6 }
 0x3f6   : > { %v7604_v45 = vpack.c.bf16 %v8753_v44, %v8751_v42  ;;  %v6704_v25 = vmul.f32 %v8753_v44, %v8753_v44 }
 0x3f7   : > { %v6732_v11 = vadd.f32 %v6731_v20, %v6701_v35  ;;  %v6664_v31 = vadd.f32 %v8754_v15, %v6663_v61  ;;  %v6702_v36 = vmul.f32 %v8754_v15, %v8754_v15  ;;  %v7599_v38 = vpack.c.bf16 %v8754_v15, %v8752_v55 }
 0x3f8   : > { %7636 = vst [vmem:[%s10400_s29 + $0x58] sm:$0xff] %v7604_v45  }
 0x3f9   : > { %v6665_v32 = vadd.f32 %v8751_v42, %v6664_v31  ;;  %v6733_v48 = vadd.f32 %v6732_v11, %v6702_v36  ;;  %7635 = vst [vmem:[%s10400_s29 + $0x50] sm:$0xff] %v7599_v38   ;;  %v8709_v5 = vpop.f32.mrb[24].mxu0 }
 0x3fa   : > { %v8755_v24 = vadd.f32 %v8709_v5, %v10380_v33  ;;  %v6581_v19 = vpop.f32.mrb[25].mxu0 }
 0x3fb   : > { %v6734_v30 = vadd.f32 %v6733_v48, %v6703_v63  ;;  %v8756_v27 = vadd.f32 %v6581_v19, %v10382_v26  ;;  %v6666_v6 = vadd.f32 %v8753_v44, %v6665_v32  ;;  %v8710_v29 = vpop.f32.mrb[26].mxu0 }
 0x3fc   : > { %v8757_v3 = vadd.f32 %v8710_v29, %v10384_v53  ;;  %v6584_v4 = vpop.f32.mrb[27].mxu0  ;;  %v6707_v54 = vmul.f32 %v8755_v24, %v8755_v24 }
 0x3fd   : > { %v6667_v7 = vadd.f32 %v8756_v27, %v6666_v6  ;;  %v6705_v39 = vmul.f32 %v8756_v27, %v8756_v27  ;;  %v6735_v1 = vadd.f32 %v6734_v30, %v6704_v25  ;;  %v8758_v43 = vadd.f32 %v6584_v4, %v10386_v46 }
 0x3fe   : > { %v7614_v28 = vpack.c.bf16 %v8757_v3, %v8755_v24  ;;  %v6708_v10 = vmul.f32 %v8757_v3, %v8757_v3 }
 0x3ff   : > { %v6736_v59 = vadd.f32 %v6735_v1, %v6705_v39  ;;  %v6668_v33 = vadd.f32 %v8758_v43, %v6667_v7  ;;  %v6706_v58 = vmul.f32 %v8758_v43, %v8758_v43  ;;  %v7609_v41 = vpack.c.bf16 %v8758_v43, %v8756_v27 }
 0x400   : > { %7638 = vst [vmem:[%s10400_s29 + $0x68] sm:$0xff] %v7614_v28  }
 0x401   : > { %v6669_v12 = vadd.f32 %v8755_v24, %v6668_v33  ;;  %v6737_v26 = vadd.f32 %v6736_v59, %v6706_v58  ;;  %7637 = vst [vmem:[%s10400_s29 + $0x60] sm:$0xff] %v7609_v41   ;;  %v8713_v23 = vpop.f32.mrb[28].mxu0 }
 0x402   : > { %v8759_v62 = vadd.f32 %v8713_v23, %v10388_v2  ;;  %v6597_v53 = vpop.f32.mrb[29].mxu0 }
 0x403   : > { %v6738_v56 = vadd.f32 %v6737_v26, %v6707_v54  ;;  %v8760_v16 = vadd.f32 %v6597_v53, %v10390_v60  ;;  %v6670_v46 = vadd.f32 %v8757_v3, %v6669_v12  ;;  %v8714_v34 = vpop.f32.mrb[30].mxu0 }
 0x404   : > { %v8761_v17 = vadd.f32 %v8714_v34, %v10392_v22  ;;  %v6600_v21 = vpop.f32.mrb[31].mxu0  ;;  %v6711_v50 = vmul.f32 %v8759_v62, %v8759_v62 }
 0x405   : > { %v6671_v40 = vadd.f32 %v8760_v16, %v6670_v46  ;;  %v6709_v47 = vmul.f32 %v8760_v16, %v8760_v16  ;;  %v6739_v49 = vadd.f32 %v6738_v56, %v6708_v10  ;;  %v8762_v0 = vadd.f32 %v6600_v21, %v10394_v18 }
 0x406   : > { %v7624_v8 = vpack.c.bf16 %v8761_v17, %v8759_v62  ;;  %v6712_v57 = vmul.f32 %v8761_v17, %v8761_v17 }
 0x407   : > { %v6740_v37 = vadd.f32 %v6739_v49, %v6709_v47  ;;  %v6672_v2 = vadd.f32 %v8762_v0, %v6671_v40  ;;  %v6710_v9 = vmul.f32 %v8762_v0, %v8762_v0  ;;  %v7619_v42 = vpack.c.bf16 %v8762_v0, %v8760_v16 }
 0x408   : > { %7640 = vst [vmem:[%s10400_s29 + $0x78] sm:$0xff] %v7624_v8  }
 0x409   : > { %v6673_v14 = vadd.f32 %v8759_v62, %v6672_v2  ;;  %v6741_v60 = vadd.f32 %v6740_v37, %v6710_v9  ;;  %7639 = vst [vmem:[%s10400_s29 + $0x70] sm:$0xff] %v7619_v42  }
 0x40b   : > { %v6674_v55 = vadd.f32 %v8761_v17, %v6673_v14  ;;  %v6742_v22 = vadd.f32 %v6741_v60, %v6711_v50 }
 0x40d   : > { %v6675_v13 = vrot.slane %v6674_v55, 4  ;;  %v6743_v51 = vadd.f32 %v6742_v22, %v6712_v57 }
 0x40f   : > { %v6676_v44 = vadd.f32 %v6675_v13, %v6674_v55  ;;  %v6744_v52 = vrot.slane %v6743_v51, 4 }
 0x411   : > { %v6677_v61 = vrot.slane %v6676_v44, 2  ;;  %v6745_v18 = vadd.f32 %v6744_v52, %v6743_v51 }
 0x413   : > { %v6678_v35 = vadd.f32 %v6677_v61, %v6676_v44  ;;  %v6746_v20 = vrot.slane %v6745_v18, 2 }
 0x415   : > { %v6679_v15 = vrot.slane %v6678_v35, 1  ;;  %v6747_v45 = vadd.f32 %v6746_v20, %v6745_v18 }
 0x417   : > { %v6748_v11 = vrot.slane %v6747_v45, 1  ;;  %v6680_v31 = vadd.f32 %v6679_v15, %v6678_v35 }
 0x419   : > { %v6749_v36 = vadd.f32 %v6748_v11, %v6747_v45 }
 0x41b   : > { %v6750_v38 = vsel %vm695_vm0, %v6680_v31, %v6749_v36 }
 0x41c   : > { %6751 = vst [vmem:[%s208_s7] sm:$0x3] %v6750_v38 }
 0x41d PF: > { %s15_s15 = sadd.s32 1, %s9274_s15  }
 0x41e   : > { %p12_p4 = scmp.ge.s32.totalorder %s15_s15, 6  }
 0x420   :  { %14 = sbr.rel (!%p12_p4) target bundleno = 1 (0x1), region = 90 }

</bundles_post_ra>
